<compile_context>
chip_gen: v7x
topology: tpu7x:2x2x1
jax: 0.10.0
libtpu: 0.0.40
codegen_flags: <defaults>
</compile_context>

<pallas_src>
import functools

import jax
import jax.numpy as jnp
from jax.experimental import pallas as pl
from jax.experimental.pallas import tpu as pltpu


def _conv3x3x3(x_mm, mask_ref, w_ref, taps, tap_chunks):
    """3x3x3 'SAME' conv as a K-chunked im2col contraction.

    x_mm:    (C, S) activation slab already cast to the matmul dtype.
    mask_ref:(27, S) 0/1 tap-validity masks in the matmul dtype.
    w_ref:   (tap_chunks, Cout, tpc*C) chunk-major / tap-major / channel-minor
             weight slabs.
    Returns the biasless conv output (Cout, S) accumulated in f32; only a
    (tpc*C, S) patch is ever live."""
    C, S = x_mm.shape
    tpc = len(taps) // tap_chunks
    acc = None
    for c in range(tap_chunks):
        pieces = []
        for k in range(c * tpc, (c + 1) * tpc):
            off = taps[k]
            if off == 0:                                     # centre tap: always valid
                v = x_mm
            else:
                v = pltpu.roll(x_mm, shift=(-off) % S, axis=1)  # v[:, s] = x[:, s + off]
                v = v * mask_ref[k:k + 1, :]                    # zero out-of-volume lanes
            pieces.append(v)
        patch = jnp.concatenate(pieces, axis=0)              # (tpc*C, S), matmul dtype
        part = jnp.dot(w_ref[c], patch, preferred_element_type=jnp.float32)
        acc = part if acc is None else acc + part
    return acc


def _group_norm_silu(h0, bias, gamma, beta, groups, eps=1e-5):
    """GroupNorm (biased var, eps=1e-5, affine) + SiLU on the biasless conv
    output h0 (C, S) f32.  The conv bias (C, 1) is folded in analytically:
    stats are those of (h0 + bias) and bias*scale is merged into the affine
    shift, so the (C, S) bias broadcast-add is never materialized."""
    C, S = h0.shape
    cg = C // groups
    n = float(S * cg)

    s0 = jnp.sum(h0, axis=1, keepdims=True)                  # (C, 1)
    ss0 = jnp.sum(h0 * h0, axis=1, keepdims=True)            # (C, 1)
    s = s0 + float(S) * bias                                 # sum(h0 + b)
    ss = ss0 + 2.0 * bias * s0 + float(S) * (bias * bias)    # sum((h0 + b)^2)

    # Tiny (G, C//G) reshape + sum instead of N=1 one-hot matmuls.
    mean_g = jnp.sum(s.reshape(groups, cg), axis=1, keepdims=True) / n
    ex2_g = jnp.sum(ss.reshape(groups, cg), axis=1, keepdims=True) / n
    var_g = ex2_g - mean_g * mean_g
    mean_c = jnp.broadcast_to(mean_g, (groups, cg)).reshape(C, 1)
    var_c = jnp.broadcast_to(var_g, (groups, cg)).reshape(C, 1)

    # E[x^2]-E[x]^2 can cancel if activations develop a large DC offset; the
    # clamp guards NaN (a centered second pass would be exact but costs a pass).
    var_c = jnp.maximum(var_c, 0.0)
    inv = jax.lax.rsqrt(var_c + eps)
    scale = gamma * inv                                      # (C, 1)
    shift = beta + (bias - mean_c) * scale                   # conv bias folded here
    hn = h0 * scale + shift                                  # one FMA per element
    # SiLU: divide -> EUP approx reciprocal (exp already lives on the EUP slot).
    return hn * pl.reciprocal(1.0 + jnp.exp(-hn), approx=True)


def resnet_block_kernel(x_ref, mask_ref,
                        w1_ref, b1_ref, g1_ref, be1_ref,
                        w2_ref, b2_ref, g2_ref, be2_ref,
                        wres_ref, bres_ref,
                        out_ref, *, taps, groups, mm_dtype, tap_chunks):
    x = x_ref[0].astype(mm_dtype)                            # (Cin_pad, S), cast ONCE

    # ---- block 1: conv3x3x3 -> GroupNorm(+folded bias) -> SiLU ----
    h = _conv3x3x3(x, mask_ref, w1_ref, taps, tap_chunks)    # (Cout, S) f32
    h = _group_norm_silu(h, b1_ref[...], g1_ref[...], be1_ref[...], groups)

    # ---- block 2: conv3x3x3 -> GroupNorm(+folded bias) -> SiLU ----
    h2 = _conv3x3x3(h.astype(mm_dtype), mask_ref, w2_ref, taps, tap_chunks)
    h2 = _group_norm_silu(h2, b2_ref[...], g2_ref[...], be2_ref[...], groups)

    # ---- residual 1x1x1 conv on the original input ----
    res = jnp.dot(wres_ref[...], x, preferred_element_type=jnp.float32) + bres_ref[...]

    out_ref[0] = (h2 + res).astype(out_ref.dtype)


def resnet_block(x, params, groups, matmul_dtype=jnp.bfloat16, tap_chunks=3):
    """x: (B, Cin, D, H, W) float32 (PyTorch NCDHW).  Returns (B, Cout, D, H, W)."""
    B, Cin, D, H, W = x.shape
    Cout = params["w1"].shape[0]
    assert Cout % groups == 0, "GroupNorm requires groups to divide dim_out"
    assert Cout % 8 == 0, "Cout must be a multiple of the 8-sublane f32 tile"
    assert 27 % tap_chunks == 0
    S = D * H * W
    Cin_p = ((Cin + 7) // 8) * 8      # padded channels only enter the conv K dim,
    tpc = 27 // tap_chunks            # never a GroupNorm group (GN is over Cout)

    # Flatten spatial (lane-dense), zero-pad input channels to the sublane tile.
    xs = jnp.pad(x.reshape(B, Cin, S), ((0, 0), (0, Cin_p - Cin), (0, 0)))

    # 27 tap offsets on the flattened spatial axis + validity masks.  Masks are
    # stored in the matmul dtype (exactly 0/1, so lossless) so the im2col
    # mask-multiply stays in that dtype.
    s_idx = jnp.arange(S)
    wi = s_idx % W
    hi = (s_idx // W) % H
    di = s_idx // (H * W)
    taps, masks = [], []
    for dz in (-1, 0, 1):
        for dy in (-1, 0, 1):
            for dx in (-1, 0, 1):
                taps.append((dz * H + dy) * W + dx)
                ok = ((di + dz >= 0) & (di + dz < D) &
                      (hi + dy >= 0) & (hi + dy < H) &
                      (wi + dx >= 0) & (wi + dx < W))
                masks.append(ok)
    mask = jnp.stack(masks, axis=0).astype(matmul_dtype)     # (27, S)

    # Conv weights -> (tap_chunks, Cout, tpc*Cin_pad): chunk-major so each
    # K-chunk of the contraction is a clean, statically indexable slab.
    def conv_weight(w, cin_pad):
        co, ci = w.shape[0], w.shape[1]
        wt = jnp.transpose(w, (0, 2, 3, 4, 1)).reshape(co, 27, ci)   # tap-major
        wt = jnp.pad(wt, ((0, 0), (0, 0), (0, cin_pad - ci)))
        wt = wt.reshape(co, tap_chunks, tpc * cin_pad).transpose(1, 0, 2)
        return wt.astype(matmul_dtype)

    w1m = conv_weight(params["w1"], Cin_p)
    w2m = conv_weight(params["w2"], Cout)
    wrm = jnp.pad(params["wres"], ((0, 0), (0, Cin_p - Cin))).astype(matmul_dtype)
    col = lambda v: v.reshape(-1, 1).astype(jnp.float32)

    kernel = functools.partial(resnet_block_kernel, taps=tuple(taps),
                               groups=groups, mm_dtype=matmul_dtype,
                               tap_chunks=tap_chunks)

    def full(shape):
        # Whole-array block, identical for every grid step.  At production
        # channel counts single-buffer these constant blocks
        # (pipeline_mode=pl.Buffered(1)) to halve their VMEM footprint --
        # negligible at these toy sizes.
        return pl.BlockSpec(shape, lambda b: (0,) * len(shape))

    out = pl.pallas_call(
        kernel,
        out_shape=jax.ShapeDtypeStruct((B, Cout, S), jnp.float32),
        grid=(B,),
        in_specs=[
            pl.BlockSpec((1, Cin_p, S), lambda b: (b, 0, 0)),        # x slab per batch
            full((27, S)),                                           # tap masks
            full((tap_chunks, Cout, tpc * Cin_p)),
            full((Cout, 1)), full((Cout, 1)), full((Cout, 1)),
            full((tap_chunks, Cout, tpc * Cout)),
            full((Cout, 1)), full((Cout, 1)), full((Cout, 1)),
            full((Cout, Cin_p)), full((Cout, 1)),
        ],
        out_specs=pl.BlockSpec((1, Cout, S), lambda b: (b, 0, 0)),
        compiler_params=pltpu.CompilerParams(
            dimension_semantics=("parallel",)),
    )(xs, mask, w1m, col(params["b1"]), col(params["g1"]), col(params["be1"]),
      w2m, col(params["b2"]), col(params["g2"]), col(params["be2"]),
      wrm, col(params["bres"]))
    return out.reshape(B, Cout, D, H, W)


def ref_forward(x, params, groups, matmul_dtype=jnp.float32):
    """Pure-JAX reference matching PyTorch ResnetBlock semantics (NCDHW)."""
    dn = ("NCDHW", "OIDHW", "NCDHW")
    prec = jax.lax.Precision.HIGHEST

    def rnd(a):  # reproduce the kernel's matmul-operand rounding
        return a.astype(matmul_dtype).astype(jnp.float32)

    def block(y, w, b, gamma, beta):
        z = jax.lax.conv_general_dilated(rnd(y), rnd(w), (1, 1, 1), "SAME",
                                         dimension_numbers=dn, precision=prec)
        z = z + b[None, :, None, None, None]
        zr = z.reshape(z.shape[0], groups, -1)
        mean = zr.mean(axis=2, keepdims=True)
        var = zr.var(axis=2, keepdims=True)
        zn = ((zr - mean) * jax.lax.rsqrt(var + 1e-5)).reshape(z.shape)
        zn = zn * gamma[None, :, None, None, None] + beta[None, :, None, None, None]
        return zn * jax.nn.sigmoid(zn)

    h = block(x, params["w1"], params["b1"], params["g1"], params["be1"])
    h = block(h, params["w2"], params["b2"], params["g2"], params["be2"])
    res = jnp.einsum("oc,bcdhw->bodhw", rnd(params["wres"]), rnd(x), precision=prec)
    res = res + params["bres"][None, :, None, None, None]
    return h + res


if __name__ == "__main__":
    B, Cin, Cout, D, H, W, G = 2, 4, 8, 8, 8, 8, 8   # dim=4 -> dim_out=8, groups=8
    key = jax.random.PRNGKey(0)
    ks = jax.random.split(key, 11)
    params = {
        "w1": 0.2 * jax.random.normal(ks[0], (Cout, Cin, 3, 3, 3), jnp.float32),
        "b1": 0.1 * jax.random.normal(ks[1], (Cout,), jnp.float32),
        "g1": 1.0 + 0.1 * jax.random.normal(ks[2], (Cout,), jnp.float32),
        "be1": 0.1 * jax.random.normal(ks[3], (Cout,), jnp.float32),
        "w2": 0.2 * jax.random.normal(ks[4], (Cout, Cout, 3, 3, 3), jnp.float32),
        "b2": 0.1 * jax.random.normal(ks[5], (Cout,), jnp.float32),
        "g2": 1.0 + 0.1 * jax.random.normal(ks[6], (Cout,), jnp.float32),
        "be2": 0.1 * jax.random.normal(ks[7], (Cout,), jnp.float32),
        "wres": 0.2 * jax.random.normal(ks[8], (Cout, Cin), jnp.float32),
        "bres": 0.1 * jax.random.normal(ks[9], (Cout,), jnp.float32),
    }
    x = jax.random.normal(ks[10], (B, Cin, D, H, W), jnp.float32)

    # f32-matmul semantics check.  Tolerance accounts for the approx-reciprocal
    # (EUP) SiLU; structural bugs produce errors orders of magnitude larger.
    out32 = jax.block_until_ready(resnet_block(x, params, G, matmul_dtype=jnp.float32))
    ref32 = jax.block_until_ready(ref_forward(x, params, G, matmul_dtype=jnp.float32))
    assert out32.shape == (B, Cout, D, H, W)
    err32 = float(jnp.max(jnp.abs(out32 - ref32)))
    assert err32 < 2e-2, f"f32 max abs err {err32}"

    # Default bf16 MXU-operand path vs a reference with identically rounded operands.
    outbf = jax.block_until_ready(resnet_block(x, params, G, matmul_dtype=jnp.bfloat16))
    refbf = jax.block_until_ready(ref_forward(x, params, G, matmul_dtype=jnp.bfloat16))
    errbf = float(jnp.max(jnp.abs(outbf - refbf)))
    assert errbf < 4e-2, f"bf16 max abs err {errbf}"

    print("KERNEL_OK")
</pallas_src>

<mosaic_0001>
module attributes {stable_mosaic.version = 11 : i64} {
  func.func @resnet_block_kernel(%arg0: i32, %arg1: memref<1x8x512xf32, #tpu.memory_space<vmem>>, %arg2: memref<27x512xf32, #tpu.memory_space<vmem>>, %arg3: memref<3x8x72xf32, #tpu.memory_space<vmem>>, %arg4: memref<8x1xf32, #tpu.memory_space<vmem>>, %arg5: memref<8x1xf32, #tpu.memory_space<vmem>>, %arg6: memref<8x1xf32, #tpu.memory_space<vmem>>, %arg7: memref<3x8x72xf32, #tpu.memory_space<vmem>>, %arg8: memref<8x1xf32, #tpu.memory_space<vmem>>, %arg9: memref<8x1xf32, #tpu.memory_space<vmem>>, %arg10: memref<8x1xf32, #tpu.memory_space<vmem>>, %arg11: memref<8x8xf32, #tpu.memory_space<vmem>>, %arg12: memref<8x1xf32, #tpu.memory_space<vmem>>, %arg13: memref<1x8x512xf32, #tpu.memory_space<vmem>>) attributes {dimension_semantics = [#tpu.dimension_semantics<parallel>], iteration_bounds = array<i64: 2>, scalar_prefetch = 0 : i64, scratch_operands = 0 : i64, tpu.core_type = #tpu.core_type<tc>, window_params = [{transform_indices = @transform_0, window_bounds = array<i64: 1, 8, 512>}, {pipeline_mode = #tpu.pipeline_mode<synchronous>, transform_indices = @transform_1, window_bounds = array<i64: 27, 512>}, {pipeline_mode = #tpu.pipeline_mode<synchronous>, transform_indices = @transform_2, window_bounds = array<i64: 3, 8, 72>}, {pipeline_mode = #tpu.pipeline_mode<synchronous>, transform_indices = @transform_3, window_bounds = array<i64: 8, 1>}, {pipeline_mode = #tpu.pipeline_mode<synchronous>, transform_indices = @transform_4, window_bounds = array<i64: 8, 1>}, {pipeline_mode = #tpu.pipeline_mode<synchronous>, transform_indices = @transform_5, window_bounds = array<i64: 8, 1>}, {pipeline_mode = #tpu.pipeline_mode<synchronous>, transform_indices = @transform_6, window_bounds = array<i64: 3, 8, 72>}, {pipeline_mode = #tpu.pipeline_mode<synchronous>, transform_indices = @transform_7, window_bounds = array<i64: 8, 1>}, {pipeline_mode = #tpu.pipeline_mode<synchronous>, transform_indices = @transform_8, window_bounds = array<i64: 8, 1>}, {pipeline_mode = #tpu.pipeline_mode<synchronous>, transform_indices = @transform_9, window_bounds = array<i64: 8, 1>}, {pipeline_mode = #tpu.pipeline_mode<synchronous>, transform_indices = @transform_10, window_bounds = array<i64: 8, 8>}, {pipeline_mode = #tpu.pipeline_mode<synchronous>, transform_indices = @transform_11, window_bounds = array<i64: 8, 1>}, {transform_indices = @transform_12, window_bounds = array<i64: 1, 8, 512>}]} {
    %c0 = arith.constant 0 : index
    %c0_0 = arith.constant 0 : index
    %c0_1 = arith.constant 0 : index
    %0 = vector.load %arg1[%c0, %c0_0, %c0_1] : memref<1x8x512xf32, #tpu.memory_space<vmem>>, vector<1x8x512xf32>
    %1 = vector.shape_cast %0 : vector<1x8x512xf32> to vector<8x512xf32>
    %c73_i32 = arith.constant 73 : i32
    %2 = tpu.dynamic_rotate %1 by %c73_i32 dim 1 : vector<8x512xf32>, i32 -> vector<8x512xf32>
    %c0_2 = arith.constant 0 : index
    %c0_3 = arith.constant 0 : index
    %3 = vector.load %arg2[%c0_2, %c0_3] : memref<27x512xf32, #tpu.memory_space<vmem>>, vector<1x512xf32>
    %4 = vector.broadcast %3 : vector<1x512xf32> to vector<8x512xf32>
    %5 = arith.mulf %2, %4 : vector<8x512xf32>
    %c72_i32 = arith.constant 72 : i32
    %6 = tpu.dynamic_rotate %1 by %c72_i32 dim 1 : vector<8x512xf32>, i32 -> vector<8x512xf32>
    %c1 = arith.constant 1 : index
    %c0_4 = arith.constant 0 : index
    %7 = vector.load %arg2[%c1, %c0_4] : memref<27x512xf32, #tpu.memory_space<vmem>>, vector<1x512xf32>
    %8 = vector.broadcast %7 : vector<1x512xf32> to vector<8x512xf32>
    %9 = arith.mulf %6, %8 : vector<8x512xf32>
    %c71_i32 = arith.constant 71 : i32
    %10 = tpu.dynamic_rotate %1 by %c71_i32 dim 1 : vector<8x512xf32>, i32 -> vector<8x512xf32>
    %c2 = arith.constant 2 : index
    %c0_5 = arith.constant 0 : index
    %11 = vector.load %arg2[%c2, %c0_5] : memref<27x512xf32, #tpu.memory_space<vmem>>, vector<1x512xf32>
    %12 = vector.broadcast %11 : vector<1x512xf32> to vector<8x512xf32>
    %13 = arith.mulf %10, %12 : vector<8x512xf32>
    %c65_i32 = arith.constant 65 : i32
    %14 = tpu.dynamic_rotate %1 by %c65_i32 dim 1 : vector<8x512xf32>, i32 -> vector<8x512xf32>
    %c3 = arith.constant 3 : index
    %c0_6 = arith.constant 0 : index
    %15 = vector.load %arg2[%c3, %c0_6] : memref<27x512xf32, #tpu.memory_space<vmem>>, vector<1x512xf32>
    %16 = vector.broadcast %15 : vector<1x512xf32> to vector<8x512xf32>
    %17 = arith.mulf %14, %16 : vector<8x512xf32>
    %c64_i32 = arith.constant 64 : i32
    %18 = tpu.dynamic_rotate %1 by %c64_i32 dim 1 : vector<8x512xf32>, i32 -> vector<8x512xf32>
    %c4 = arith.constant 4 : index
    %c0_7 = arith.constant 0 : index
    %19 = vector.load %arg2[%c4, %c0_7] : memref<27x512xf32, #tpu.memory_space<vmem>>, vector<1x512xf32>
    %20 = vector.broadcast %19 : vector<1x512xf32> to vector<8x512xf32>
    %21 = arith.mulf %18, %20 : vector<8x512xf32>
    %c63_i32 = arith.constant 63 : i32
    %22 = tpu.dynamic_rotate %1 by %c63_i32 dim 1 : vector<8x512xf32>, i32 -> vector<8x512xf32>
    %c5 = arith.constant 5 : index
    %c0_8 = arith.constant 0 : index
    %23 = vector.load %arg2[%c5, %c0_8] : memref<27x512xf32, #tpu.memory_space<vmem>>, vector<1x512xf32>
    %24 = vector.broadcast %23 : vector<1x512xf32> to vector<8x512xf32>
    %25 = arith.mulf %22, %24 : vector<8x512xf32>
    %c57_i32 = arith.constant 57 : i32
    %26 = tpu.dynamic_rotate %1 by %c57_i32 dim 1 : vector<8x512xf32>, i32 -> vector<8x512xf32>
    %c6 = arith.constant 6 : index
    %c0_9 = arith.constant 0 : index
    %27 = vector.load %arg2[%c6, %c0_9] : memref<27x512xf32, #tpu.memory_space<vmem>>, vector<1x512xf32>
    %28 = vector.broadcast %27 : vector<1x512xf32> to vector<8x512xf32>
    %29 = arith.mulf %26, %28 : vector<8x512xf32>
    %c56_i32 = arith.constant 56 : i32
    %30 = tpu.dynamic_rotate %1 by %c56_i32 dim 1 : vector<8x512xf32>, i32 -> vector<8x512xf32>
    %c7 = arith.constant 7 : index
    %c0_10 = arith.constant 0 : index
    %31 = vector.load %arg2[%c7, %c0_10] : memref<27x512xf32, #tpu.memory_space<vmem>>, vector<1x512xf32>
    %32 = vector.broadcast %31 : vector<1x512xf32> to vector<8x512xf32>
    %33 = arith.mulf %30, %32 : vector<8x512xf32>
    %c55_i32 = arith.constant 55 : i32
    %34 = tpu.dynamic_rotate %1 by %c55_i32 dim 1 : vector<8x512xf32>, i32 -> vector<8x512xf32>
    %c8 = arith.constant 8 : index
    %c0_11 = arith.constant 0 : index
    %35 = vector.load %arg2[%c8, %c0_11] : memref<27x512xf32, #tpu.memory_space<vmem>>, vector<1x512xf32>
    %36 = vector.broadcast %35 : vector<1x512xf32> to vector<8x512xf32>
    %37 = arith.mulf %34, %36 : vector<8x512xf32>
    %38 = tpu.concatenate %5, %9, %13, %17, %21, %25, %29, %33, %37 in 0 : vector<8x512xf32>, vector<8x512xf32>, vector<8x512xf32>, vector<8x512xf32>, vector<8x512xf32>, vector<8x512xf32>, vector<8x512xf32>, vector<8x512xf32>, vector<8x512xf32> -> vector<72x512xf32>
    %c0_12 = arith.constant 0 : index
    %c0_13 = arith.constant 0 : index
    %c0_14 = arith.constant 0 : index
    %39 = vector.load %arg3[%c0_12, %c0_13, %c0_14] : memref<3x8x72xf32, #tpu.memory_space<vmem>>, vector<1x8x72xf32>
    %40 = vector.shape_cast %39 : vector<1x8x72xf32> to vector<8x72xf32>
    %cst = arith.constant dense<0.000000e+00> : vector<8x512xf32>
    %41 = tpu.matmul %40, %38, %cst {dimension_numbers = #tpu.dot_dimension_numbers<[1], [0], [0], [1], [0, 0, 1, 1], [], []>} : vector<8x72xf32>, vector<72x512xf32>, vector<8x512xf32> -> vector<8x512xf32>
    %c9_i32 = arith.constant 9 : i32
    %42 = tpu.dynamic_rotate %1 by %c9_i32 dim 1 : vector<8x512xf32>, i32 -> vector<8x512xf32>
    %c9 = arith.constant 9 : index
    %c0_15 = arith.constant 0 : index
    %43 = vector.load %arg2[%c9, %c0_15] : memref<27x512xf32, #tpu.memory_space<vmem>>, vector<1x512xf32>
    %44 = vector.broadcast %43 : vector<1x512xf32> to vector<8x512xf32>
    %45 = arith.mulf %42, %44 : vector<8x512xf32>
    %c8_i32 = arith.constant 8 : i32
    %46 = tpu.dynamic_rotate %1 by %c8_i32 dim 1 : vector<8x512xf32>, i32 -> vector<8x512xf32>
    %c10 = arith.constant 10 : index
    %c0_16 = arith.constant 0 : index
    %47 = vector.load %arg2[%c10, %c0_16] : memref<27x512xf32, #tpu.memory_space<vmem>>, vector<1x512xf32>
    %48 = vector.broadcast %47 : vector<1x512xf32> to vector<8x512xf32>
    %49 = arith.mulf %46, %48 : vector<8x512xf32>
    %c7_i32 = arith.constant 7 : i32
    %50 = tpu.dynamic_rotate %1 by %c7_i32 dim 1 : vector<8x512xf32>, i32 -> vector<8x512xf32>
    %c11 = arith.constant 11 : index
    %c0_17 = arith.constant 0 : index
    %51 = vector.load %arg2[%c11, %c0_17] : memref<27x512xf32, #tpu.memory_space<vmem>>, vector<1x512xf32>
    %52 = vector.broadcast %51 : vector<1x512xf32> to vector<8x512xf32>
    %53 = arith.mulf %50, %52 : vector<8x512xf32>
    %c1_i32 = arith.constant 1 : i32
    %54 = tpu.dynamic_rotate %1 by %c1_i32 dim 1 : vector<8x512xf32>, i32 -> vector<8x512xf32>
    %c12 = arith.constant 12 : index
    %c0_18 = arith.constant 0 : index
    %55 = vector.load %arg2[%c12, %c0_18] : memref<27x512xf32, #tpu.memory_space<vmem>>, vector<1x512xf32>
    %56 = vector.broadcast %55 : vector<1x512xf32> to vector<8x512xf32>
    %57 = arith.mulf %54, %56 : vector<8x512xf32>
    %c511_i32 = arith.constant 511 : i32
    %58 = tpu.dynamic_rotate %1 by %c511_i32 dim 1 : vector<8x512xf32>, i32 -> vector<8x512xf32>
    %c14 = arith.constant 14 : index
    %c0_19 = arith.constant 0 : index
    %59 = vector.load %arg2[%c14, %c0_19] : memref<27x512xf32, #tpu.memory_space<vmem>>, vector<1x512xf32>
    %60 = vector.broadcast %59 : vector<1x512xf32> to vector<8x512xf32>
    %61 = arith.mulf %58, %60 : vector<8x512xf32>
    %c505_i32 = arith.constant 505 : i32
    %62 = tpu.dynamic_rotate %1 by %c505_i32 dim 1 : vector<8x512xf32>, i32 -> vector<8x512xf32>
    %c15 = arith.constant 15 : index
    %c0_20 = arith.constant 0 : index
    %63 = vector.load %arg2[%c15, %c0_20] : memref<27x512xf32, #tpu.memory_space<vmem>>, vector<1x512xf32>
    %64 = vector.broadcast %63 : vector<1x512xf32> to vector<8x512xf32>
    %65 = arith.mulf %62, %64 : vector<8x512xf32>
    %c504_i32 = arith.constant 504 : i32
    %66 = tpu.dynamic_rotate %1 by %c504_i32 dim 1 : vector<8x512xf32>, i32 -> vector<8x512xf32>
    %c16 = arith.constant 16 : index
    %c0_21 = arith.constant 0 : index
    %67 = vector.load %arg2[%c16, %c0_21] : memref<27x512xf32, #tpu.memory_space<vmem>>, vector<1x512xf32>
    %68 = vector.broadcast %67 : vector<1x512xf32> to vector<8x512xf32>
    %69 = arith.mulf %66, %68 : vector<8x512xf32>
    %c503_i32 = arith.constant 503 : i32
    %70 = tpu.dynamic_rotate %1 by %c503_i32 dim 1 : vector<8x512xf32>, i32 -> vector<8x512xf32>
    %c17 = arith.constant 17 : index
    %c0_22 = arith.constant 0 : index
    %71 = vector.load %arg2[%c17, %c0_22] : memref<27x512xf32, #tpu.memory_space<vmem>>, vector<1x512xf32>
    %72 = vector.broadcast %71 : vector<1x512xf32> to vector<8x512xf32>
    %73 = arith.mulf %70, %72 : vector<8x512xf32>
    %74 = tpu.concatenate %45, %49, %53, %57, %1, %61, %65, %69, %73 in 0 : vector<8x512xf32>, vector<8x512xf32>, vector<8x512xf32>, vector<8x512xf32>, vector<8x512xf32>, vector<8x512xf32>, vector<8x512xf32>, vector<8x512xf32>, vector<8x512xf32> -> vector<72x512xf32>
    %c1_23 = arith.constant 1 : index
    %c0_24 = arith.constant 0 : index
    %c0_25 = arith.constant 0 : index
    %75 = vector.load %arg3[%c1_23, %c0_24, %c0_25] : memref<3x8x72xf32, #tpu.memory_space<vmem>>, vector<1x8x72xf32>
    %76 = vector.shape_cast %75 : vector<1x8x72xf32> to vector<8x72xf32>
    %cst_26 = arith.constant dense<0.000000e+00> : vector<8x512xf32>
    %77 = tpu.matmul %76, %74, %cst_26 {dimension_numbers = #tpu.dot_dimension_numbers<[1], [0], [0], [1], [0, 0, 1, 1], [], []>} : vector<8x72xf32>, vector<72x512xf32>, vector<8x512xf32> -> vector<8x512xf32>
    %78 = arith.addf %41, %77 : vector<8x512xf32>
    %c457_i32 = arith.constant 457 : i32
    %79 = tpu.dynamic_rotate %1 by %c457_i32 dim 1 : vector<8x512xf32>, i32 -> vector<8x512xf32>
    %c18 = arith.constant 18 : index
    %c0_27 = arith.constant 0 : index
    %80 = vector.load %arg2[%c18, %c0_27] : memref<27x512xf32, #tpu.memory_space<vmem>>, vector<1x512xf32>
    %81 = vector.broadcast %80 : vector<1x512xf32> to vector<8x512xf32>
    %82 = arith.mulf %79, %81 : vector<8x512xf32>
    %c456_i32 = arith.constant 456 : i32
    %83 = tpu.dynamic_rotate %1 by %c456_i32 dim 1 : vector<8x512xf32>, i32 -> vector<8x512xf32>
    %c19 = arith.constant 19 : index
    %c0_28 = arith.constant 0 : index
    %84 = vector.load %arg2[%c19, %c0_28] : memref<27x512xf32, #tpu.memory_space<vmem>>, vector<1x512xf32>
    %85 = vector.broadcast %84 : vector<1x512xf32> to vector<8x512xf32>
    %86 = arith.mulf %83, %85 : vector<8x512xf32>
    %c455_i32 = arith.constant 455 : i32
    %87 = tpu.dynamic_rotate %1 by %c455_i32 dim 1 : vector<8x512xf32>, i32 -> vector<8x512xf32>
    %c20 = arith.constant 20 : index
    %c0_29 = arith.constant 0 : index
    %88 = vector.load %arg2[%c20, %c0_29] : memref<27x512xf32, #tpu.memory_space<vmem>>, vector<1x512xf32>
    %89 = vector.broadcast %88 : vector<1x512xf32> to vector<8x512xf32>
    %90 = arith.mulf %87, %89 : vector<8x512xf32>
    %c449_i32 = arith.constant 449 : i32
    %91 = tpu.dynamic_rotate %1 by %c449_i32 dim 1 : vector<8x512xf32>, i32 -> vector<8x512xf32>
    %c21 = arith.constant 21 : index
    %c0_30 = arith.constant 0 : index
    %92 = vector.load %arg2[%c21, %c0_30] : memref<27x512xf32, #tpu.memory_space<vmem>>, vector<1x512xf32>
    %93 = vector.broadcast %92 : vector<1x512xf32> to vector<8x512xf32>
    %94 = arith.mulf %91, %93 : vector<8x512xf32>
    %c448_i32 = arith.constant 448 : i32
    %95 = tpu.dynamic_rotate %1 by %c448_i32 dim 1 : vector<8x512xf32>, i32 -> vector<8x512xf32>
    %c22 = arith.constant 22 : index
    %c0_31 = arith.constant 0 : index
    %96 = vector.load %arg2[%c22, %c0_31] : memref<27x512xf32, #tpu.memory_space<vmem>>, vector<1x512xf32>
    %97 = vector.broadcast %96 : vector<1x512xf32> to vector<8x512xf32>
    %98 = arith.mulf %95, %97 : vector<8x512xf32>
    %c447_i32 = arith.constant 447 : i32
    %99 = tpu.dynamic_rotate %1 by %c447_i32 dim 1 : vector<8x512xf32>, i32 -> vector<8x512xf32>
    %c23 = arith.constant 23 : index
    %c0_32 = arith.constant 0 : index
    %100 = vector.load %arg2[%c23, %c0_32] : memref<27x512xf32, #tpu.memory_space<vmem>>, vector<1x512xf32>
    %101 = vector.broadcast %100 : vector<1x512xf32> to vector<8x512xf32>
    %102 = arith.mulf %99, %101 : vector<8x512xf32>
    %c441_i32 = arith.constant 441 : i32
    %103 = tpu.dynamic_rotate %1 by %c441_i32 dim 1 : vector<8x512xf32>, i32 -> vector<8x512xf32>
    %c24 = arith.constant 24 : index
    %c0_33 = arith.constant 0 : index
    %104 = vector.load %arg2[%c24, %c0_33] : memref<27x512xf32, #tpu.memory_space<vmem>>, vector<1x512xf32>
    %105 = vector.broadcast %104 : vector<1x512xf32> to vector<8x512xf32>
    %106 = arith.mulf %103, %105 : vector<8x512xf32>
    %c440_i32 = arith.constant 440 : i32
    %107 = tpu.dynamic_rotate %1 by %c440_i32 dim 1 : vector<8x512xf32>, i32 -> vector<8x512xf32>
    %c25 = arith.constant 25 : index
    %c0_34 = arith.constant 0 : index
    %108 = vector.load %arg2[%c25, %c0_34] : memref<27x512xf32, #tpu.memory_space<vmem>>, vector<1x512xf32>
    %109 = vector.broadcast %108 : vector<1x512xf32> to vector<8x512xf32>
    %110 = arith.mulf %107, %109 : vector<8x512xf32>
    %c439_i32 = arith.constant 439 : i32
    %111 = tpu.dynamic_rotate %1 by %c439_i32 dim 1 : vector<8x512xf32>, i32 -> vector<8x512xf32>
    %c26 = arith.constant 26 : index
    %c0_35 = arith.constant 0 : index
    %112 = vector.load %arg2[%c26, %c0_35] : memref<27x512xf32, #tpu.memory_space<vmem>>, vector<1x512xf32>
    %113 = vector.broadcast %112 : vector<1x512xf32> to vector<8x512xf32>
    %114 = arith.mulf %111, %113 : vector<8x512xf32>
    %115 = tpu.concatenate %82, %86, %90, %94, %98, %102, %106, %110, %114 in 0 : vector<8x512xf32>, vector<8x512xf32>, vector<8x512xf32>, vector<8x512xf32>, vector<8x512xf32>, vector<8x512xf32>, vector<8x512xf32>, vector<8x512xf32>, vector<8x512xf32> -> vector<72x512xf32>
    %c2_36 = arith.constant 2 : index
    %c0_37 = arith.constant 0 : index
    %c0_38 = arith.constant 0 : index
    %116 = vector.load %arg3[%c2_36, %c0_37, %c0_38] : memref<3x8x72xf32, #tpu.memory_space<vmem>>, vector<1x8x72xf32>
    %117 = vector.shape_cast %116 : vector<1x8x72xf32> to vector<8x72xf32>
    %cst_39 = arith.constant dense<0.000000e+00> : vector<8x512xf32>
    %118 = tpu.matmul %117, %115, %cst_39 {dimension_numbers = #tpu.dot_dimension_numbers<[1], [0], [0], [1], [0, 0, 1, 1], [], []>} : vector<8x72xf32>, vector<72x512xf32>, vector<8x512xf32> -> vector<8x512xf32>
    %119 = arith.addf %78, %118 : vector<8x512xf32>
    %c0_40 = arith.constant 0 : index
    %c0_41 = arith.constant 0 : index
    %120 = vector.load %arg4[%c0_40, %c0_41] : memref<8x1xf32, #tpu.memory_space<vmem>>, vector<8x1xf32>
    %c0_42 = arith.constant 0 : index
    %c0_43 = arith.constant 0 : index
    %121 = vector.load %arg5[%c0_42, %c0_43] : memref<8x1xf32, #tpu.memory_space<vmem>>, vector<8x1xf32>
    %c0_44 = arith.constant 0 : index
    %c0_45 = arith.constant 0 : index
    %122 = vector.load %arg6[%c0_44, %c0_45] : memref<8x1xf32, #tpu.memory_space<vmem>>, vector<8x1xf32>
    %cst_46 = arith.constant dense<0.000000e+00> : vector<8xf32>
    %123 = vector.multi_reduction <add>, %119, %cst_46 [1] : vector<8x512xf32> to vector<8xf32>
    %124 = vector.shape_cast %123 : vector<8xf32> to vector<8x1xf32>
    %125 = arith.mulf %119, %119 : vector<8x512xf32>
    %cst_47 = arith.constant dense<0.000000e+00> : vector<8xf32>
    %126 = vector.multi_reduction <add>, %125, %cst_47 [1] : vector<8x512xf32> to vector<8xf32>
    %127 = vector.shape_cast %126 : vector<8xf32> to vector<8x1xf32>
    %cst_48 = arith.constant 5.120000e+02 : f32
    %128 = vector.broadcast %cst_48 : f32 to vector<8x1xf32>
    %129 = arith.mulf %128, %120 : vector<8x1xf32>
    %130 = arith.addf %124, %129 : vector<8x1xf32>
    %cst_49 = arith.constant 2.000000e+00 : f32
    %131 = vector.broadcast %cst_49 : f32 to vector<8x1xf32>
    %132 = arith.mulf %131, %120 : vector<8x1xf32>
    %133 = arith.mulf %132, %124 : vector<8x1xf32>
    %134 = arith.addf %127, %133 : vector<8x1xf32>
    %135 = arith.mulf %120, %120 : vector<8x1xf32>
    %cst_50 = arith.constant 5.120000e+02 : f32
    %136 = vector.broadcast %cst_50 : f32 to vector<8x1xf32>
    %137 = arith.mulf %136, %135 : vector<8x1xf32>
    %138 = arith.addf %134, %137 : vector<8x1xf32>
    %cst_51 = arith.constant dense<0.000000e+00> : vector<8xf32>
    %139 = vector.multi_reduction <add>, %130, %cst_51 [1] : vector<8x1xf32> to vector<8xf32>
    %140 = vector.shape_cast %139 : vector<8xf32> to vector<8x1xf32>
    %cst_52 = arith.constant 5.120000e+02 : f32
    %141 = vector.broadcast %cst_52 : f32 to vector<8x1xf32>
    %142 = arith.divf %140, %141 : vector<8x1xf32>
    %cst_53 = arith.constant dense<0.000000e+00> : vector<8xf32>
    %143 = vector.multi_reduction <add>, %138, %cst_53 [1] : vector<8x1xf32> to vector<8xf32>
    %144 = vector.shape_cast %143 : vector<8xf32> to vector<8x1xf32>
    %cst_54 = arith.constant 5.120000e+02 : f32
    %145 = vector.broadcast %cst_54 : f32 to vector<8x1xf32>
    %146 = arith.divf %144, %145 : vector<8x1xf32>
    %147 = arith.mulf %142, %142 : vector<8x1xf32>
    %148 = arith.subf %146, %147 : vector<8x1xf32>
    %cst_55 = arith.constant 0.000000e+00 : f32
    %149 = vector.broadcast %cst_55 : f32 to vector<8x1xf32>
    %150 = arith.maximumf %148, %149 : vector<8x1xf32>
    %cst_56 = arith.constant 9.99999974E-6 : f32
    %151 = vector.broadcast %cst_56 : f32 to vector<8x1xf32>
    %152 = arith.addf %150, %151 : vector<8x1xf32>
    %153 = math.rsqrt %152 : vector<8x1xf32>
    %154 = arith.mulf %121, %153 : vector<8x1xf32>
    %155 = arith.subf %120, %142 : vector<8x1xf32>
    %156 = arith.mulf %155, %154 : vector<8x1xf32>
    %157 = arith.addf %122, %156 : vector<8x1xf32>
    %158 = vector.broadcast %154 : vector<8x1xf32> to vector<8x512xf32>
    %159 = arith.mulf %119, %158 : vector<8x512xf32>
    %160 = vector.broadcast %157 : vector<8x1xf32> to vector<8x512xf32>
    %161 = arith.addf %159, %160 : vector<8x512xf32>
    %cst_57 = arith.constant 0.000000e+00 : f32
    %162 = vector.broadcast %cst_57 : f32 to vector<8x512xf32>
    %163 = arith.subf %162, %161 : vector<8x512xf32>
    %164 = math.exp %163 : vector<8x512xf32>
    %cst_58 = arith.constant 1.000000e+00 : f32
    %165 = vector.broadcast %cst_58 : f32 to vector<8x512xf32>
    %166 = arith.addf %165, %164 : vector<8x512xf32>
    %167 = tpu.reciprocal %166 {approx = true} : vector<8x512xf32> -> vector<8x512xf32>
    %168 = arith.mulf %161, %167 : vector<8x512xf32>
    %c73_i32_59 = arith.constant 73 : i32
    %169 = tpu.dynamic_rotate %168 by %c73_i32_59 dim 1 : vector<8x512xf32>, i32 -> vector<8x512xf32>
    %c0_60 = arith.constant 0 : index
    %c0_61 = arith.constant 0 : index
    %170 = vector.load %arg2[%c0_60, %c0_61] : memref<27x512xf32, #tpu.memory_space<vmem>>, vector<1x512xf32>
    %171 = vector.broadcast %170 : vector<1x512xf32> to vector<8x512xf32>
    %172 = arith.mulf %169, %171 : vector<8x512xf32>
    %c72_i32_62 = arith.constant 72 : i32
    %173 = tpu.dynamic_rotate %168 by %c72_i32_62 dim 1 : vector<8x512xf32>, i32 -> vector<8x512xf32>
    %c1_63 = arith.constant 1 : index
    %c0_64 = arith.constant 0 : index
    %174 = vector.load %arg2[%c1_63, %c0_64] : memref<27x512xf32, #tpu.memory_space<vmem>>, vector<1x512xf32>
    %175 = vector.broadcast %174 : vector<1x512xf32> to vector<8x512xf32>
    %176 = arith.mulf %173, %175 : vector<8x512xf32>
    %c71_i32_65 = arith.constant 71 : i32
    %177 = tpu.dynamic_rotate %168 by %c71_i32_65 dim 1 : vector<8x512xf32>, i32 -> vector<8x512xf32>
    %c2_66 = arith.constant 2 : index
    %c0_67 = arith.constant 0 : index
    %178 = vector.load %arg2[%c2_66, %c0_67] : memref<27x512xf32, #tpu.memory_space<vmem>>, vector<1x512xf32>
    %179 = vector.broadcast %178 : vector<1x512xf32> to vector<8x512xf32>
    %180 = arith.mulf %177, %179 : vector<8x512xf32>
    %c65_i32_68 = arith.constant 65 : i32
    %181 = tpu.dynamic_rotate %168 by %c65_i32_68 dim 1 : vector<8x512xf32>, i32 -> vector<8x512xf32>
    %c3_69 = arith.constant 3 : index
    %c0_70 = arith.constant 0 : index
    %182 = vector.load %arg2[%c3_69, %c0_70] : memref<27x512xf32, #tpu.memory_space<vmem>>, vector<1x512xf32>
    %183 = vector.broadcast %182 : vector<1x512xf32> to vector<8x512xf32>
    %184 = arith.mulf %181, %183 : vector<8x512xf32>
    %c64_i32_71 = arith.constant 64 : i32
    %185 = tpu.dynamic_rotate %168 by %c64_i32_71 dim 1 : vector<8x512xf32>, i32 -> vector<8x512xf32>
    %c4_72 = arith.constant 4 : index
    %c0_73 = arith.constant 0 : index
    %186 = vector.load %arg2[%c4_72, %c0_73] : memref<27x512xf32, #tpu.memory_space<vmem>>, vector<1x512xf32>
    %187 = vector.broadcast %186 : vector<1x512xf32> to vector<8x512xf32>
    %188 = arith.mulf %185, %187 : vector<8x512xf32>
    %c63_i32_74 = arith.constant 63 : i32
    %189 = tpu.dynamic_rotate %168 by %c63_i32_74 dim 1 : vector<8x512xf32>, i32 -> vector<8x512xf32>
    %c5_75 = arith.constant 5 : index
    %c0_76 = arith.constant 0 : index
    %190 = vector.load %arg2[%c5_75, %c0_76] : memref<27x512xf32, #tpu.memory_space<vmem>>, vector<1x512xf32>
    %191 = vector.broadcast %190 : vector<1x512xf32> to vector<8x512xf32>
    %192 = arith.mulf %189, %191 : vector<8x512xf32>
    %c57_i32_77 = arith.constant 57 : i32
    %193 = tpu.dynamic_rotate %168 by %c57_i32_77 dim 1 : vector<8x512xf32>, i32 -> vector<8x512xf32>
    %c6_78 = arith.constant 6 : index
    %c0_79 = arith.constant 0 : index
    %194 = vector.load %arg2[%c6_78, %c0_79] : memref<27x512xf32, #tpu.memory_space<vmem>>, vector<1x512xf32>
    %195 = vector.broadcast %194 : vector<1x512xf32> to vector<8x512xf32>
    %196 = arith.mulf %193, %195 : vector<8x512xf32>
    %c56_i32_80 = arith.constant 56 : i32
    %197 = tpu.dynamic_rotate %168 by %c56_i32_80 dim 1 : vector<8x512xf32>, i32 -> vector<8x512xf32>
    %c7_81 = arith.constant 7 : index
    %c0_82 = arith.constant 0 : index
    %198 = vector.load %arg2[%c7_81, %c0_82] : memref<27x512xf32, #tpu.memory_space<vmem>>, vector<1x512xf32>
    %199 = vector.broadcast %198 : vector<1x512xf32> to vector<8x512xf32>
    %200 = arith.mulf %197, %199 : vector<8x512xf32>
    %c55_i32_83 = arith.constant 55 : i32
    %201 = tpu.dynamic_rotate %168 by %c55_i32_83 dim 1 : vector<8x512xf32>, i32 -> vector<8x512xf32>
    %c8_84 = arith.constant 8 : index
    %c0_85 = arith.constant 0 : index
    %202 = vector.load %arg2[%c8_84, %c0_85] : memref<27x512xf32, #tpu.memory_space<vmem>>, vector<1x512xf32>
    %203 = vector.broadcast %202 : vector<1x512xf32> to vector<8x512xf32>
    %204 = arith.mulf %201, %203 : vector<8x512xf32>
    %205 = tpu.concatenate %172, %176, %180, %184, %188, %192, %196, %200, %204 in 0 : vector<8x512xf32>, vector<8x512xf32>, vector<8x512xf32>, vector<8x512xf32>, vector<8x512xf32>, vector<8x512xf32>, vector<8x512xf32>, vector<8x512xf32>, vector<8x512xf32> -> vector<72x512xf32>
    %c0_86 = arith.constant 0 : index
    %c0_87 = arith.constant 0 : index
    %c0_88 = arith.constant 0 : index
    %206 = vector.load %arg7[%c0_86, %c0_87, %c0_88] : memref<3x8x72xf32, #tpu.memory_space<vmem>>, vector<1x8x72xf32>
    %207 = vector.shape_cast %206 : vector<1x8x72xf32> to vector<8x72xf32>
    %cst_89 = arith.constant dense<0.000000e+00> : vector<8x512xf32>
    %208 = tpu.matmul %207, %205, %cst_89 {dimension_numbers = #tpu.dot_dimension_numbers<[1], [0], [0], [1], [0, 0, 1, 1], [], []>} : vector<8x72xf32>, vector<72x512xf32>, vector<8x512xf32> -> vector<8x512xf32>
    %c9_i32_90 = arith.constant 9 : i32
    %209 = tpu.dynamic_rotate %168 by %c9_i32_90 dim 1 : vector<8x512xf32>, i32 -> vector<8x512xf32>
    %c9_91 = arith.constant 9 : index
    %c0_92 = arith.constant 0 : index
    %210 = vector.load %arg2[%c9_91, %c0_92] : memref<27x512xf32, #tpu.memory_space<vmem>>, vector<1x512xf32>
    %211 = vector.broadcast %210 : vector<1x512xf32> to vector<8x512xf32>
    %212 = arith.mulf %209, %211 : vector<8x512xf32>
    %c8_i32_93 = arith.constant 8 : i32
    %213 = tpu.dynamic_rotate %168 by %c8_i32_93 dim 1 : vector<8x512xf32>, i32 -> vector<8x512xf32>
    %c10_94 = arith.constant 10 : index
    %c0_95 = arith.constant 0 : index
    %214 = vector.load %arg2[%c10_94, %c0_95] : memref<27x512xf32, #tpu.memory_space<vmem>>, vector<1x512xf32>
    %215 = vector.broadcast %214 : vector<1x512xf32> to vector<8x512xf32>
    %216 = arith.mulf %213, %215 : vector<8x512xf32>
    %c7_i32_96 = arith.constant 7 : i32
    %217 = tpu.dynamic_rotate %168 by %c7_i32_96 dim 1 : vector<8x512xf32>, i32 -> vector<8x512xf32>
    %c11_97 = arith.constant 11 : index
    %c0_98 = arith.constant 0 : index
    %218 = vector.load %arg2[%c11_97, %c0_98] : memref<27x512xf32, #tpu.memory_space<vmem>>, vector<1x512xf32>
    %219 = vector.broadcast %218 : vector<1x512xf32> to vector<8x512xf32>
    %220 = arith.mulf %217, %219 : vector<8x512xf32>
    %c1_i32_99 = arith.constant 1 : i32
    %221 = tpu.dynamic_rotate %168 by %c1_i32_99 dim 1 : vector<8x512xf32>, i32 -> vector<8x512xf32>
    %c12_100 = arith.constant 12 : index
    %c0_101 = arith.constant 0 : index
    %222 = vector.load %arg2[%c12_100, %c0_101] : memref<27x512xf32, #tpu.memory_space<vmem>>, vector<1x512xf32>
    %223 = vector.broadcast %222 : vector<1x512xf32> to vector<8x512xf32>
    %224 = arith.mulf %221, %223 : vector<8x512xf32>
    %c511_i32_102 = arith.constant 511 : i32
    %225 = tpu.dynamic_rotate %168 by %c511_i32_102 dim 1 : vector<8x512xf32>, i32 -> vector<8x512xf32>
    %c14_103 = arith.constant 14 : index
    %c0_104 = arith.constant 0 : index
    %226 = vector.load %arg2[%c14_103, %c0_104] : memref<27x512xf32, #tpu.memory_space<vmem>>, vector<1x512xf32>
    %227 = vector.broadcast %226 : vector<1x512xf32> to vector<8x512xf32>
    %228 = arith.mulf %225, %227 : vector<8x512xf32>
    %c505_i32_105 = arith.constant 505 : i32
    %229 = tpu.dynamic_rotate %168 by %c505_i32_105 dim 1 : vector<8x512xf32>, i32 -> vector<8x512xf32>
    %c15_106 = arith.constant 15 : index
    %c0_107 = arith.constant 0 : index
    %230 = vector.load %arg2[%c15_106, %c0_107] : memref<27x512xf32, #tpu.memory_space<vmem>>, vector<1x512xf32>
    %231 = vector.broadcast %230 : vector<1x512xf32> to vector<8x512xf32>
    %232 = arith.mulf %229, %231 : vector<8x512xf32>
    %c504_i32_108 = arith.constant 504 : i32
    %233 = tpu.dynamic_rotate %168 by %c504_i32_108 dim 1 : vector<8x512xf32>, i32 -> vector<8x512xf32>
    %c16_109 = arith.constant 16 : index
    %c0_110 = arith.constant 0 : index
    %234 = vector.load %arg2[%c16_109, %c0_110] : memref<27x512xf32, #tpu.memory_space<vmem>>, vector<1x512xf32>
    %235 = vector.broadcast %234 : vector<1x512xf32> to vector<8x512xf32>
    %236 = arith.mulf %233, %235 : vector<8x512xf32>
    %c503_i32_111 = arith.constant 503 : i32
    %237 = tpu.dynamic_rotate %168 by %c503_i32_111 dim 1 : vector<8x512xf32>, i32 -> vector<8x512xf32>
    %c17_112 = arith.constant 17 : index
    %c0_113 = arith.constant 0 : index
    %238 = vector.load %arg2[%c17_112, %c0_113] : memref<27x512xf32, #tpu.memory_space<vmem>>, vector<1x512xf32>
    %239 = vector.broadcast %238 : vector<1x512xf32> to vector<8x512xf32>
    %240 = arith.mulf %237, %239 : vector<8x512xf32>
    %241 = tpu.concatenate %212, %216, %220, %224, %168, %228, %232, %236, %240 in 0 : vector<8x512xf32>, vector<8x512xf32>, vector<8x512xf32>, vector<8x512xf32>, vector<8x512xf32>, vector<8x512xf32>, vector<8x512xf32>, vector<8x512xf32>, vector<8x512xf32> -> vector<72x512xf32>
    %c1_114 = arith.constant 1 : index
    %c0_115 = arith.constant 0 : index
    %c0_116 = arith.constant 0 : index
    %242 = vector.load %arg7[%c1_114, %c0_115, %c0_116] : memref<3x8x72xf32, #tpu.memory_space<vmem>>, vector<1x8x72xf32>
    %243 = vector.shape_cast %242 : vector<1x8x72xf32> to vector<8x72xf32>
    %cst_117 = arith.constant dense<0.000000e+00> : vector<8x512xf32>
    %244 = tpu.matmul %243, %241, %cst_117 {dimension_numbers = #tpu.dot_dimension_numbers<[1], [0], [0], [1], [0, 0, 1, 1], [], []>} : vector<8x72xf32>, vector<72x512xf32>, vector<8x512xf32> -> vector<8x512xf32>
    %245 = arith.addf %208, %244 : vector<8x512xf32>
    %c457_i32_118 = arith.constant 457 : i32
    %246 = tpu.dynamic_rotate %168 by %c457_i32_118 dim 1 : vector<8x512xf32>, i32 -> vector<8x512xf32>
    %c18_119 = arith.constant 18 : index
    %c0_120 = arith.constant 0 : index
    %247 = vector.load %arg2[%c18_119, %c0_120] : memref<27x512xf32, #tpu.memory_space<vmem>>, vector<1x512xf32>
    %248 = vector.broadcast %247 : vector<1x512xf32> to vector<8x512xf32>
    %249 = arith.mulf %246, %248 : vector<8x512xf32>
    %c456_i32_121 = arith.constant 456 : i32
    %250 = tpu.dynamic_rotate %168 by %c456_i32_121 dim 1 : vector<8x512xf32>, i32 -> vector<8x512xf32>
    %c19_122 = arith.constant 19 : index
    %c0_123 = arith.constant 0 : index
    %251 = vector.load %arg2[%c19_122, %c0_123] : memref<27x512xf32, #tpu.memory_space<vmem>>, vector<1x512xf32>
    %252 = vector.broadcast %251 : vector<1x512xf32> to vector<8x512xf32>
    %253 = arith.mulf %250, %252 : vector<8x512xf32>
    %c455_i32_124 = arith.constant 455 : i32
    %254 = tpu.dynamic_rotate %168 by %c455_i32_124 dim 1 : vector<8x512xf32>, i32 -> vector<8x512xf32>
    %c20_125 = arith.constant 20 : index
    %c0_126 = arith.constant 0 : index
    %255 = vector.load %arg2[%c20_125, %c0_126] : memref<27x512xf32, #tpu.memory_space<vmem>>, vector<1x512xf32>
    %256 = vector.broadcast %255 : vector<1x512xf32> to vector<8x512xf32>
    %257 = arith.mulf %254, %256 : vector<8x512xf32>
    %c449_i32_127 = arith.constant 449 : i32
    %258 = tpu.dynamic_rotate %168 by %c449_i32_127 dim 1 : vector<8x512xf32>, i32 -> vector<8x512xf32>
    %c21_128 = arith.constant 21 : index
    %c0_129 = arith.constant 0 : index
    %259 = vector.load %arg2[%c21_128, %c0_129] : memref<27x512xf32, #tpu.memory_space<vmem>>, vector<1x512xf32>
    %260 = vector.broadcast %259 : vector<1x512xf32> to vector<8x512xf32>
    %261 = arith.mulf %258, %260 : vector<8x512xf32>
    %c448_i32_130 = arith.constant 448 : i32
    %262 = tpu.dynamic_rotate %168 by %c448_i32_130 dim 1 : vector<8x512xf32>, i32 -> vector<8x512xf32>
    %c22_131 = arith.constant 22 : index
    %c0_132 = arith.constant 0 : index
    %263 = vector.load %arg2[%c22_131, %c0_132] : memref<27x512xf32, #tpu.memory_space<vmem>>, vector<1x512xf32>
    %264 = vector.broadcast %263 : vector<1x512xf32> to vector<8x512xf32>
    %265 = arith.mulf %262, %264 : vector<8x512xf32>
    %c447_i32_133 = arith.constant 447 : i32
    %266 = tpu.dynamic_rotate %168 by %c447_i32_133 dim 1 : vector<8x512xf32>, i32 -> vector<8x512xf32>
    %c23_134 = arith.constant 23 : index
    %c0_135 = arith.constant 0 : index
    %267 = vector.load %arg2[%c23_134, %c0_135] : memref<27x512xf32, #tpu.memory_space<vmem>>, vector<1x512xf32>
    %268 = vector.broadcast %267 : vector<1x512xf32> to vector<8x512xf32>
    %269 = arith.mulf %266, %268 : vector<8x512xf32>
    %c441_i32_136 = arith.constant 441 : i32
    %270 = tpu.dynamic_rotate %168 by %c441_i32_136 dim 1 : vector<8x512xf32>, i32 -> vector<8x512xf32>
    %c24_137 = arith.constant 24 : index
    %c0_138 = arith.constant 0 : index
    %271 = vector.load %arg2[%c24_137, %c0_138] : memref<27x512xf32, #tpu.memory_space<vmem>>, vector<1x512xf32>
    %272 = vector.broadcast %271 : vector<1x512xf32> to vector<8x512xf32>
    %273 = arith.mulf %270, %272 : vector<8x512xf32>
    %c440_i32_139 = arith.constant 440 : i32
    %274 = tpu.dynamic_rotate %168 by %c440_i32_139 dim 1 : vector<8x512xf32>, i32 -> vector<8x512xf32>
    %c25_140 = arith.constant 25 : index
    %c0_141 = arith.constant 0 : index
    %275 = vector.load %arg2[%c25_140, %c0_141] : memref<27x512xf32, #tpu.memory_space<vmem>>, vector<1x512xf32>
    %276 = vector.broadcast %275 : vector<1x512xf32> to vector<8x512xf32>
    %277 = arith.mulf %274, %276 : vector<8x512xf32>
    %c439_i32_142 = arith.constant 439 : i32
    %278 = tpu.dynamic_rotate %168 by %c439_i32_142 dim 1 : vector<8x512xf32>, i32 -> vector<8x512xf32>
    %c26_143 = arith.constant 26 : index
    %c0_144 = arith.constant 0 : index
    %279 = vector.load %arg2[%c26_143, %c0_144] : memref<27x512xf32, #tpu.memory_space<vmem>>, vector<1x512xf32>
    %280 = vector.broadcast %279 : vector<1x512xf32> to vector<8x512xf32>
    %281 = arith.mulf %278, %280 : vector<8x512xf32>
    %282 = tpu.concatenate %249, %253, %257, %261, %265, %269, %273, %277, %281 in 0 : vector<8x512xf32>, vector<8x512xf32>, vector<8x512xf32>, vector<8x512xf32>, vector<8x512xf32>, vector<8x512xf32>, vector<8x512xf32>, vector<8x512xf32>, vector<8x512xf32> -> vector<72x512xf32>
    %c2_145 = arith.constant 2 : index
    %c0_146 = arith.constant 0 : index
    %c0_147 = arith.constant 0 : index
    %283 = vector.load %arg7[%c2_145, %c0_146, %c0_147] : memref<3x8x72xf32, #tpu.memory_space<vmem>>, vector<1x8x72xf32>
    %284 = vector.shape_cast %283 : vector<1x8x72xf32> to vector<8x72xf32>
    %cst_148 = arith.constant dense<0.000000e+00> : vector<8x512xf32>
    %285 = tpu.matmul %284, %282, %cst_148 {dimension_numbers = #tpu.dot_dimension_numbers<[1], [0], [0], [1], [0, 0, 1, 1], [], []>} : vector<8x72xf32>, vector<72x512xf32>, vector<8x512xf32> -> vector<8x512xf32>
    %286 = arith.addf %245, %285 : vector<8x512xf32>
    %c0_149 = arith.constant 0 : index
    %c0_150 = arith.constant 0 : index
    %287 = vector.load %arg8[%c0_149, %c0_150] : memref<8x1xf32, #tpu.memory_space<vmem>>, vector<8x1xf32>
    %c0_151 = arith.constant 0 : index
    %c0_152 = arith.constant 0 : index
    %288 = vector.load %arg9[%c0_151, %c0_152] : memref<8x1xf32, #tpu.memory_space<vmem>>, vector<8x1xf32>
    %c0_153 = arith.constant 0 : index
    %c0_154 = arith.constant 0 : index
    %289 = vector.load %arg10[%c0_153, %c0_154] : memref<8x1xf32, #tpu.memory_space<vmem>>, vector<8x1xf32>
    %cst_155 = arith.constant dense<0.000000e+00> : vector<8xf32>
    %290 = vector.multi_reduction <add>, %286, %cst_155 [1] : vector<8x512xf32> to vector<8xf32>
    %291 = vector.shape_cast %290 : vector<8xf32> to vector<8x1xf32>
    %292 = arith.mulf %286, %286 : vector<8x512xf32>
    %cst_156 = arith.constant dense<0.000000e+00> : vector<8xf32>
    %293 = vector.multi_reduction <add>, %292, %cst_156 [1] : vector<8x512xf32> to vector<8xf32>
    %294 = vector.shape_cast %293 : vector<8xf32> to vector<8x1xf32>
    %cst_157 = arith.constant 5.120000e+02 : f32
    %295 = vector.broadcast %cst_157 : f32 to vector<8x1xf32>
    %296 = arith.mulf %295, %287 : vector<8x1xf32>
    %297 = arith.addf %291, %296 : vector<8x1xf32>
    %cst_158 = arith.constant 2.000000e+00 : f32
    %298 = vector.broadcast %cst_158 : f32 to vector<8x1xf32>
    %299 = arith.mulf %298, %287 : vector<8x1xf32>
    %300 = arith.mulf %299, %291 : vector<8x1xf32>
    %301 = arith.addf %294, %300 : vector<8x1xf32>
    %302 = arith.mulf %287, %287 : vector<8x1xf32>
    %cst_159 = arith.constant 5.120000e+02 : f32
    %303 = vector.broadcast %cst_159 : f32 to vector<8x1xf32>
    %304 = arith.mulf %303, %302 : vector<8x1xf32>
    %305 = arith.addf %301, %304 : vector<8x1xf32>
    %cst_160 = arith.constant dense<0.000000e+00> : vector<8xf32>
    %306 = vector.multi_reduction <add>, %297, %cst_160 [1] : vector<8x1xf32> to vector<8xf32>
    %307 = vector.shape_cast %306 : vector<8xf32> to vector<8x1xf32>
    %cst_161 = arith.constant 5.120000e+02 : f32
    %308 = vector.broadcast %cst_161 : f32 to vector<8x1xf32>
    %309 = arith.divf %307, %308 : vector<8x1xf32>
    %cst_162 = arith.constant dense<0.000000e+00> : vector<8xf32>
    %310 = vector.multi_reduction <add>, %305, %cst_162 [1] : vector<8x1xf32> to vector<8xf32>
    %311 = vector.shape_cast %310 : vector<8xf32> to vector<8x1xf32>
    %cst_163 = arith.constant 5.120000e+02 : f32
    %312 = vector.broadcast %cst_163 : f32 to vector<8x1xf32>
    %313 = arith.divf %311, %312 : vector<8x1xf32>
    %314 = arith.mulf %309, %309 : vector<8x1xf32>
    %315 = arith.subf %313, %314 : vector<8x1xf32>
    %cst_164 = arith.constant 0.000000e+00 : f32
    %316 = vector.broadcast %cst_164 : f32 to vector<8x1xf32>
    %317 = arith.maximumf %315, %316 : vector<8x1xf32>
    %cst_165 = arith.constant 9.99999974E-6 : f32
    %318 = vector.broadcast %cst_165 : f32 to vector<8x1xf32>
    %319 = arith.addf %317, %318 : vector<8x1xf32>
    %320 = math.rsqrt %319 : vector<8x1xf32>
    %321 = arith.mulf %288, %320 : vector<8x1xf32>
    %322 = arith.subf %287, %309 : vector<8x1xf32>
    %323 = arith.mulf %322, %321 : vector<8x1xf32>
    %324 = arith.addf %289, %323 : vector<8x1xf32>
    %325 = vector.broadcast %321 : vector<8x1xf32> to vector<8x512xf32>
    %326 = arith.mulf %286, %325 : vector<8x512xf32>
    %327 = vector.broadcast %324 : vector<8x1xf32> to vector<8x512xf32>
    %328 = arith.addf %326, %327 : vector<8x512xf32>
    %cst_166 = arith.constant 0.000000e+00 : f32
    %329 = vector.broadcast %cst_166 : f32 to vector<8x512xf32>
    %330 = arith.subf %329, %328 : vector<8x512xf32>
    %331 = math.exp %330 : vector<8x512xf32>
    %cst_167 = arith.constant 1.000000e+00 : f32
    %332 = vector.broadcast %cst_167 : f32 to vector<8x512xf32>
    %333 = arith.addf %332, %331 : vector<8x512xf32>
    %334 = tpu.reciprocal %333 {approx = true} : vector<8x512xf32> -> vector<8x512xf32>
    %335 = arith.mulf %328, %334 : vector<8x512xf32>
    %c0_168 = arith.constant 0 : index
    %c0_169 = arith.constant 0 : index
    %336 = vector.load %arg11[%c0_168, %c0_169] : memref<8x8xf32, #tpu.memory_space<vmem>>, vector<8x8xf32>
    %cst_170 = arith.constant dense<0.000000e+00> : vector<8x512xf32>
    %337 = tpu.matmul %336, %1, %cst_170 {dimension_numbers = #tpu.dot_dimension_numbers<[1], [0], [0], [1], [0, 0, 1, 1], [], []>} : vector<8x8xf32>, vector<8x512xf32>, vector<8x512xf32> -> vector<8x512xf32>
    %c0_171 = arith.constant 0 : index
    %c0_172 = arith.constant 0 : index
    %338 = vector.load %arg12[%c0_171, %c0_172] : memref<8x1xf32, #tpu.memory_space<vmem>>, vector<8x1xf32>
    %339 = vector.broadcast %338 : vector<8x1xf32> to vector<8x512xf32>
    %340 = arith.addf %337, %339 : vector<8x512xf32>
    %341 = arith.addf %335, %340 : vector<8x512xf32>
    %c0_173 = arith.constant 0 : index
    %c0_174 = arith.constant 0 : index
    %c0_175 = arith.constant 0 : index
    %342 = vector.load %arg13[%c0_173, %c0_174, %c0_175] : memref<1x8x512xf32, #tpu.memory_space<vmem>>, vector<1x8x512xf32>
    %343 = vector.shape_cast %342 : vector<1x8x512xf32> to vector<8x512xf32>
    %344 = vector.shape_cast %341 : vector<8x512xf32> to vector<1x8x512xf32>
    tpu.vector_store %arg13[%c0_173, %c0_174, %c0_175], %344 {strides = array<i32>} : memref<1x8x512xf32, #tpu.memory_space<vmem>>, vector<1x8x512xf32>,
    return
  }
  func.func @transform_0(%arg0: i32) -> (i32, i32, i32) {
    %c0_i32 = arith.constant 0 : i32
    %c0_i32_0 = arith.constant 0 : i32
    %c0_i32_1 = arith.constant 0 : i32
    return %arg0, %c0_i32, %c0_i32_0 : i32, i32, i32
  }
  func.func @transform_1(%arg0: i32) -> (i32, i32) {
    %c0_i32 = arith.constant 0 : i32
    %c0_i32_0 = arith.constant 0 : i32
    %c0_i32_1 = arith.constant 0 : i32
    return %c0_i32, %c0_i32_0 : i32, i32
  }
  func.func @transform_2(%arg0: i32) -> (i32, i32, i32) {
    %c0_i32 = arith.constant 0 : i32
    %c0_i32_0 = arith.constant 0 : i32
    %c0_i32_1 = arith.constant 0 : i32
    %c0_i32_2 = arith.constant 0 : i32
    return %c0_i32, %c0_i32_0, %c0_i32_1 : i32, i32, i32
  }
  func.func @transform_3(%arg0: i32) -> (i32, i32) {
    %c0_i32 = arith.constant 0 : i32
    %c0_i32_0 = arith.constant 0 : i32
    %c0_i32_1 = arith.constant 0 : i32
    return %c0_i32, %c0_i32_0 : i32, i32
  }
  func.func @transform_4(%arg0: i32) -> (i32, i32) {
    %c0_i32 = arith.constant 0 : i32
    %c0_i32_0 = arith.constant 0 : i32
    %c0_i32_1 = arith.constant 0 : i32
    return %c0_i32, %c0_i32_0 : i32, i32
  }
  func.func @transform_5(%arg0: i32) -> (i32, i32) {
    %c0_i32 = arith.constant 0 : i32
    %c0_i32_0 = arith.constant 0 : i32
    %c0_i32_1 = arith.constant 0 : i32
    return %c0_i32, %c0_i32_0 : i32, i32
  }
  func.func @transform_6(%arg0: i32) -> (i32, i32, i32) {
    %c0_i32 = arith.constant 0 : i32
    %c0_i32_0 = arith.constant 0 : i32
    %c0_i32_1 = arith.constant 0 : i32
    %c0_i32_2 = arith.constant 0 : i32
    return %c0_i32, %c0_i32_0, %c0_i32_1 : i32, i32, i32
  }
  func.func @transform_7(%arg0: i32) -> (i32, i32) {
    %c0_i32 = arith.constant 0 : i32
    %c0_i32_0 = arith.constant 0 : i32
    %c0_i32_1 = arith.constant 0 : i32
    return %c0_i32, %c0_i32_0 : i32, i32
  }
  func.func @transform_8(%arg0: i32) -> (i32, i32) {
    %c0_i32 = arith.constant 0 : i32
    %c0_i32_0 = arith.constant 0 : i32
    %c0_i32_1 = arith.constant 0 : i32
    return %c0_i32, %c0_i32_0 : i32, i32
  }
  func.func @transform_9(%arg0: i32) -> (i32, i32) {
    %c0_i32 = arith.constant 0 : i32
    %c0_i32_0 = arith.constant 0 : i32
    %c0_i32_1 = arith.constant 0 : i32
    return %c0_i32, %c0_i32_0 : i32, i32
  }
  func.func @transform_10(%arg0: i32) -> (i32, i32) {
    %c0_i32 = arith.constant 0 : i32
    %c0_i32_0 = arith.constant 0 : i32
    %c0_i32_1 = arith.constant 0 : i32
    return %c0_i32, %c0_i32_0 : i32, i32
  }
  func.func @transform_11(%arg0: i32) -> (i32, i32) {
    %c0_i32 = arith.constant 0 : i32
    %c0_i32_0 = arith.constant 0 : i32
    %c0_i32_1 = arith.constant 0 : i32
    return %c0_i32, %c0_i32_0 : i32, i32
  }
  func.func @transform_12(%arg0: i32) -> (i32, i32, i32) {
    %c0_i32 = arith.constant 0 : i32
    %c0_i32_0 = arith.constant 0 : i32
    %c0_i32_1 = arith.constant 0 : i32
    return %arg0, %c0_i32, %c0_i32_0 : i32, i32, i32
  }
}

</mosaic_0001>

<bundles_post_ra>
// kernel: tpu_custom_call.1
= control target key start
LH: loop header
LB: loop body
LE: loop exit
PB: predicated region body
PF: predicated region fallthrough
CT: control target
= control target key end

     0   :  { %s5285_s0 = inlined_call_operand.hbm [shape: f32[2,8,512], index: 0, kind: input, shape index: {}]   ;;  %s5286_s1 = inlined_call_operand.hbm [shape: f32[27,512], index: 1, kind: input, shape index: {}]   ;;  %s5287_s2 = inlined_call_operand.vmem [shape: f32[3,8,72], index: 2, kind: input, shape index: {}]   ;;  %s5288_s3 = inlined_call_operand.vmem [shape: f32[8,1], index: 3, kind: input, shape index: {}]   ;;  %s5289_s4 = inlined_call_operand.vmem [shape: f32[8,1], index: 4, kind: input, shape index: {}]   ;;  %s5290_s5 = inlined_call_operand.vmem [shape: f32[8,1], index: 5, kind: input, shape index: {}]   ;;  %s5291_s6 = inlined_call_operand.vmem [shape: f32[3,8,72], index: 6, kind: input, shape index: {}]   ;;  %s5292_s7 = inlined_call_operand.vmem [shape: f32[8,1], index: 7, kind: input, shape index: {}]   ;;  %s5293_s8 = inlined_call_operand.vmem [shape: f32[8,1], index: 8, kind: input, shape index: {}]   ;;  %s5294_s9 = inlined_call_operand.vmem [shape: f32[8,1], index: 9, kind: input, shape index: {}]   ;;  %s5295_s10 = inlined_call_operand.vmem [shape: f32[8,8], index: 10, kind: input, shape index: {}]   ;;  %s5296_s11 = inlined_call_operand.vmem [shape: f32[8,1], index: 11, kind: input, shape index: {}]   ;;  %s5297_s12 = inlined_call_operand.hbm [shape: f32[2,8,512], index: 12, kind: output, shape index: {}]  }
   0x1   :  { %5431 = sst [smem:[#allocation103_spill]] %s5296_s11 }
   0x2   :  { %5432 = sst [smem:[#allocation104_spill]] %s5297_s12 }
   0x3   :  { %17 = vsyncpa [#allocation3], 0 }
   0x4   :  { %19 = vsyncpa [#allocation3 + $0x1], 0 }
   0x5   :  { %20 = vsyncpa [#allocation6], 0 }
   0x6   :  { %21 = vsyncpa [#allocation4], 0 }
   0x7   :  { %23 = vsyncpa [#allocation4 + $0x1], 0  ;;  %s3570_s21 = smov 0   ;;  %s3572_s22 = smov 0  }
   0x8   :  { %s3574_s23 = smov 0   ;;  %s3576_s24 = smov 0  }
   0x9 LB: > { %5433 = sst [smem:[#allocation11_spill]] %s3467_s21  ;;  %s3591_s25 = sadd.s32 4294967295, %s3479_s24   ;;  %s3479_s24 = sphi %s3576_s24, %s5683_s24   ;;  %s3475_s23 = sphi %s3574_s23, %s5686_s23   ;;  %s3471_s22 = sphi %s3572_s22, %s5685_s22   ;;  %s3467_s21 = sphi %s3570_s21, %s5684_s21  }
   0xa   : > { %s2987_s26 = sadd.s32 4294967294, %s3479_s24   ;;  %p49_p0 = scmp.ne.s32.totalorder %s3471_s22, %s3467_s21 }
   0xb   : > { %p5302_p1 = scmp.eq.s32.totalorder %s3591_s25, 0  ;;  %p310_p3 = scmp.eq.s32.totalorder %s2987_s26, 1 }
   0xc   : > { %p2988_p5 = scmp.ge.s32.totalorder %s3479_s24, 1  ;;  %p317_p7 = scmp.lt.s32.totalorder %s3479_s24, 3 }
   0xd   : > { %p3600_p4 = por %p5302_p1, %p49_p0  ;;  %p3605_p6 = por %p310_p3, %p49_p0 }
   0xe   : > { %p3610_p8 = pnand %p2988_p5, %p317_p7  ;;  %s3481_s30 = smov [#allocation5]  }
   0xf   : > { %s5434_s27 = scalar_select %p3600_p4, 1, 0 }
  0x10   : > { %s5435_s28 = scalar_select %p3605_p6, 1, 0 }
  0x11   : > { %s5437_s29 = scalar_select %p3610_p8, 1, 0 }
  0x12   : > { %5436 = sst [smem:[#allocation12_spill]] %s5435_s28  ;;  %s329_s13 = sshll.u32 %s3481_s30, 4  ;;  %s3614_s13 = int_to_ptr.vmem [resolvable:$true] %s329_s13 }
  0x13   : > { %p3239_p9 = pneg %p3610_p8  ;;  %s3626_s15 = sadd.s32 1, %s3479_s24  }
  0x14   : > { %5439 = sst [smem:[#allocation13_spill]] %s3626_s15  ;;  %s36_s16 = sadd.s32 1, %s3475_s23 }
  0x15   : > { %p3621_p11 = pnand %p3239_p9, %p5302_p1  ;;  %s33_s17 = ssub.s32 %s3479_s24, %s3626_s15 }
  0x16   : > { %s3351_s20 = scalar_lea.hbm %s5286_s1, 2048 }
  0x17   : > { %p3352_p12 = scmp.ne.s32.totalorder %s5286_s1, %s3351_s20  ;;  %p3353_p13 = pneg %p3621_p11 }
  0x18   : > { %p3358_p5 = scmp.lt.u32.totalorder %s3351_s20, %s5286_s1 }
  0x19   : > { %p3354_p0 = pnand %p3353_p13, %p3352_p12 }
  0x1b   : > { %p3355_p3 = pneg %p3354_p0 }
  0x1d   : > { %p3360_p7 = pnand %p3358_p5, %p3355_p3 }
  0x1f   : > { %3363 = shalt.err (!%p3360_p7)
}
  0x20   : > { %s3364_s15 = scalar_lea.vmem %s3614_s13, 2048  ;;  %p3372_p2 = scmp.lt.s32.totalorder %s3614_s13, %s3614_s13 }
  0x21   : > { %p3365_p9 = scmp.ne.s32.totalorder %s3614_s13, %s3364_s15  ;;  %p3373_p6 = scmp.lt.s32.totalorder %s3364_s15, %s3364_s15 }
  0x23   : > { %p3367_p10 = pnand %p3365_p9, %p3353_p13  ;;  %p3374_p4 = por %p3373_p6, %p3372_p2 }
  0x25   : > { %p3368_p1 = pneg %p3367_p10 }
  0x27   : > { %p3375_p8 = pnand %p3374_p4, %p3368_p1 }
  0x29   : > { %3378 = shalt.err (!%p3375_p8)
}
  0x2a   : > { %s3482_s18 = smov 512   ;;  %s3483_s21 = smov 32  }
  0x2b   : > { %3242 = dma.hbm_to_vmem [thread:$0]  (!%p3621_p11), %s5286_s1, 2048, %s3614_s13, [#allocation6], %s3482_s18, %s3482_s18, %s3483_s21  }
  0x2c   : > { %p34_p2 = scmp.eq.s32.totalorder %s33_s17, 0  ;;  %p43_p1 = scmp.ne.s32.totalorder %s3475_s23, %s3471_s22 }
  0x2d   : > { %p44_p4 = scmp.eq.s32.totalorder %s3479_s24, 0  ;;  %p3252_p6 = scmp.lt.s32.totalorder %s3479_s24, 2 }
  0x2e   : > { %s3657_s15 = scalar_select %p34_p2, %s3475_s23, %s36_s16  }
  0x2f   : > { %p45_p8 = por %p44_p4, %p43_p1  ;;  %p5440_p10 = scmp.eq.s32.totalorder %s3591_s25, 1 }
  0x30   : > { %s373_s26 = sand.u32 1, %s3475_s23   ;;  %s3021_s30 = sshll.u32 %s3479_s24, 9 }
  0x31   : > { %p3661_p12 = por %p5440_p10, %p43_p1  ;;  %s2991_s12 = sshll.u32 %s373_s26, 5 }
  0x32   : > { %s3670_s28 = scalar_lea.hbm %s5285_s0, %s3021_s30  ;;  %s377_s13 = scalar_lea.vmem [#allocation2], %s2991_s12 }
  0x33   : > { %s385_s16 = sshll.u32 %s377_s13, 4  ;;  %p3672_p11 = pnand %p3252_p6, %p45_p8  ;;  %s3676_s16 = int_to_ptr.vmem [resolvable:$true] %s385_s16 }
  0x34   : > { %s374_s18 = scalar_lea.sflag [#allocation3], %s373_s26  ;;  %s3379_s21 = scalar_lea.hbm %s3670_s28, 512 }
  0x35   : > { %p3380_p13 = scmp.ne.s32.totalorder %s3670_s28, %s3379_s21  ;;  %p3381_p0 = pneg %p3672_p11 }
  0x36   : > { %s3384_s19 = scalar_lea.hbm %s5285_s0, 1024  ;;  %p3385_p7 = scmp.lt.u32.totalorder %s3670_s28, %s5285_s0 }
  0x37   : > { %p3382_p3 = pnand %p3381_p0, %p3380_p13  ;;  %p3386_p9 = scmp.lt.u32.totalorder %s3384_s19, %s3379_s21 }
  0x38   : > { %p3388_p1 = scmp.lt.u32.totalorder %s3379_s21, %s3670_s28 }
  0x39   : > { %p3383_p5 = pneg %p3382_p3  ;;  %p3387_p2 = por %p3386_p9, %p3385_p7 }
  0x3b   : > { %p3389_p4 = por %p3388_p1, %p3387_p2 }
  0x3d   : > { %p3390_p6 = pnand %p3389_p4, %p3383_p5 }
  0x3f   : > { %3393 = shalt.err (!%p3390_p6)
}
  0x40   : > { %s3394_s26 = scalar_lea.vmem %s3676_s16, 512  ;;  %s3484_s13 = smov [#allocation2]  }
  0x41   : > { %p3395_p8 = scmp.ne.s32.totalorder %s3676_s16, %s3394_s26  ;;  %s3399_s11 = sshll.u32 %s3484_s13, 4  ;;  %s3400_s11 = int_to_ptr.vmem [resolvable:$false] %s3399_s11 }
  0x42   : > { %s3401_s12 = scalar_lea.vmem %s3400_s11, 1024  ;;  %p3402_p3 = scmp.lt.s32.totalorder %s3676_s16, %s3400_s11 }
  0x43   : > { %p3397_p10 = pnand %p3395_p8, %p3381_p0  ;;  %p3403_p7 = scmp.lt.s32.totalorder %s3401_s12, %s3394_s26 }
  0x45   : > { %p3398_p13 = pneg %p3397_p10  ;;  %p3404_p9 = por %p3403_p7, %p3402_p3 }
  0x47   : > { %p3405_p2 = pnand %p3404_p9, %p3398_p13 }
  0x49   : > { %3408 = shalt.err (!%p3405_p2)
}
  0x4a   : > { %3246 = dma.hbm_to_vmem [thread:$0]  (!%p3672_p11), %s3670_s28, 512, %s3676_s16, %s374_s18  }
  0x4b   : > { %p5443_p5 = scmp.ne.s32.totalorder %s5437_s29, 0 }
  0x4d   : > { %394 = sbr.rel (%p5443_p5) target bundleno = 1765 (0x6e5), region = 68 }
  0x54   : > { %s3706_s21 = sand.u32 1, %s3471_s22   ;;  %p5444_p0 = scmp.ne.s32.totalorder %s5434_s27, 0 }
  0x55   : > { %s5306_s19 = sshll.u32 %s3706_s21, 5  ;;  %s397_s30 = scalar_lea.sflag [#allocation3], %s3706_s21 }
  0x56   : > { %s3712_s14 = scalar_lea.vmem [#allocation2], %s5306_s19 }
  0x57   : > { %3454 = dma.done.wait (%p5444_p0), %s397_s30, 512  }
  0x58   : > { %3456 = vsyncadd (%p5444_p0), %s397_s30, 4294966784  ;;  %p5445_p11 = scmp.eq.s32.totalorder %s3591_s25, 0 }
  0x5a   : > { %3458 = dma.done.wait (%p5445_p11), [#allocation6], 2048   ;;  %p5446_p1 = pmov %p5445_p11 }
  0x5b   : > { %v3723_v0 = vld [vmem:[%s3712_s14] sm:$0xff]  ;;  %s3485_s29 = smov 8   ;;  %s3486_s28 = smov 9   ;;  %v3730_v1 = vld [vmem:[%s3712_s14 + $0x8] sm:$0xff]  ;;  %v3737_v2 = vld [vmem:[%s3712_s14 + $0x18] sm:$0xff]  ;;  %v5317_v4 = vmov 0.0   ;;  %v457_v5 = vlaneseq }
  0x5c   : > { %3460 = vsyncadd (%p5446_p1), [#allocation6], 4294965248  ;;  %851 = vrot.lane.b32.xlu1 %v3723_v0, %s3485_s29  ;;  %811 = vrot.lane.b32.xlu0 %v3723_v0, %s3486_s28  ;;  %v3744_v3 = vld [vmem:[%s3712_s14 + $0x10] sm:$0xff]  ;;  %s3487_s27 = smov 7   ;;  %s3488_s16 = smov 1   ;;  %vm1133_vm10 = vcmask 588800  }
  0x5d   : > { %s3489_s17 = smov 127   ;;  %s3490_s18 = smov 121   ;;  %1201 = vmatprep.mubr.f32.mxu0 %v5317_v4  ;;  %1272 = vmatprep.mubr.f32.mxu1 %v5317_v4  ;;  %v467_v6 = vshrl.u32 %v457_v5, 7  ;;  %v3852_v7 = vand.u32 127, %v457_v5 }
  0x5e   : > { %s3491_s26 = smov 120   ;;  %s3492_s13 = smov 73   ;;  %v825_v9 = vld [vmem:[#allocation5 + $0x21] ss:$8 sm:$0xf] }
  0x5f   : > { %s5309_s11 = smov 72   ;;  %s5307_s12 = smov 119   ;;  %v3854_v8 = vsub.s32 1, %v467_v6  ;;  %v865_v10 = vld [vmem:[#allocation5 + $0x22] ss:$8 sm:$0xf] }
  0x60   : > { %853 = vrot.lane.b32.xlu1 %v3730_v1, %s3485_s29  ;;  %813 = vrot.lane.b32.xlu0 %v3730_v1, %s3486_s28  ;;  %s5417_s30 = smov 71   ;;  %s5311_s19 = smov 65   ;;  %v3856_v13 = vsub.s32 0, %v467_v6  ;;  %vm859_vm0 = vcmp.lt.s32.totalorder %v3852_v7, 8  ;;  %vm819_vm1 = vcmp.lt.s32.totalorder %v3852_v7, 9  ;;  %v3870_v18 = vsub.s32 2, %v467_v6 }
  0x61   : > { %5447 = vst [vmem:[#allocation14_spill] sm:$0xff] %v3854_v8  ;;  %v3865_v14 = vrot.slane %v825_v9, %v3854_v8  ;;  %v3868_v15 = vrot.slane %v865_v10, %v3854_v8  ;;  %v3872_v19 = vsub.s32 3, %v467_v6  ;;  %v905_v47 = vld [vmem:[#allocation5 + $0x23] ss:$8 sm:$0xf]  ;;  %vm899_vm2 = vcmp.lt.s32.totalorder %v3852_v7, 7 }
  0x62   : > { %v3879_v22 = vrot.slane %v825_v9, %v3856_v13  ;;  %v3888_v25 = vrot.slane %v865_v10, %v3856_v13  ;;  %v3898_v32 = vrot.slane %v825_v9, %v3870_v18  ;;  %v3910_v36 = vrot.slane %v865_v10, %v3870_v18  ;;  %v945_v49 = vld [vmem:[#allocation5 + $0x24] ss:$8 sm:$0xf] }
  0x63   : > { %5448 = vst [vmem:[#allocation15_spill] sm:$0xff] %v3865_v14  ;;  %5449 = vst [vmem:[#allocation16_spill] sm:$0xff] %v3868_v15  ;;  %v3895_v31 = vrot.slane %v825_v9, %v3872_v19  ;;  %v3907_v35 = vrot.slane %v865_v10, %v3872_v19  ;;  %v3930_v54 = vrot.slane %v905_v47, %v3854_v8  ;;  %vm939_vm3 = vcmp.lt.s32.totalorder %v3852_v7, 1 }
  0x64   : > { %857 = vrot.lane.b32.xlu1 %v3737_v2, %s3485_s29  ;;  %817 = vrot.lane.b32.xlu0 %v3737_v2, %s3486_s28  ;;  %5450 = vst [vmem:[#allocation17_spill] sm:$0xff] %v3879_v22  ;;  %5451 = vst [vmem:[#allocation18_spill] sm:$0xff] %v3888_v25  ;;  %v3938_v55 = vrot.slane %v945_v49, %v3854_v8  ;;  %v3947_v62 = vrot.slane %v945_v49, %v3856_v13  ;;  %vm979_vm4 = vcmp.lt.s32.totalorder %v3852_v7, 127 }
  0x65   : > { %5452 = vst [vmem:[#allocation19_spill] sm:$0xff] %v3895_v31  ;;  %5453 = vst [vmem:[#allocation20_spill] sm:$0xff] %v3898_v32  ;;  %v3950_v63 = vrot.slane %v905_v47, %v3856_v13  ;;  %vm1019_vm5 = vcmp.lt.s32.totalorder %v3852_v7, 121  ;;  %vm1059_vm6 = vcmp.lt.s32.totalorder %v3852_v7, 120  ;;  %vm1099_vm7 = vcmp.lt.s32.totalorder %v3852_v7, 119 }
  0x66   : > { %5454 = vst [vmem:[#allocation21_spill] sm:$0xff] %v3907_v35  ;;  %5455 = vst [vmem:[#allocation22_spill] sm:$0xff] %v3910_v36  ;;  %vm498_vm8 = vcmp.lt.s32.totalorder %v3852_v7, 72  ;;  %vm459_vm9 = vcmp.lt.s32.totalorder %v3852_v7, 73  ;;  %vm538_vm11 = vcmp.lt.s32.totalorder %v3852_v7, 71  ;;  %vm578_vm12 = vcmp.lt.s32.totalorder %v3852_v7, 65 }
  0x67   : > { %5456 = vst [vmem:[#allocation23_spill] sm:$0xff] %v3930_v54  ;;  %5457 = vst [vmem:[#allocation24_spill] sm:$0xff] %v3938_v55  ;;  %vm5398_vm13 = vcmp.lt.s32.totalorder %v3852_v7, 64  ;;  %vm5360_vm14 = vcmp.lt.s32.totalorder %v3852_v7, 63  ;;  %vm698_vm15 = vcmp.lt.s32.totalorder %v3852_v7, 57 }
  0x68   : > { %855 = vrot.lane.b32.xlu1 %v3744_v3, %s3485_s29  ;;  %815 = vrot.lane.b32.xlu0 %v3744_v3, %s3486_s28  ;;  %5458 = vst [vmem:[#allocation25_spill] sm:$0xff] %v3947_v62  ;;  %5459 = vst [vmem:[#allocation26_spill] sm:$0xff] %v3950_v63 }
  0x6c   : > { %893 = vrot.lane.b32.xlu1 %v3730_v1, %s3487_s27  ;;  %891 = vrot.lane.b32.xlu0 %v3723_v0, %s3487_s27 }
  0x70   : > { %933 = vrot.lane.b32.xlu1 %v3730_v1, %s3488_s16  ;;  %931 = vrot.lane.b32.xlu0 %v3723_v0, %s3488_s16 }
  0x74   : > { %937 = vrot.lane.b32.xlu1 %v3737_v2, %s3488_s16  ;;  %897 = vrot.lane.b32.xlu0 %v3737_v2, %s3487_s27 }
  0x78   : > { %935 = vrot.lane.b32.xlu1 %v3744_v3, %s3488_s16  ;;  %895 = vrot.lane.b32.xlu0 %v3744_v3, %s3487_s27 }
  0x7c   : > { %975 = vrot.lane.b32.xlu1 %v3744_v3, %s3489_s17  ;;  %973 = vrot.lane.b32.xlu0 %v3730_v1, %s3489_s17 }
  0x80   : > { %977 = vrot.lane.b32.xlu1 %v3737_v2, %s3489_s17  ;;  %971 = vrot.lane.b32.xlu0 %v3723_v0, %s3489_s17 }
  0x84   : > { %1015 = vrot.lane.b32.xlu1 %v3744_v3, %s3490_s18  ;;  %1013 = vrot.lane.b32.xlu0 %v3730_v1, %s3490_s18 }
  0x88   : > { %1055 = vrot.lane.b32.xlu1 %v3744_v3, %s3491_s26  ;;  %1053 = vrot.lane.b32.xlu0 %v3730_v1, %s3491_s26 }
  0x8c   : > { %1051 = vrot.lane.b32.xlu1 %v3723_v0, %s3491_s26  ;;  %1011 = vrot.lane.b32.xlu0 %v3723_v0, %s3490_s18 }
  0x90   : > { %1057 = vrot.lane.b32.xlu1 %v3737_v2, %s3491_s26  ;;  %1017 = vrot.lane.b32.xlu0 %v3737_v2, %s3490_s18 }
  0x94   : > { %451 = vrot.lane.b32.xlu1 %v3730_v1, %s3492_s13  ;;  %449 = vrot.lane.b32.xlu0 %v3723_v0, %s3492_s13 }
  0x98   : > { %492 = vrot.lane.b32.xlu1 %v3730_v1, %s5309_s11  ;;  %490 = vrot.lane.b32.xlu0 %v3723_v0, %s5309_s11 }
  0x9c   : > { %1095 = vrot.lane.b32.xlu1 %v3744_v3, %s5307_s12  ;;  %1093 = vrot.lane.b32.xlu0 %v3730_v1, %s5307_s12 }
  0xa0   : > { %496 = vrot.lane.b32.xlu1 %v3737_v2, %s5309_s11  ;;  %455 = vrot.lane.b32.xlu0 %v3737_v2, %s3492_s13 }
  0xa4   : > { %453 = vrot.lane.b32.xlu1 %v3744_v3, %s3492_s13  ;;  %1091 = vrot.lane.b32.xlu0 %v3723_v0, %s5307_s12 }
  0xa8   : > { %1097 = vrot.lane.b32.xlu1 %v3737_v2, %s5307_s12  ;;  %494 = vrot.lane.b32.xlu0 %v3744_v3, %s5309_s11  ;;  %s5415_s12 = smov 64   ;;  %s5313_s11 = smov 63  }
  0xac   : > { %532 = vrot.lane.b32.xlu1 %v3730_v1, %s5417_s30  ;;  %530 = vrot.lane.b32.xlu0 %v3723_v0, %s5417_s30 }
  0xb0   : > { %572 = vrot.lane.b32.xlu1 %v3730_v1, %s5311_s19  ;;  %570 = vrot.lane.b32.xlu0 %v3723_v0, %s5311_s19 }
  0xb4   : > { %576 = vrot.lane.b32.xlu1 %v3737_v2, %s5311_s19  ;;  %536 = vrot.lane.b32.xlu0 %v3737_v2, %s5417_s30 }
  0xb8   : > { %574 = vrot.lane.b32.xlu1 %v3744_v3, %s5311_s19  ;;  %534 = vrot.lane.b32.xlu0 %v3744_v3, %s5417_s30  ;;  %s5326_s19 = smov 57   ;;  %s3504_s30 = smov [#allocation7]  }
  0xbc   : > { %612 = vrot.lane.b32.xlu1 %v3730_v1, %s5415_s12  ;;  %610 = vrot.lane.b32.xlu0 %v3723_v0, %s5415_s12 }
  0xc0   : > { %652 = vrot.lane.b32.xlu1 %v3730_v1, %s5313_s11  ;;  %650 = vrot.lane.b32.xlu0 %v3723_v0, %s5313_s11 }
  0xc4   : > { %656 = vrot.lane.b32.xlu1 %v3737_v2, %s5313_s11  ;;  %616 = vrot.lane.b32.xlu0 %v3737_v2, %s5415_s12 }
  0xc8   : > { %654 = vrot.lane.b32.xlu1 %v3744_v3, %s5313_s11  ;;  %614 = vrot.lane.b32.xlu0 %v3744_v3, %s5415_s12  ;;  %s5315_s11 = smov 56   ;;  %s5573_s12 = smov 55  }
  0xcc   : > { %692 = vrot.lane.b32.xlu1 %v3730_v1, %s5326_s19  ;;  %690 = vrot.lane.b32.xlu0 %v3723_v0, %s5326_s19 }
  0xce   : > { %v852_v11 = vpop.permute.xlu1 %851  ;;  %v812_v12 = vpop.permute.xlu0 %811 }
  0xd0   : > { %732 = vrot.lane.b32.xlu1 %v3730_v1, %s5315_s11  ;;  %730 = vrot.lane.b32.xlu0 %v3723_v0, %s5315_s11 }
  0xd2   : > { %v854_v16 = vpop.permute.xlu1 %853  ;;  %v814_v17 = vpop.permute.xlu0 %813 }
  0xd3   : > { %v822_v20 = vsel %vm819_vm1, %v812_v12, %v814_v17  ;;  %v862_v21 = vsel %vm859_vm0, %v852_v11, %v854_v16 }
  0xd4   : > { %736 = vrot.lane.b32.xlu1 %v3737_v2, %s5315_s11  ;;  %696 = vrot.lane.b32.xlu0 %v3737_v2, %s5326_s19  ;;  %v848_v23 = vmul.f32 %v3865_v14, %v822_v20  ;;  %v888_v24 = vmul.f32 %v3868_v15, %v862_v21 }
  0xd6   : > { %v858_v26 = vpop.permute.xlu1 %857  ;;  %v818_v27 = vpop.permute.xlu0 %817  ;;  %v3023_v28 = vpack.c.bf16 %v888_v24, %v848_v23  ;;  %v3965_v23 = vrot.slane %v905_v47, %v3870_v18  ;;  %v3968_v24 = vrot.slane %v905_v47, %v3872_v19 }
  0xd7   : > { %v863_v29 = vsel %vm859_vm0, %v858_v26, %v852_v11  ;;  %v823_v30 = vsel %vm819_vm1, %v818_v27, %v812_v12  ;;  %v3957_v12 = vrot.slane %v945_v49, %v3870_v18 }
  0xd8   : > { %734 = vrot.lane.b32.xlu1 %v3744_v3, %s5315_s11  ;;  %694 = vrot.lane.b32.xlu0 %v3744_v3, %s5326_s19  ;;  %v847_v33 = vmul.f32 %v3879_v22, %v823_v30  ;;  %v887_v34 = vmul.f32 %v3888_v25, %v863_v29  ;;  %s5324_s11 = smov 55   ;;  %5462 = vst [vmem:[#allocation29_spill] sm:$0xff] %v3965_v23  ;;  %5463 = vst [vmem:[#allocation30_spill] sm:$0xff] %v3968_v24  ;;  %s3413_s19 = sshll.u32 %s3504_s30, 4  ;;  %s3414_s19 = int_to_ptr.vmem [resolvable:$false] %s3413_s19 }
  0xd9   : > { %3024 = vmatprep.subr.bf16.mxu0 %v3023_v28  ;;  %5460 = vst [vmem:[#allocation27_spill] sm:$0xff] %v3957_v12 }
  0xda   : > { %v856_v37 = vpop.permute.xlu1 %855  ;;  %v816_v38 = vpop.permute.xlu0 %815  ;;  %v3025_v39 = vpack.c.bf16 %v887_v34, %v847_v33 }
  0xdb   : > { %v861_v40 = vsel %vm859_vm0, %v854_v16, %v856_v37  ;;  %v821_v41 = vsel %vm819_vm1, %v814_v17, %v816_v38  ;;  %v820_v42 = vsel %vm819_vm1, %v816_v38, %v818_v27  ;;  %v860_v43 = vsel %vm859_vm0, %v856_v37, %v858_v26  ;;  %v985_v17 = vld [vmem:[#allocation5 + $0x26] ss:$8 sm:$0xf] }
  0xdc   : > { %772 = vrot.lane.b32.xlu1 %v3730_v1, %s5324_s11  ;;  %770 = vrot.lane.b32.xlu0 %v3723_v0, %s5324_s11  ;;  %v850_v44 = vmul.f32 %v3895_v31, %v820_v42  ;;  %v890_v45 = vmul.f32 %v3907_v35, %v860_v43  ;;  %v849_v46 = vmul.f32 %v3898_v32, %v821_v41 }
  0xdd   : > { %3026 = vmatpush1.bf16.msra.mxu0 %v3025_v39  ;;  %v889_v48 = vmul.f32 %v3910_v36, %v861_v40  ;;  %v3960_v16 = vrot.slane %v945_v49, %v3872_v19  ;;  %v3972_v29 = vrot.slane %v985_v17, %v3854_v8  ;;  %v3993_v49 = vrot.slane %v985_v17, %v3856_v13 }
  0xde   : > { %v894_v50 = vpop.permute.xlu1 %893  ;;  %v892_v51 = vpop.permute.xlu0 %891  ;;  %v3039_v52 = vpack.c.bf16 %v890_v45, %v850_v44 }
  0xdf   : > { %v3041_v53 = vpack.c.bf16 %v889_v48, %v849_v46  ;;  %v902_v56 = vsel %vm899_vm2, %v892_v51, %v894_v50  ;;  %5461 = vst [vmem:[#allocation28_spill] sm:$0xff] %v3960_v16  ;;  %5464 = vst [vmem:[#allocation31_spill] sm:$0xff] %v3972_v29  ;;  %v3990_v48 = vrot.slane %v985_v17, %v3870_v18 }
  0xe0   : > { %774 = vrot.lane.b32.xlu1 %v3744_v3, %s5324_s11  ;;  %776 = vrot.lane.b32.xlu0 %v3737_v2, %s5324_s11  ;;  %v928_v60 = vmul.f32 %v3930_v54, %v902_v56  ;;  %5466 = vst [vmem:[#allocation33_spill] sm:$0xff] %v3993_v49  ;;  %v1560_v54 = vld [vmem:[#allocation5 + $0x47] ss:$8 sm:$0xf]  ;;  %s3415_s11 = scalar_lea.vmem %s3414_s19, 1024 }
  0xe1   : > { %3040 = vmatprep.subr.bf16.mxu1 %v3039_v52  ;;  %5465 = vst [vmem:[#allocation32_spill] sm:$0xff] %v3990_v48 }
  0xe2   : > { %3042 = vmatpush1.bf16.msra.mxu1 %v3041_v53  ;;  %v934_v57 = vpop.permute.xlu1 %933  ;;  %v932_v58 = vpop.permute.xlu0 %931 }
  0xe3   : > { %v942_v59 = vsel %vm939_vm3, %v932_v58, %v934_v57 }
  0xe4   : > { %v968_v61 = vmul.f32 %v3938_v55, %v942_v59  ;;  %v1533_v55 = vld [vmem:[#allocation5 + $0x46] ss:$8 sm:$0xf] }
  0xe5   : > { %v4393_v15 = vrot.slane %v1533_v55, %v3856_v13 }
  0xe6   : > { %v938_v5 = vpop.permute.xlu1 %937  ;;  %v898_v6 = vpop.permute.xlu0 %897  ;;  %v3027_v9 = vpack.c.bf16 %v968_v61, %v928_v60 }
  0xe7   : > { %v943_v10 = vsel %vm939_vm3, %v938_v5, %v932_v58  ;;  %v903_v11 = vsel %vm899_vm2, %v898_v6, %v892_v51  ;;  %5517 = vst [vmem:[#allocation83_spill] sm:$0xff] %v4393_v15 }
  0xe8   : > { %v967_v20 = vmul.f32 %v3947_v62, %v943_v10  ;;  %v927_v21 = vmul.f32 %v3950_v63, %v903_v11  ;;  %3028 = vmatprep.subr.bf16.mxu0 %v3027_v9 }
  0xea   : > { %v936_v26 = vpop.permute.xlu1 %935  ;;  %v896_v27 = vpop.permute.xlu0 %895  ;;  %v3029_v28 = vpack.c.bf16 %v967_v20, %v927_v21 }
  0xeb   : > { %v940_v30 = vsel %vm939_vm3, %v936_v26, %v938_v5  ;;  %v941_v33 = vsel %vm939_vm3, %v934_v57, %v936_v26  ;;  %v900_v34 = vsel %vm899_vm2, %v896_v27, %v898_v6  ;;  %v901_v37 = vsel %vm899_vm2, %v894_v50, %v896_v27  ;;  %v1025_v5 = vld [vmem:[#allocation5 + $0x27] ss:$8 sm:$0xf]  ;;  %v1065_v6 = vld [vmem:[#allocation5 + $0x40] ss:$8 sm:$0xf] }
  0xec   : > { %v969_v38 = vmul.f32 %v3957_v12, %v941_v33  ;;  %v970_v39 = vmul.f32 %v3960_v16, %v940_v30  ;;  %v929_v40 = vmul.f32 %v3965_v23, %v901_v37  ;;  %v930_v41 = vmul.f32 %v3968_v24, %v900_v34  ;;  %3030 = vmatpush1.bf16.msra.mxu0 %v3029_v28 }
  0xed   : > { %v3996_v50 = vrot.slane %v985_v17, %v3872_v19  ;;  %v4013_v20 = vrot.slane %v1025_v5, %v3854_v8  ;;  %v4017_v21 = vrot.slane %v1065_v6, %v3854_v8  ;;  %v4026_v30 = vrot.slane %v1065_v6, %v3856_v13 }
  0xee   : > { %v976_v42 = vpop.permute.xlu1 %975  ;;  %v974_v43 = vpop.permute.xlu0 %973  ;;  %v3043_v44 = vpack.c.bf16 %v970_v39, %v930_v41  ;;  %v3045_v45 = vpack.c.bf16 %v969_v38, %v929_v40  ;;  %v4029_v33 = vrot.slane %v1025_v5, %v3856_v13  ;;  %v4036_v41 = vrot.slane %v1065_v6, %v3870_v18 }
  0xef   : > { %v981_v46 = vsel %vm979_vm4, %v974_v43, %v976_v42  ;;  %5467 = vst [vmem:[#allocation34_spill] sm:$0xff] %v3996_v50  ;;  %5468 = vst [vmem:[#allocation35_spill] sm:$0xff] %v4013_v20 }
  0xf0   : > { %v1008_v47 = vmul.f32 %v3972_v29, %v981_v46  ;;  %3044 = vmatprep.subr.bf16.mxu1 %v3043_v44  ;;  %5469 = vst [vmem:[#allocation36_spill] sm:$0xff] %v4017_v21  ;;  %5470 = vst [vmem:[#allocation37_spill] sm:$0xff] %v4026_v30  ;;  %v4047_v46 = vrot.slane %v1025_v5, %v3872_v19 }
  0xf1   : > { %3046 = vmatpush1.bf16.msra.mxu1 %v3045_v45  ;;  %5471 = vst [vmem:[#allocation38_spill] sm:$0xff] %v4029_v33  ;;  %5472 = vst [vmem:[#allocation39_spill] sm:$0xff] %v4036_v41  ;;  %v4044_v45 = vrot.slane %v1025_v5, %v3870_v18 }
  0xf2   : > { %v978_v51 = vpop.permute.xlu1 %977  ;;  %v972_v52 = vpop.permute.xlu0 %971  ;;  %v3031_v53 = vpack.c.bf16 %v1008_v47, %v3730_v1  ;;  %5475 = vst [vmem:[#allocation42_spill] sm:$0xff] %v4047_v46 }
  0xf3   : > { %v980_v56 = vsel %vm979_vm4, %v976_v42, %v978_v51  ;;  %v982_v57 = vsel %vm979_vm4, %v972_v52, %v974_v43  ;;  %v983_v58 = vsel %vm979_vm4, %v978_v51, %v972_v52  ;;  %v4039_v42 = vrot.slane %v1065_v6, %v3872_v19  ;;  %5474 = vst [vmem:[#allocation41_spill] sm:$0xff] %v4044_v45 }
  0xf4   : > { %v1009_v59 = vmul.f32 %v3990_v48, %v980_v56  ;;  %v1007_v60 = vmul.f32 %v3993_v49, %v982_v57  ;;  %v1010_v61 = vmul.f32 %v3996_v50, %v983_v58  ;;  %3032 = vmatprep.subr.bf16.mxu0 %v3031_v53  ;;  %v1452_v50 = vld [vmem:[#allocation5 + $0x43] ss:$8 sm:$0xf]  ;;  %v1506_v49 = vld [vmem:[#allocation5 + $0x45] ss:$8 sm:$0xf] }
  0xf5   : > { %5473 = vst [vmem:[#allocation40_spill] sm:$0xff] %v4039_v42  ;;  %v4332_v16 = vrot.slane %v1452_v50, %v3872_v19  ;;  %v4349_v12 = vrot.slane %v1452_v50, %v3854_v8  ;;  %v4352_v62 = vrot.slane %v1452_v50, %v3870_v18  ;;  %v4358_v63 = vrot.slane %v1506_v49, %v3856_v13 }
  0xf6   : > { %v1016_v9 = vpop.permute.xlu1 %1015  ;;  %v1014_v1 = vpop.permute.xlu0 %1013  ;;  %v3033_v10 = vpack.c.bf16 %v1007_v60, %v3723_v0  ;;  %v3047_v11 = vpack.c.bf16 %v1010_v61, %v3737_v2  ;;  %v3049_v17 = vpack.c.bf16 %v1009_v59, %v3744_v3  ;;  %v4375_v31 = vrot.slane %v1506_v49, %v3872_v19 }
  0xf7   : > { %v1021_v26 = vsel %vm1019_vm5, %v1014_v1, %v1016_v9  ;;  %5513 = vst [vmem:[#allocation79_spill] sm:$0xff] %v4352_v62  ;;  %v4381_v25 = vrot.slane %v1506_v49, %v3854_v8 }
  0xf8   : > { %3034 = vmatpush1.bf16.msra.mxu0 %v3033_v10  ;;  %3048 = vmatprep.subr.bf16.mxu1 %v3047_v11  ;;  %v1048_v3 = vmul.f32 %v4013_v20, %v1021_v26 }
  0xf9   : > { %3050 = vmatpush1.bf16.msra.mxu1 %v3049_v17  ;;  %v1105_v17 = vld [vmem:[#allocation5 + $0x41] ss:$8 sm:$0xf] }
  0xfa   : > { %v1056_v27 = vpop.permute.xlu1 %1055  ;;  %v1054_v0 = vpop.permute.xlu0 %1053  ;;  %v4124_v4 = vrot.slane %v1105_v17, %v3872_v19 }
  0xfb   : > { %v1061_v2 = vsel %vm1059_vm6, %v1054_v0, %v1056_v27 }
  0xfc   : > { %v1088_v28 = vmul.f32 %v4017_v21, %v1061_v2  ;;  %5486 = vst [vmem:[#allocation53_spill] sm:$0xff] %v4124_v4 }
  0xfe   : > { %v1052_v34 = vpop.permute.xlu1 %1051  ;;  %v1012_v37 = vpop.permute.xlu0 %1011  ;;  %v3035_v38 = vpack.c.bf16 %v1088_v28, %v1048_v3  ;;  %v504_v3 = vld [vmem:[#allocation5 + $0x1] ss:$8 sm:$0xf] }
  0xff   : > { %v1062_v39 = vsel %vm1059_vm6, %v1052_v34, %v1054_v0  ;;  %v1022_v40 = vsel %vm1019_vm5, %v1012_v37, %v1014_v1 }
 0x100   : > { %v1087_v43 = vmul.f32 %v4026_v30, %v1062_v39  ;;  %v1047_v44 = vmul.f32 %v4029_v33, %v1022_v40  ;;  %3036 = vmatprep.subr.bf16.mxu0 %v3035_v38  ;;  %v4071_v38 = vrot.slane %v504_v3, %v3854_v8  ;;  %v4074_v39 = vrot.slane %v504_v3, %v3856_v13 }
 0x102   : > { %v1058_v47 = vpop.permute.xlu1 %1057  ;;  %v1018_v51 = vpop.permute.xlu0 %1017  ;;  %v3037_v52 = vpack.c.bf16 %v1087_v43, %v1047_v44  ;;  %5477 = vst [vmem:[#allocation44_spill] sm:$0xff] %v4071_v38  ;;  %5478 = vst [vmem:[#allocation45_spill] sm:$0xff] %v4074_v39 }
 0x103   : > { %v1060_v53 = vsel %vm1059_vm6, %v1056_v27, %v1058_v47  ;;  %v1063_v56 = vsel %vm1059_vm6, %v1058_v47, %v1052_v34  ;;  %v1020_v57 = vsel %vm1019_vm5, %v1016_v9, %v1018_v51  ;;  %v1023_v58 = vsel %vm1019_vm5, %v1018_v51, %v1012_v37  ;;  %v464_v37 = vld [vmem:[#allocation5] ss:$8 sm:$0xf] }
 0x104   : > { %v1089_v59 = vmul.f32 %v4036_v41, %v1060_v53  ;;  %v1090_v60 = vmul.f32 %v4039_v42, %v1063_v56  ;;  %v1049_v61 = vmul.f32 %v4044_v45, %v1020_v57  ;;  %v1050_v5 = vmul.f32 %v4047_v46, %v1023_v58  ;;  %3038 = vmatpush1.bf16.msra.mxu0 %v3037_v52  ;;  %v2998_v42 = vld [vmem:[%s5287_s2 + $0x8] sm:$0xff] }
 0x105   : > { %v4063_v27 = vrot.slane %v1105_v17, %v3854_v8  ;;  %v4077_v43 = vrot.slane %v464_v37, %v3856_v13  ;;  %v4092_v53 = vrot.slane %v464_v37, %v3854_v8  ;;  %v4099_v57 = vrot.slane %v1105_v17, %v3856_v13 }
 0x106   : > { %v452_v6 = vpop.permute.xlu1 %451  ;;  %v450_v1 = vpop.permute.xlu0 %449  ;;  %v3051_v10 = vpack.c.bf16 %v1090_v60, %v1050_v5  ;;  %v3053_v11 = vpack.c.bf16 %v1089_v59, %v1049_v61 }
 0x107   : > { %5476 = vst [vmem:[#allocation43_spill] sm:$0xff] %v4063_v27  ;;  %5479 = vst [vmem:[#allocation46_spill] sm:$0xff] %v4077_v43  ;;  %v4096_v56 = vsel %vm459_vm9, %v450_v1, %v452_v6 }
 0x108   : > { %3052 = vmatprep.subr.bf16.mxu1 %v3051_v10  ;;  %5480 = vst [vmem:[#allocation47_spill] sm:$0xff] %v4092_v53  ;;  %5481 = vst [vmem:[#allocation48_spill] sm:$0xff] %v4099_v57  ;;  %v4108_v10 = vrot.slane %v464_v37, %v3870_v18 }
 0x109   : > { %3054 = vmatpush1.bf16.msra.mxu1 %v3053_v11 }
 0x10a   : > { %v493_v9 = vpop.permute.xlu1 %492  ;;  %v491_v26 = vpop.permute.xlu0 %490  ;;  %5482 = vst [vmem:[#allocation49_spill] sm:$0xff] %v4108_v10 }
 0x10b   : > { %v4081_v47 = vsel %vm498_vm8, %v491_v26, %v493_v9 }
 0x10c   : > { %v527_v58 = vmul.f32 %v4071_v38, %v4081_v47 }
 0x10e   : > { %v1096_v0 = vpop.permute.xlu1 %1095  ;;  %v1094_v2 = vpop.permute.xlu0 %1093 }
 0x10f   : > { %v1101_v28 = vsel %vm1099_vm7, %v1094_v2, %v1096_v0 }
 0x110   : > { %v1128_v34 = vmul.f32 %v4063_v27, %v1101_v28  ;;  %v4118_v28 = vrot.slane %v504_v3, %v3870_v18 }
 0x112   : > { %v497_v40 = vpop.permute.xlu1 %496  ;;  %1153 = vmatprep.subr.mxu0 %v1128_v34  ;;  %v456_v44 = vpop.permute.xlu0 %455  ;;  %5484 = vst [vmem:[#allocation51_spill] sm:$0xff] %v4118_v28  ;;  %v4121_v34 = vrot.slane %v504_v3, %v3872_v19 }
 0x113   : > { %v4085_v51 = vsel %vm498_vm8, %v497_v40, %v491_v26  ;;  %v4089_v52 = vsel %vm459_vm9, %v456_v44, %v450_v1  ;;  %v4111_v1 = vrot.slane %v464_v37, %v3872_v19  ;;  %v487_v26 = vmul.f32 %v4092_v53, %v4096_v56 }
 0x114   : > { %v526_v59 = vmul.f32 %v4074_v39, %v4085_v51  ;;  %v486_v60 = vmul.f32 %v4077_v43, %v4089_v52  ;;  %5485 = vst [vmem:[#allocation52_spill] sm:$0xff] %v4121_v34  ;;  %v4136_v43 = vrot.slane %v1105_v17, %v3870_v18 }
 0x115   : > { %5483 = vst [vmem:[#allocation50_spill] sm:$0xff] %v4111_v1  ;;  %v3055_v38 = vpack.c.bf16 %v527_v58, %v487_v26 }
 0x116   : > { %v454_v61 = vpop.permute.xlu1 %453  ;;  %v1092_v5 = vpop.permute.xlu0 %1091  ;;  %5487 = vst [vmem:[#allocation54_spill] sm:$0xff] %v4136_v43  ;;  %v3057_v27 = vpack.c.bf16 %v526_v59, %v486_v60 }
 0x117   : > { %v1102_v11 = vsel %vm1099_vm7, %v1092_v5, %v1094_v2  ;;  %v4128_v39 = vsel %vm459_vm9, %v454_v61, %v456_v44  ;;  %v4132_v37 = vsel %vm459_vm9, %v452_v6, %v454_v61  ;;  %v544_v61 = vld [vmem:[#allocation5 + $0x2] ss:$8 sm:$0xf] }
 0x118   : > { %v1127_v2 = vmul.f32 %v4099_v57, %v1102_v11  ;;  %v488_v58 = vmul.f32 %v4108_v10, %v4132_v37  ;;  %v489_v60 = vmul.f32 %v4111_v1, %v4128_v39 }
 0x11a   : > { %v1098_v53 = vpop.permute.xlu1 %1097  ;;  %v495_v3 = vpop.permute.xlu0 %494  ;;  %1154 = vmatpush1.msra.mxu0 %v1127_v2 }
 0x11b   : > { %v1100_v44 = vsel %vm1099_vm7, %v1096_v0, %v1098_v53  ;;  %v1103_v6 = vsel %vm1099_vm7, %v1098_v53, %v1092_v5  ;;  %v4147_v17 = vsel %vm498_vm8, %v495_v3, %v497_v40  ;;  %v4151_v59 = vsel %vm498_vm8, %v493_v9, %v495_v3  ;;  %3056 = vmatprep.subr.bf16.mxu0 %v3055_v38  ;;  %v584_v5 = vld [vmem:[#allocation5 + $0x3] ss:$8 sm:$0xf] }
 0x11c   : > { %v528_v0 = vmul.f32 %v4118_v28, %v4151_v59  ;;  %v529_v53 = vmul.f32 %v4121_v34, %v4147_v17  ;;  %2999 = vmatmul.mubr.msk.f32.vlgmr.msra.gmra.mrb[0].mxu0 %vm1133_vm10, %v2998_v42  ;;  %v1130_v40 = vmul.f32 %v4124_v4, %v1103_v6  ;;  %v1129_v9 = vmul.f32 %v4136_v43, %v1100_v44 }
 0x11d   : > { %3058 = vmatpush1.bf16.msra.mxu0 %v3057_v27  ;;  %v5488_v28 = vmov 0.0   ;;  %v4167_v38 = vrot.slane %v544_v61, %v3854_v8  ;;  %v4171_v6 = vrot.slane %v584_v5, %v3854_v8  ;;  %v4206_v10 = vrot.slane %v584_v5, %v3870_v18 }
 0x11e   : > { %v3073_v11 = vpack.c.bf16 %v528_v0, %v488_v58  ;;  %v533_v26 = vpop.permute.xlu1 %532  ;;  %v531_v2 = vpop.permute.xlu0 %530  ;;  %v3071_v3 = vpack.c.bf16 %v529_v53, %v489_v60  ;;  %1346 = vmatprep.mubr.f32.mxu0 %v5488_v28  ;;  %1224 = vmatprep.subr.mxu1 %v1130_v40  ;;  %v4188_v40 = vrot.slane %v584_v5, %v3856_v13 }
 0x11f   : > { %5489 = vst [vmem:[#allocation55_spill] sm:$0xff] %v4167_v38  ;;  %1225 = vmatpush1.msra.mxu1 %v1129_v9  ;;  %5490 = vst [vmem:[#allocation56_spill] sm:$0xff] %v4171_v6  ;;  %v4175_v27 = vsel %vm538_vm11, %v531_v2, %v533_v26 }
 0x120   : > { %3072 = vmatprep.subr.bf16.mxu1 %v3071_v3  ;;  %3000 = vmatmul.mubr.msk.f32.vlgmr.msra.gmra.mrb[0].mxu1 %vm1133_vm10, %v2998_v42  ;;  %v567_v0 = vmul.f32 %v4167_v38, %v4175_v27  ;;  %5491 = vst [vmem:[#allocation57_spill] sm:$0xff] %v4188_v40  ;;  %v4191_v42 = vrot.slane %v544_v61, %v3856_v13  ;;  %5493 = vst [vmem:[#allocation59_spill] sm:$0xff] %v4206_v10 }
 0x121   : > { %3074 = vmatpush1.bf16.msra.mxu1 %v3073_v11  ;;  %1417 = vmatprep.mubr.f32.mxu1 %v5488_v28 }
 0x122   : > { %v573_v44 = vpop.permute.xlu1 %572  ;;  %v571_v58 = vpop.permute.xlu0 %570  ;;  %5492 = vst [vmem:[#allocation58_spill] sm:$0xff] %v4191_v42 }
 0x123   : > { %v4181_v60 = vsel %vm578_vm12, %v571_v58, %v573_v44 }
 0x124   : > { %v607_v53 = vmul.f32 %v4171_v6, %v4181_v60 }
 0x126   : > { %v577_v9 = vpop.permute.xlu1 %576  ;;  %v537_v11 = vpop.permute.xlu0 %536  ;;  %v3059_v3 = vpack.c.bf16 %v607_v53, %v567_v0  ;;  %v4209_v0 = vrot.slane %v584_v5, %v3872_v19  ;;  %v4215_v53 = vrot.slane %v544_v61, %v3872_v19 }
 0x127   : > { %v4195_v4 = vsel %vm578_vm12, %v577_v9, %v571_v58  ;;  %v4199_v43 = vsel %vm538_vm11, %v537_v11, %v531_v2  ;;  %v4212_v58 = vrot.slane %v544_v61, %v3870_v18 }
 0x128   : > { %v606_v6 = vmul.f32 %v4188_v40, %v4195_v4  ;;  %v566_v38 = vmul.f32 %v4191_v42, %v4199_v43  ;;  %3060 = vmatprep.subr.bf16.mxu0 %v3059_v3  ;;  %5494 = vst [vmem:[#allocation60_spill] sm:$0xff] %v4209_v0  ;;  %5496 = vst [vmem:[#allocation62_spill] sm:$0xff] %v4215_v53 }
 0x129   : > { %5495 = vst [vmem:[#allocation61_spill] sm:$0xff] %v4212_v58 }
 0x12a   : > { %v3061_v2 = vpack.c.bf16 %v606_v6, %v566_v38  ;;  %v575_v34 = vpop.permute.xlu1 %574  ;;  %v535_v1 = vpop.permute.xlu0 %534 }
 0x12b   : > { %v4219_v40 = vsel %vm578_vm12, %v575_v34, %v577_v9  ;;  %v4223_v3 = vsel %vm578_vm12, %v573_v44, %v575_v34  ;;  %v4227_v5 = vsel %vm538_vm11, %v535_v1, %v537_v11  ;;  %v4231_v42 = vsel %vm538_vm11, %v533_v26, %v535_v1  ;;  %v624_v44 = vld [vmem:[#allocation5 + $0x4] ss:$8 sm:$0xf]  ;;  %v664_v9 = vld [vmem:[#allocation5 + $0x5] ss:$8 sm:$0xf] }
 0x12c   : > { %v608_v61 = vmul.f32 %v4206_v10, %v4223_v3  ;;  %v609_v38 = vmul.f32 %v4209_v0, %v4219_v40  ;;  %3062 = vmatpush1.bf16.msra.mxu0 %v3061_v2  ;;  %v568_v6 = vmul.f32 %v4212_v58, %v4231_v42  ;;  %v569_v34 = vmul.f32 %v4215_v53, %v4227_v5 }
 0x12d   : > { %v4243_v10 = vrot.slane %v624_v44, %v3854_v8  ;;  %v4247_v2 = vrot.slane %v664_v9, %v3854_v8  ;;  %v4265_v41 = vrot.slane %v624_v44, %v3856_v13  ;;  %v4280_v33 = vrot.slane %v664_v9, %v3870_v18 }
 0x12e   : > { %v613_v11 = vpop.permute.xlu1 %612  ;;  %v611_v1 = vpop.permute.xlu0 %610  ;;  %v3077_v26 = vpack.c.bf16 %v608_v61, %v568_v6  ;;  %v3075_v57 = vpack.c.bf16 %v609_v38, %v569_v34  ;;  %v4262_v34 = vrot.slane %v664_v9, %v3856_v13 }
 0x12f   : > { %5497 = vst [vmem:[#allocation63_spill] sm:$0xff] %v4243_v10  ;;  %5498 = vst [vmem:[#allocation64_spill] sm:$0xff] %v4247_v2  ;;  %v4251_v0 = vsel %vm5398_vm13, %v611_v1, %v613_v11 }
 0x130   : > { %5499 = vst [vmem:[#allocation65_spill] sm:$0xff] %v4251_v0  ;;  %3076 = vmatprep.subr.bf16.mxu1 %v3075_v57  ;;  %v647_v38 = vmul.f32 %v4243_v10, %v4251_v0  ;;  %5501 = vst [vmem:[#allocation67_spill] sm:$0xff] %v4262_v34  ;;  %v4396_v0 = vrot.slane %v1560_v54, %v3856_v13 }
 0x131   : > { %3078 = vmatpush1.bf16.msra.mxu1 %v3077_v26  ;;  %5502 = vst [vmem:[#allocation68_spill] sm:$0xff] %v4265_v41  ;;  %5504 = vst [vmem:[#allocation70_spill] sm:$0xff] %v4280_v33 }
 0x132   : > { %v653_v58 = vpop.permute.xlu1 %652  ;;  %v651_v53 = vpop.permute.xlu0 %650  ;;  %5518 = vst [vmem:[#allocation84_spill] sm:$0xff] %v4396_v0  ;;  %v4442_v0 = vld [vmem:[#allocation5 + $0x61] ss:$8 sm:$0xf] }
 0x133   : > { %v4255_v61 = vsel %vm5360_vm14, %v651_v53, %v653_v58 }
 0x134   : > { %5500 = vst [vmem:[#allocation66_spill] sm:$0xff] %v4255_v61  ;;  %v687_v6 = vmul.f32 %v4247_v2, %v4255_v61 }
 0x136   : > { %v657_v57 = vpop.permute.xlu1 %656  ;;  %v617_v26 = vpop.permute.xlu0 %616  ;;  %v3063_v45 = vpack.c.bf16 %v687_v6, %v647_v38  ;;  %v4283_v38 = vrot.slane %v664_v9, %v3872_v19  ;;  %v4289_v6 = vrot.slane %v624_v44, %v3872_v19 }
 0x137   : > { %v4269_v46 = vsel %vm5360_vm14, %v657_v57, %v651_v53  ;;  %v4273_v30 = vsel %vm5398_vm13, %v617_v26, %v611_v1  ;;  %v4286_v53 = vrot.slane %v624_v44, %v3870_v18  ;;  %v1425_v44 = vld [vmem:[#allocation5 + $0x42] ss:$8 sm:$0xf] }
 0x138   : > { %5503 = vst [vmem:[#allocation69_spill] sm:$0xff] %v4273_v30  ;;  %v686_v2 = vmul.f32 %v4262_v34, %v4269_v46  ;;  %v646_v10 = vmul.f32 %v4265_v41, %v4273_v30  ;;  %3064 = vmatprep.subr.bf16.mxu0 %v3063_v45  ;;  %5505 = vst [vmem:[#allocation71_spill] sm:$0xff] %v4283_v38 }
 0x139   : > { %5506 = vst [vmem:[#allocation72_spill] sm:$0xff] %v4286_v53  ;;  %5507 = vst [vmem:[#allocation73_spill] sm:$0xff] %v4289_v6 }
 0x13a   : > { %v3065_v1 = vpack.c.bf16 %v686_v2, %v646_v10  ;;  %v655_v21 = vpop.permute.xlu1 %654  ;;  %v615_v20 = vpop.permute.xlu0 %614 }
 0x13b   : > { %v4293_v34 = vsel %vm5360_vm14, %v655_v21, %v657_v57  ;;  %v4297_v45 = vsel %vm5360_vm14, %v653_v58, %v655_v21  ;;  %v4301_v9 = vsel %vm5398_vm13, %v615_v20, %v617_v26  ;;  %v4305_v41 = vsel %vm5398_vm13, %v613_v11, %v615_v20  ;;  %v704_v57 = vld [vmem:[#allocation5 + $0x6] ss:$8 sm:$0xf]  ;;  %v744_v26 = vld [vmem:[#allocation5 + $0x7] ss:$8 sm:$0xf] }
 0x13c   : > { %5508 = vst [vmem:[#allocation74_spill] sm:$0xff] %v4293_v34  ;;  %5509 = vst [vmem:[#allocation75_spill] sm:$0xff] %v4301_v9  ;;  %v688_v10 = vmul.f32 %v4280_v33, %v4297_v45  ;;  %v689_v2 = vmul.f32 %v4283_v38, %v4293_v34  ;;  %3066 = vmatpush1.bf16.msra.mxu0 %v3065_v1  ;;  %v648_v21 = vmul.f32 %v4286_v53, %v4305_v41  ;;  %v1479_v11 = vld [vmem:[#allocation5 + $0x44] ss:$8 sm:$0xf] }
 0x13d   : > { %v649_v58 = vmul.f32 %v4289_v6, %v4301_v9  ;;  %v4319_v1 = vrot.slane %v704_v57, %v3854_v8  ;;  %vm738_vm14 = vcmp.lt.s32.totalorder %v3852_v7, 56  ;;  %v4323_v38 = vrot.slane %v744_v26, %v3854_v8 }
 0x13e   : > { %v4315_v48 = vpop.permute.xlu1 %692  ;;  %v691_v20 = vpop.permute.xlu0 %690  ;;  %v3081_v33 = vpack.c.bf16 %v688_v10, %v648_v21  ;;  %v4326_v6 = vrot.slane %v1425_v44, %v3856_v13  ;;  %v4329_v53 = vrot.slane %v1452_v50, %v3856_v13  ;;  %v4343_v21 = vrot.slane %v1425_v44, %v3854_v8 }
 0x13f   : > { %v3079_v29 = vpack.c.bf16 %v689_v2, %v649_v58  ;;  %5510 = vst [vmem:[#allocation76_spill] sm:$0xff] %v4319_v1  ;;  %5511 = vst [vmem:[#allocation77_spill] sm:$0xff] %v4323_v38  ;;  %v4337_v10 = vsel %vm698_vm15, %v691_v20, %v4315_v48  ;;  %v4340_v2 = vrot.slane %v1425_v44, %v3872_v19  ;;  %vm778_vm13 = vcmp.lt.s32.totalorder %v3852_v7, 55 }
 0x140   : > { %5512 = vst [vmem:[#allocation78_spill] sm:$0xff] %v4337_v10  ;;  %v4346_v58 = vrot.slane %v1425_v44, %v3870_v18  ;;  %v4369_v50 = vrot.slane %v744_v26, %v3856_v13  ;;  %v4372_v36 = vrot.slane %v704_v57, %v3856_v13  ;;  %v4378_v32 = vrot.slane %v1479_v11, %v3872_v19 }
 0x141   : > { %3080 = vmatprep.subr.bf16.mxu1 %v3079_v29  ;;  %v4355_v29 = vrot.slane %v1479_v11, %v3856_v13  ;;  %v4390_v22 = vrot.slane %v1479_v11, %v3870_v18  ;;  %v4399_v9 = vrot.slane %v1560_v54, %v3872_v19  ;;  %v4417_v28 = vrot.slane %v744_v26, %v3872_v19 }
 0x142   : > { %3082 = vmatpush1.bf16.msra.mxu1 %v3081_v33  ;;  %v733_v23 = vpop.permute.xlu1 %732  ;;  %v731_v24 = vpop.permute.xlu0 %730  ;;  %v727_v33 = vmul.f32 %v4319_v1, %v4337_v10  ;;  %5515 = vst [vmem:[#allocation81_spill] sm:$0xff] %v4369_v50  ;;  %5516 = vst [vmem:[#allocation82_spill] sm:$0xff] %v4372_v36  ;;  %v4384_v1 = vrot.slane %v1506_v49, %v3870_v18  ;;  %v4423_v34 = vrot.slane %v1560_v54, %v3854_v8 }
 0x143   : > { %v4362_v44 = vsel %vm738_vm14, %v731_v24, %v733_v23  ;;  %5522 = vst [vmem:[#allocation88_spill] sm:$0xff] %v4417_v28 }
 0x144   : > { %5514 = vst [vmem:[#allocation80_spill] sm:$0xff] %v4362_v44  ;;  %v767_v35 = vmul.f32 %v4323_v38, %v4362_v44  ;;  %v4387_v38 = vrot.slane %v1479_v11, %v3854_v8 }
 0x146   : > { %v737_v14 = vpop.permute.xlu1 %736  ;;  %v697_v10 = vpop.permute.xlu0 %696  ;;  %v3067_v44 = vpack.c.bf16 %v767_v35, %v727_v33  ;;  %v4414_v33 = vrot.slane %v744_v26, %v3870_v18  ;;  %v4438_v26 = vrot.slane %v1533_v55, %v3870_v18 }
 0x147   : > { %v4403_v49 = vsel %vm738_vm14, %v737_v14, %v731_v24  ;;  %v4407_v11 = vsel %vm698_vm15, %v697_v10, %v691_v20  ;;  %v4420_v24 = vrot.slane %v1533_v55, %v3872_v19  ;;  %v4426_v20 = vrot.slane %v704_v57, %v3870_v18 }
 0x148   : > { %5519 = vst [vmem:[#allocation85_spill] sm:$0xff] %v4403_v49  ;;  %5520 = vst [vmem:[#allocation86_spill] sm:$0xff] %v4407_v11  ;;  %v766_v15 = vmul.f32 %v4369_v50, %v4403_v49  ;;  %v726_v35 = vmul.f32 %v4372_v36, %v4407_v11  ;;  %3068 = vmatprep.subr.bf16.mxu0 %v3067_v44  ;;  %v4429_v50 = vrot.slane %v704_v57, %v3872_v19  ;;  %v784_v36 = vld [vmem:[#allocation5 + $0x20] ss:$8 sm:$0xf] }
 0x149   : > { %5521 = vst [vmem:[#allocation87_spill] sm:$0xff] %v4414_v33  ;;  %5523 = vst [vmem:[#allocation89_spill] sm:$0xff] %v4420_v24  ;;  %v4432_v44 = vrot.slane %v1560_v54, %v3870_v18  ;;  %v4435_v11 = vrot.slane %v1533_v55, %v3854_v8  ;;  %v4440_v49 = vld [vmem:[#allocation5 + $0x60] ss:$8 sm:$0xf] }
 0x14a   : > { %5524 = vst [vmem:[#allocation90_spill] sm:$0xff] %v4426_v20  ;;  %5525 = vst [vmem:[#allocation91_spill] sm:$0xff] %v4429_v50  ;;  %v3069_v61 = vpack.c.bf16 %v766_v15, %v726_v35  ;;  %v735_v24 = vpop.permute.xlu1 %734  ;;  %v695_v30 = vpop.permute.xlu0 %694 }
 0x14b   : > { %5526 = vst [vmem:[#allocation92_spill] sm:$0xff] %v4432_v44  ;;  %5527 = vst [vmem:[#allocation93_spill] sm:$0xff] %v4438_v26  ;;  %v4446_v57 = vsel %vm738_vm14, %v735_v24, %v737_v14  ;;  %v4450_v54 = vsel %vm738_vm14, %v733_v23, %v735_v24  ;;  %v4454_v44 = vsel %vm698_vm15, %v695_v30, %v697_v10 }
 0x14c   : > { %5528 = vst [vmem:[#allocation94_spill] sm:$0xff] %v4446_v57  ;;  %5529 = vst [vmem:[#allocation95_spill] sm:$0xff] %v4454_v44  ;;  %v4459_v55 = vsel %vm698_vm15, %v4315_v48, %v695_v30  ;;  %v768_v15 = vmul.f32 %v4414_v33, %v4450_v54  ;;  %v769_v14 = vmul.f32 %v4417_v28, %v4446_v57  ;;  %3070 = vmatpush1.bf16.msra.mxu0 %v3069_v61 }
 0x14d   : > { %v4467_v23 = vrot.slane %v784_v36, %v3854_v8  ;;  %v4471_v10 = vrot.slane %v4440_v49, %v3856_v13  ;;  %v4475_v48 = vrot.slane %v4442_v0, %v3856_v13  ;;  %v728_v30 = vmul.f32 %v4426_v20, %v4459_v55 }
 0x14e   : > { %v729_v35 = vmul.f32 %v4429_v50, %v4454_v44  ;;  %v4483_v61 = vrot.slane %v4442_v0, %v3872_v19  ;;  %v4487_v24 = vrot.slane %v4440_v49, %v3872_v19  ;;  %v4491_v28 = vrot.slane %v4442_v0, %v3854_v8  ;;  %v773_v20 = vpop.permute.xlu1 %772 }
 0x14f   : > { %5530 = vst [vmem:[#allocation96_spill] sm:$0xff] %v4467_v23  ;;  %5531 = vst [vmem:[#allocation97_spill] sm:$0xff] %v4471_v10  ;;  %v4495_v33 = vrot.slane %v4440_v49, %v3854_v8  ;;  %v771_v10 = vpop.permute.xlu0 %770  ;;  %v3085_v57 = vpack.c.bf16 %v768_v15, %v728_v30  ;;  %v4509_v8 = vrot.slane %v784_v36, %v3856_v13 }
 0x150   : > { %5532 = vst [vmem:[#allocation98_spill] sm:$0xff] %v4475_v48  ;;  %5533 = vst [vmem:[#allocation99_spill] sm:$0xff] %v4483_v61  ;;  %v4499_v50 = vsel %vm778_vm13, %v771_v10, %v773_v20  ;;  %v3083_v44 = vpack.c.bf16 %v769_v14, %v729_v35  ;;  %v4502_v48 = vrot.slane %v784_v36, %v3870_v18 }
 0x151   : > { %5534 = vst [vmem:[#allocation100_spill] sm:$0xff] %v4487_v24  ;;  %5535 = vst [vmem:[#allocation101_spill] sm:$0xff] %v4495_v33  ;;  %v1447_v24 = vmul.f32 %v4326_v6, %v4096_v56  ;;  %v807_v61 = vmul.f32 %v4467_v23, %v4499_v50  ;;  %v4512_v33 = vrot.slane %v784_v36, %v3872_v19 }
 0x152   : > { %5536 = vst [vmem:[#allocation102_spill] sm:$0xff] %v4502_v48  ;;  %v1474_v15 = vmul.f32 %v4329_v53, %v4081_v47  ;;  %v1477_v14 = vmul.f32 %v4332_v16, %v4085_v51  ;;  %v1450_v30 = vmul.f32 %v4340_v2, %v4089_v52  ;;  %v1475_v56 = vmul.f32 %v4349_v12, %v4151_v59  ;;  %v775_v47 = vpop.permute.xlu1 %774 }
 0x153   : > { %3084 = vmatprep.subr.bf16.mxu1 %v3083_v44  ;;  %v1448_v35 = vmul.f32 %v4343_v21, %v4132_v37  ;;  %v1449_v36 = vmul.f32 %v4346_v58, %v4128_v39  ;;  %v1476_v23 = vmul.f32 %v4352_v62, %v4147_v17  ;;  %1298 = vmatprep.subr.mxu0 %v807_v61  ;;  %v777_v51 = vpop.permute.xlu0 %776 }
 0x154   : > { %3086 = vmatpush1.bf16.msra.mxu1 %v3085_v57  ;;  %v1529_v52 = vmul.f32 %v4381_v25, %v4223_v3  ;;  %v4532_v59 = vsel %vm778_vm13, %v773_v20, %v775_v47  ;;  %v4536_v37 = vsel %vm778_vm13, %v775_v47, %v777_v51  ;;  %v4540_v39 = vsel %vm778_vm13, %v777_v51, %v771_v10 }
 0x155   : > { %v1502_v17 = vmul.f32 %v4387_v38, %v4231_v42  ;;  %v808_v44 = vmul.f32 %v4502_v48, %v4532_v59  ;;  %v806_v3 = vmul.f32 %v4509_v8, %v4540_v39  ;;  %v809_v20 = vmul.f32 %v4512_v33, %v4536_v37  ;;  %v810_v42 = vld [vmem:[%s5287_s2] sm:$0xff] }
 0x156   : > { %v3089_v57 = vpack.c.bf16 %v1474_v15, %v1447_v24  ;;  %v1531_v61 = vmul.f32 %v4375_v31, %v4195_v4  ;;  %v1504_v10 = vmul.f32 %v4378_v32, %v4199_v43  ;;  %v3087_v47 = vpack.c.bf16 %v1475_v56, %v1448_v35  ;;  %v5542_v35 = vld [vmem:[#allocation84_spill] sm:$0xff] }
 0x157   : > { %v3105_v51 = vpack.c.bf16 %v1476_v23, %v1449_v36  ;;  %v1528_v48 = vmul.f32 %v4358_v63, %v4181_v60  ;;  %1299 = vmatpush1.msra.mxu0 %v806_v3  ;;  %1369 = vmatprep.subr.mxu1 %v809_v20  ;;  %v3103_v62 = vpack.c.bf16 %v1477_v14, %v1450_v30  ;;  %v5537_v14 = vld [vmem:[#allocation69_spill] sm:$0xff]  ;;  %v5545_v3 = vmov 0.0  }
 0x158   : > { %v1501_v24 = vmul.f32 %v4355_v29, %v4175_v27  ;;  %v1530_v4 = vmul.f32 %v4384_v1, %v4219_v40  ;;  %v1503_v43 = vmul.f32 %v4390_v22, %v4227_v5  ;;  %1370 = vmatpush1.msra.mxu1 %v808_v44  ;;  %3088 = vmatprep.subr.bf16.mxu0 %v3087_v47  ;;  %v5538_v40 = vld [vmem:[#allocation89_spill] sm:$0xff]  ;;  %v5549_v47 = vld [vmem:[#allocation83_spill] sm:$0xff] }
 0x159   : > { %v1583_v23 = vmul.f32 %v4423_v34, %v4297_v45  ;;  %v1556_v60 = vmul.f32 %v4435_v11, %v4305_v41  ;;  %3001 = vmatmul.mubr.msk.f32.vlgmr.msra.gmra.mrb[0].mxu0 %vm1133_vm10, %v810_v42  ;;  %3104 = vmatprep.subr.bf16.mxu1 %v3103_v62  ;;  %v3091_v15 = vpack.c.bf16 %v1529_v52, %v1502_v17  ;;  %v5543_v52 = vld [vmem:[#allocation74_spill] sm:$0xff]  ;;  %v5544_v17 = vld [vmem:[#allocation92_spill] sm:$0xff] }
 0x15a   : > { %v1585_v27 = vmul.f32 %v4399_v9, %v4269_v46  ;;  %v1558_v30 = vmul.f32 %v5538_v40, %v5537_v14  ;;  %3090 = vmatpush1.bf16.msra.mxu0 %v3089_v57  ;;  %3002 = vmatmul.mubr.msk.f32.vlgmr.msra.gmra.mrb[0].mxu1 %vm1133_vm10, %v810_v42  ;;  %v3107_v5 = vpack.c.bf16 %v1531_v61, %v1504_v10  ;;  %v5541_v46 = vld [vmem:[#allocation66_spill] sm:$0xff]  ;;  %v5548_v10 = vld [vmem:[#allocation65_spill] sm:$0xff] }
 0x15b   : > { %v3093_v56 = vpack.c.bf16 %v1528_v48, %v1501_v24  ;;  %v4577_v45 = vrot.slane %v4442_v0, %v3870_v18  ;;  %v4581_v41 = vrot.slane %v4440_v49, %v3870_v18  ;;  %3092 = vmatprep.subr.bf16.mxu0 %v3091_v15  ;;  %3106 = vmatpush1.bf16.msra.mxu1 %v3105_v51  ;;  %v5546_v48 = vld [vmem:[#allocation75_spill] sm:$0xff]  ;;  %v5547_v49 = vld [vmem:[#allocation101_spill] sm:$0xff]  ;;  %v5553_v15 = vld [vmem:[#allocation100_spill] sm:$0xff] }
 0x15c   : > { %v3109_v62 = vpack.c.bf16 %v1530_v4, %v1503_v43  ;;  %v1582_v36 = vmul.f32 %v5542_v35, %v5541_v46  ;;  %v1584_v44 = vmul.f32 %v5544_v17, %v5543_v52  ;;  %3108 = vmatprep.subr.bf16.mxu1 %v3107_v5  ;;  %1736 = vmatprep.mubr.f32.mxu0 %v5545_v3  ;;  %v5550_v51 = vld [vmem:[#allocation85_spill] sm:$0xff]  ;;  %v5551_v24 = vld [vmem:[#allocation99_spill] sm:$0xff]  ;;  %v5552_v43 = vld [vmem:[#allocation86_spill] sm:$0xff] }
 0x15d   : > { %5539 = vst [vmem:[#allocation69_spill] sm:$0xff] %v4577_v45  ;;  %5540 = vst [vmem:[#allocation89_spill] sm:$0xff] %v4581_v41  ;;  %v1557_v0 = vmul.f32 %v4438_v26, %v5546_v48  ;;  %v1637_v20 = vmul.f32 %v4491_v28, %v4450_v54  ;;  %v1610_v57 = vmul.f32 %v5547_v49, %v4459_v55  ;;  %1807 = vmatprep.mubr.f32.mxu1 %v5545_v3  ;;  %v1641_v46 = vld [vmem:[#allocation5 + $0x62] ss:$8 sm:$0xf] }
 0x15e   : > { %v3095_v61 = vpack.c.bf16 %v1583_v23, %v1556_v60  ;;  %v1555_v42 = vmul.f32 %v5549_v47, %v5548_v10  ;;  %v1639_v4 = vmul.f32 %v5551_v24, %v5550_v51  ;;  %v1612_v14 = vmul.f32 %v5553_v15, %v5552_v43  ;;  %3094 = vmatpush1.bf16.msra.mxu0 %v3093_v56  ;;  %v5554_v52 = vld [vmem:[#allocation80_spill] sm:$0xff]  ;;  %v5555_v55 = vld [vmem:[#allocation98_spill] sm:$0xff]  ;;  %v5559_v24 = vld [vmem:[#allocation95_spill] sm:$0xff] }
 0x15f   : > { %v3111_v5 = vpack.c.bf16 %v1585_v27, %v1558_v30  ;;  %3110 = vmatpush1.bf16.msra.mxu1 %v3109_v62  ;;  %v1636_v23 = vmul.f32 %v5555_v55, %v5554_v52  ;;  %v5556_v60 = vld [vmem:[#allocation14_spill] sm:$0xff]  ;;  %v3113_v10 = vpack.c.bf16 %v1584_v44, %v1557_v0  ;;  %v1611_v43 = vmul.f32 %v4581_v41, %v5559_v24  ;;  %v5561_v30 = vld [vmem:[#allocation97_spill] sm:$0xff]  ;;  %v5638_v55 = vld [vmem:[#allocation71_spill] sm:$0xff] }
 0x160   : > { %3096 = vmatprep.subr.bf16.mxu0 %v3095_v61  ;;  %v3097_v54 = vpack.c.bf16 %v1582_v36, %v1555_v42  ;;  %v4604_v48 = vrot.slane %v1641_v46, %v5556_v60  ;;  %v5558_v26 = vld [vmem:[#allocation94_spill] sm:$0xff]  ;;  %v3099_v56 = vpack.c.bf16 %v1637_v20, %v1610_v57  ;;  %v4613_v62 = vrot.slane %v1641_v46, %v3872_v19 }
 0x161   : > { %3112 = vmatprep.subr.bf16.mxu1 %v3111_v5  ;;  %v1638_v51 = vmul.f32 %v4577_v45, %v5558_v26  ;;  %v5560_v27 = vld [vmem:[#allocation78_spill] sm:$0xff]  ;;  %v3115_v36 = vpack.c.bf16 %v1639_v4, %v1612_v14  ;;  %v4616_v44 = vrot.slane %v1641_v46, %v3856_v13  ;;  %v4621_v20 = vrot.slane %v1641_v46, %v3870_v18  ;;  %v3003_v13 = vld [vmem:[%s5287_s2 + $0x10] sm:$0xff]  ;;  %v5629_v45 = vld [vmem:[#allocation67_spill] sm:$0xff] }
 0x162   : > { %5557 = vst [vmem:[#allocation66_spill] sm:$0xff] %v4604_v48  ;;  %v1609_v61 = vmul.f32 %v5561_v30, %v5560_v27  ;;  %5562 = vst [vmem:[#allocation84_spill] sm:$0xff] %v4613_v62  ;;  %3098 = vmatpush1.bf16.msra.mxu0 %v3097_v54  ;;  %v1664_v0 = vmul.f32 %v4604_v48, %v4532_v59  ;;  %v1666_v19 = vmul.f32 %v4613_v62, %v4540_v39  ;;  %v5637_v15 = vld [vmem:[#allocation70_spill] sm:$0xff] }
 0x163   : > { %3100 = vmatprep.subr.bf16.mxu0 %v3099_v56  ;;  %3114 = vmatpush1.bf16.msra.mxu1 %v3113_v10  ;;  %5563 = vst [vmem:[#allocation74_spill] sm:$0xff] %v4616_v44  ;;  %v3117_v26 = vpack.c.bf16 %v1638_v51, %v1611_v43  ;;  %5564 = vst [vmem:[#allocation75_spill] sm:$0xff] %v4621_v20  ;;  %v1663_v57 = vmul.f32 %v4616_v44, %v4499_v50  ;;  %v3503_v51 = vmov 0   ;;  %v1818_v43 = vld [vmem:[%s5288_s3] sm:$0xff]  ;;  %v5581_v44 = vld [vmem:[#allocation21_spill] sm:$0xff] }
 0x164   : > { %v3101_v42 = vpack.c.bf16 %v1636_v23, %v1609_v61  ;;  %3116 = vmatprep.subr.bf16.mxu1 %v3115_v36  ;;  %v1665_v59 = vmul.f32 %v4621_v20, %v4536_v37  ;;  %3309 = vset.pattern.permute.xlu0 %v3503_v51  ;;  %v1835_v56 = vmul.f32 512.0, %v1818_v43  ;;  %v1837_v27 = vmul.f32 2.0, %v1818_v43 }
 0x165   : > { %3310 = vset.pattern.permute.xlu1 %v3503_v51  ;;  %v1840_v61 = vmul.f32 %v1818_v43, %v1818_v43 }
 0x166   : > { %3102 = vmatpush1.bf16.msra.mxu0 %v3101_v42 }
 0x167   : > { %1688 = vmatprep.subr.mxu0 %v1664_v0  ;;  %3118 = vmatpush1.bf16.msra.mxu1 %v3117_v26  ;;  %v1841_v0 = vmul.f32 512.0, %v1840_v61 }
 0x168   : > { %1759 = vmatprep.subr.mxu1 %v1666_v19 }
 0x16a   : > { %1689 = vmatpush1.msra.mxu0 %v1663_v57 }
 0x16b   : > { %3004 = vmatmul.mubr.msk.f32.vlgmr.msra.gmra.mrb[0].mxu0 %vm1133_vm10, %v3003_v13  ;;  %1760 = vmatpush1.msra.mxu1 %v1665_v59 }
 0x16c   : > { %3005 = vmatmul.mubr.msk.f32.vlgmr.msra.gmra.mrb[0].mxu1 %vm1133_vm10, %v3003_v13  ;;  %2241 = vmatprep.mubr.f32.mxu0 %v5545_v3 }
 0x16d   : > { %2312 = vmatprep.mubr.f32.mxu1 %v5545_v3 }
 0x23e   : > { %v1738_v18 = vpop.f32.mrb[0].mxu0 }
 0x23f   : > { %v1826_v50 = vmul.f32 %v1738_v18, %v1738_v18  ;;  %v1740_v39 = vpop.f32.mrb[1].mxu0  ;;  %v1809_v24 = vpop.f32.mrb[0].mxu1 }
 0x240   : > { %v1821_v4 = vadd.f32 %v1740_v39, %v1738_v18  ;;  %v1827_v14 = vmul.f32 %v1740_v39, %v1740_v39  ;;  %v1811_v5 = vpop.f32.mrb[1].mxu1  ;;  %v1828_v46 = vmul.f32 %v1809_v24, %v1809_v24 }
 0x241   : > { %v1829_v23 = vmul.f32 %v1811_v5, %v1811_v5 }
 0x242   : > { %v1822_v54 = vadd.f32 %v1821_v4, %v1809_v24  ;;  %v1830_v37 = vadd.f32 %v1827_v14, %v1826_v50 }
 0x244   : > { %v1823_v52 = vadd.f32 %v1822_v54, %v1811_v5  ;;  %v1831_v60 = vadd.f32 %v1830_v37, %v1828_v46  ;;  %v1819_v37 = vld [vmem:[%s5289_s4] sm:$0xff] }
 0x246   : > { %1824 = vadd.xlane.f32.xlu0 %v1823_v52  ;;  %v1832_v10 = vadd.f32 %v1831_v60, %v1829_v23 }
 0x248   : > { %1833 = vadd.xlane.f32.xlu1 %v1832_v10  ;;  %v1820_v10 = vld [vmem:[%s5290_s5] sm:$0xff] }
 0x2d3   : > { %v1825_v36 = vpop.xlane.xlu0 %1824 }
 0x2d4   : > { %v1836_v42 = vadd.f32 %v1835_v56, %v1825_v36  ;;  %v1838_v26 = vmul.f32 %v1837_v27, %v1825_v36 }
 0x2d5   : > { %v1834_v19 = vpop.xlane.xlu1 %1833 }
 0x2d6   : > { %v1845_v57 = vmul.f32 0.001953125, %v1836_v42  ;;  %v1839_v13 = vadd.f32 %v1838_v26, %v1834_v19 }
 0x2d8   : > { %v1842_v59 = vadd.f32 %v1841_v0, %v1839_v13  ;;  %v1848_v50 = vmul.f32 %v1845_v57, %v1845_v57  ;;  %v1854_v23 = vsub.f32 %v1818_v43, %v1845_v57 }
 0x2da   : > { %v1847_v4 = vmul.f32 0.001953125, %v1842_v59 }
 0x2dc   : > { %v1849_v14 = vsub.f32 %v1847_v4, %v1848_v50 }
 0x2de   : > { %v1850_v46 = vmax.f32 %v1849_v14, 0.0 }
 0x2e0   : > { %v1851_v54 = vadd.f32 1e-05, %v1850_v46 }
 0x2e2   : > { %3311 = vrsqrt.f32 %v1851_v54 }
 0x2ec   : > { %v3312_v52 = vpop.eup %3311 }
 0x2ed   : > { %v1853_v60 = vmul.f32 %v3312_v52, %v1819_v37 }
 0x2ef   : > { %1859 = vperm.xlu0 %3309, %v1853_v60   ;;  %v1855_v51 = vmul.f32 %v1854_v23, %v1853_v60 }
 0x2f1   : > { %v1856_v56 = vadd.f32 %v1855_v51, %v1820_v10 }
 0x2f3   : > { %1868 = vperm.xlu1 %3310, %v1856_v56  }
 0x36e   : > { %v1860_v27 = vpop.permute.xlu0 %1859 }
 0x36f   : > { %v1862_v61 = vmul.f32 %v1860_v27, %v1738_v18  ;;  %v1863_v36 = vmul.f32 %v1860_v27, %v1740_v39  ;;  %v1864_v42 = vmul.f32 %v1860_v27, %v1809_v24  ;;  %v1865_v0 = vmul.f32 %v1860_v27, %v1811_v5 }
 0x372   : > { %v1869_v26 = vpop.permute.xlu1 %1868 }
 0x373   : > { %v1871_v19 = vadd.f32 %v1869_v26, %v1862_v61  ;;  %v1872_v13 = vadd.f32 %v1869_v26, %v1863_v36  ;;  %v1873_v59 = vadd.f32 %v1869_v26, %v1864_v42  ;;  %v1874_v50 = vadd.f32 %v1869_v26, %v1865_v0 }
 0x375   : > { %v1875_v43 = vsub.f32 0.0, %v1871_v19  ;;  %v1876_v57 = vsub.f32 0.0, %v1872_v13  ;;  %v1877_v4 = vsub.f32 0.0, %v1873_v59  ;;  %v1878_v37 = vsub.f32 0.0, %v1874_v50 }
 0x377   : > { %v1879_v14 = vmul.f32 1.442695, %v1875_v43  ;;  %v1881_v46 = vmul.f32 1.442695, %v1876_v57  ;;  %v1883_v54 = vmul.f32 1.442695, %v1877_v4 }
 0x378   : > { %v1885_v52 = vmul.f32 1.442695, %v1878_v37  ;;  %v5574_v37 = vld [vmem:[#allocation15_spill] sm:$0xff] }
 0x379   : > { %3313 = vpow2.f32 %v1879_v14 }
 0x37a   : > { %3315 = vpow2.f32 %v1881_v46 }
 0x37b   : > { %3317 = vpow2.f32 %v1883_v54 }
 0x37c   : > { %3319 = vpow2.f32 %v1885_v52 }
 0x383   : > { %v3314_v18 = vpop.eup %3313 }
 0x384   : > { %v3316_v39 = vpop.eup %3315  ;;  %v1887_v24 = vadd.f32 1.0, %v3314_v18 }
 0x385   : > { %v3318_v5 = vpop.eup %3317  ;;  %v1888_v23 = vadd.f32 1.0, %v3316_v39  ;;  %v5575_v39 = vld [vmem:[#allocation16_spill] sm:$0xff] }
 0x386   : > { %v1889_v60 = vadd.f32 1.0, %v3318_v5  ;;  %3321 = vrcp.f32 %v1887_v24  ;;  %v3320_v10 = vpop.eup %3319 }
 0x387   : > { %3323 = vrcp.f32 %v1888_v23  ;;  %v1890_v51 = vadd.f32 1.0, %v3320_v10 }
 0x388   : > { %3325 = vrcp.f32 %v1889_v60 }
 0x389   : > { %3327 = vrcp.f32 %v1890_v51 }
 0x390   : > { %v3322_v56 = vpop.eup %3321 }
 0x391   : > { %v3324_v27 = vpop.eup %3323  ;;  %v4645_v61 = vmul.f32 %v3322_v56, %v1871_v19 }
 0x392   : > { %v3326_v36 = vpop.eup %3325  ;;  %v4651_v26 = vmul.f32 %v3324_v27, %v1872_v13 }
 0x393   : > { %v4647_v42 = vmul.f32 %v3326_v36, %v1873_v59  ;;  %2044 = vrot.lane.b32.xlu1 %v4645_v61, %s3486_s28  ;;  %v3328_v0 = vpop.eup %3327  ;;  %v5576_v36 = vld [vmem:[#allocation17_spill] sm:$0xff] }
 0x394   : > { %v4663_v19 = vmul.f32 %v3328_v0, %v1874_v50 }
 0x395   : > { %2048 = vrot.lane.b32.xlu0 %v4647_v42, %s3486_s28 }
 0x397   : > { %2046 = vrot.lane.b32.xlu1 %v4651_v26, %s3486_s28 }
 0x399   : > { %2076 = vrot.lane.b32.xlu0 %v4645_v61, %s3487_s27 }
 0x39b   : > { %2060 = vrot.lane.b32.xlu1 %v4645_v61, %s3485_s29 }
 0x39d   : > { %2092 = vrot.lane.b32.xlu0 %v4645_v61, %s3488_s16 }
 0x39f   : > { %2062 = vrot.lane.b32.xlu1 %v4651_v26, %s3485_s29 }
 0x3a1   : > { %2082 = vrot.lane.b32.xlu0 %v4663_v19, %s3487_s27 }
 0x3a3   : > { %2050 = vrot.lane.b32.xlu1 %v4663_v19, %s3486_s28  ;;  %s5566_s28 = smov 119  }
 0x3a5   : > { %2080 = vrot.lane.b32.xlu0 %v4647_v42, %s3487_s27 }
 0x3a7   : > { %2066 = vrot.lane.b32.xlu1 %v4663_v19, %s3485_s29 }
 0x3a9   : > { %2110 = vrot.lane.b32.xlu0 %v4651_v26, %s3489_s17 }
 0x3ab   : > { %2064 = vrot.lane.b32.xlu1 %v4647_v42, %s3485_s29  ;;  %s5565_s29 = smov 72  }
 0x3ad   : > { %2108 = vrot.lane.b32.xlu0 %v4645_v61, %s3489_s17 }
 0x3af   : > { %2078 = vrot.lane.b32.xlu1 %v4651_v26, %s3487_s27  ;;  %s5567_s27 = smov 71  }
 0x3b1   : > { %2126 = vrot.lane.b32.xlu0 %v4651_v26, %s3490_s18 }
 0x3b3   : > { %2094 = vrot.lane.b32.xlu1 %v4651_v26, %s3488_s16 }
 0x3b5   : > { %2142 = vrot.lane.b32.xlu0 %v4651_v26, %s3491_s26 }
 0x3b7   : > { %2098 = vrot.lane.b32.xlu1 %v4663_v19, %s3488_s16 }
 0x3b9   : > { %2124 = vrot.lane.b32.xlu0 %v4645_v61, %s3490_s18 }
 0x3bb   : > { %2096 = vrot.lane.b32.xlu1 %v4647_v42, %s3488_s16  ;;  %s5568_s16 = smov 65  }
 0x3bd   : > { %2130 = vrot.lane.b32.xlu0 %v4663_v19, %s3490_s18 }
 0x3bf   : > { %2112 = vrot.lane.b32.xlu1 %v4647_v42, %s3489_s17 }
 0x3c1   : > { %1899 = vrot.lane.b32.xlu0 %v4645_v61, %s3492_s13 }
 0x3c3   : > { %2114 = vrot.lane.b32.xlu1 %v4663_v19, %s3489_s17  ;;  %s5569_s17 = smov 64  }
 0x3c5   : > { %1915 = vrot.lane.b32.xlu0 %v4645_v61, %s5565_s29 }
 0x3c7   : > { %2128 = vrot.lane.b32.xlu1 %v4647_v42, %s3490_s18  ;;  %s5570_s18 = smov 63  }
 0x3c9   : > { %2158 = vrot.lane.b32.xlu0 %v4651_v26, %s5566_s28 }
 0x3cb   : > { %2144 = vrot.lane.b32.xlu1 %v4647_v42, %s3491_s26 }
 0x3cd   : > { %1905 = vrot.lane.b32.xlu0 %v4663_v19, %s3492_s13 }
 0x3cf   : > { %2140 = vrot.lane.b32.xlu1 %v4645_v61, %s3491_s26 }
 0x3d1   : > { %2156 = vrot.lane.b32.xlu0 %v4645_v61, %s5566_s28 }
 0x3d3   : > { %2146 = vrot.lane.b32.xlu1 %v4663_v19, %s3491_s26  ;;  %s5571_s26 = smov 57  }
 0x3d5   : > { %1919 = vrot.lane.b32.xlu0 %v4647_v42, %s5565_s29 }
 0x3d7   : > { %1901 = vrot.lane.b32.xlu1 %v4651_v26, %s3492_s13 }
 0x3d9   : > { %1931 = vrot.lane.b32.xlu0 %v4645_v61, %s5567_s27 }
 0x3db   : > { %1917 = vrot.lane.b32.xlu1 %v4651_v26, %s5565_s29 }
 0x3dd   : > { %1947 = vrot.lane.b32.xlu0 %v4645_v61, %s5568_s16 }
 0x3df   : > { %2160 = vrot.lane.b32.xlu1 %v4647_v42, %s5566_s28 }
 0x3e1   : > { %1937 = vrot.lane.b32.xlu0 %v4663_v19, %s5567_s27 }
 0x3e3   : > { %1921 = vrot.lane.b32.xlu1 %v4663_v19, %s5565_s29  ;;  %s5676_s29 = sld [smem:[#allocation103_spill]] }
 0x3e5   : > { %1935 = vrot.lane.b32.xlu0 %v4647_v42, %s5567_s27 }
 0x3e7   : > { %1903 = vrot.lane.b32.xlu1 %v4647_v42, %s3492_s13  ;;  %s5572_s13 = smov 56  }
 0x3e9   : > { %1963 = vrot.lane.b32.xlu0 %v4645_v61, %s5569_s17 }
 0x3eb   : > { %2162 = vrot.lane.b32.xlu1 %v4663_v19, %s5566_s28  ;;  %s3022_s28 = sshll.u32 %s3591_s25, 9  ;;  %s2893_s25 = scalar_lea.sflag [#allocation4], %s3706_s21 }
 0x3ed   : > { %1979 = vrot.lane.b32.xlu0 %v4645_v61, %s5570_s18 }
 0x3ef   : > { %1933 = vrot.lane.b32.xlu1 %v4651_v26, %s5567_s27  ;;  %s5677_s27 = sshll.u32 %s3706_s21, 5 }
 0x3f1   : > { %1969 = vrot.lane.b32.xlu0 %v4663_v19, %s5569_s17 }
 0x3f3   : > { %1949 = vrot.lane.b32.xlu1 %v4651_v26, %s5568_s16 }
 0x3f5   : > { %1967 = vrot.lane.b32.xlu0 %v4647_v42, %s5569_s17 }
 0x3f7   : > { %1953 = vrot.lane.b32.xlu1 %v4663_v19, %s5568_s16 }
 0x3f9   : > { %1995 = vrot.lane.b32.xlu0 %v4645_v61, %s5571_s26 }
 0x3fb   : > { %1951 = vrot.lane.b32.xlu1 %v4647_v42, %s5568_s16  ;;  %s444_s16 = scalar_lea.vmem [#allocation7], %s5677_s27 }
 0x3fd   : > { %2011 = vrot.lane.b32.xlu0 %v4645_v61, %s5572_s13 }
 0x3ff   : > { %1965 = vrot.lane.b32.xlu1 %v4651_v26, %s5569_s17  ;;  %s2907_s17 = sshll.u32 %s444_s16, 4  ;;  %s5243_s17 = int_to_ptr.vmem [resolvable:$true] %s2907_s17 }
 0x400   : > { %p3416_p10 = scmp.lt.s32.totalorder %s5243_s17, %s3414_s19 }
 0x401   : > { %2001 = vrot.lane.b32.xlu0 %v4663_v19, %s5571_s26 }
 0x403   : > { %1981 = vrot.lane.b32.xlu1 %v4651_v26, %s5570_s18 }
 0x405   : > { %1999 = vrot.lane.b32.xlu0 %v4647_v42, %s5571_s26  ;;  %v2045_v13 = vpop.permute.xlu1 %2044 }
 0x407   : > { %v2049_v59 = vpop.permute.xlu0 %2048  ;;  %1985 = vrot.lane.b32.xlu1 %v4663_v19, %s5570_s18 }
 0x409   : > { %2027 = vrot.lane.b32.xlu0 %v4645_v61, %s5573_s12  ;;  %v2047_v50 = vpop.permute.xlu1 %2046 }
 0x40a   : > { %v2054_v14 = vsel %vm819_vm1, %v2045_v13, %v2047_v50  ;;  %v2053_v27 = vsel %vm819_vm1, %v2047_v50, %v2049_v59 }
 0x40b   : > { %v2077_v43 = vpop.permute.xlu0 %2076  ;;  %1983 = vrot.lane.b32.xlu1 %v4647_v42, %s5570_s18  ;;  %v2057_v52 = vmul.f32 %v2054_v14, %v5574_v37 }
 0x40d   : > { %2033 = vrot.lane.b32.xlu0 %v4663_v19, %s5573_s12  ;;  %v2061_v57 = vpop.permute.xlu1 %2060 }
 0x40f   : > { %v2093_v4 = vpop.permute.xlu0 %2092  ;;  %1997 = vrot.lane.b32.xlu1 %v4651_v26, %s5571_s26  ;;  %s5678_s26 = sld [smem:[#allocation104_spill]] }
 0x411   : > { %v2063_v46 = vpop.permute.xlu1 %2062 }
 0x412   : > { %v2070_v54 = vsel %vm859_vm0, %v2061_v57, %v2063_v46 }
 0x413   : > { %v2083_v18 = vpop.permute.xlu0 %2082  ;;  %v2073_v24 = vmul.f32 %v2070_v54, %v5575_v39  ;;  %2013 = vrot.lane.b32.xlu1 %v4651_v26, %s5572_s13  ;;  %v5577_v54 = vld [vmem:[#allocation18_spill] sm:$0xff] }
 0x415   : > { %v2051_v5 = vpop.permute.xlu1 %2050  ;;  %v3119_v23 = vpack.c.bf16 %v2073_v24, %v2057_v52  ;;  %v5578_v24 = vld [vmem:[#allocation20_spill] sm:$0xff] }
 0x416   : > { %v2055_v10 = vsel %vm819_vm1, %v2051_v5, %v2045_v13  ;;  %v2052_v52 = vsel %vm819_vm1, %v2049_v59, %v2051_v5  ;;  %vm5623_vm1 = vcmp.lt.s32.totalorder %v3852_v7, 63 }
 0x417   : > { %v2081_v60 = vpop.permute.xlu0 %2080  ;;  %2017 = vrot.lane.b32.xlu1 %v4663_v19, %s5572_s13  ;;  %3120 = vmatprep.subr.bf16.mxu0 %v3119_v23  ;;  %v2056_v0 = vmul.f32 %v2055_v10, %v5576_v36  ;;  %v2058_v23 = vmul.f32 %v2053_v27, %v5578_v24  ;;  %v5579_v10 = vld [vmem:[#allocation19_spill] sm:$0xff] }
 0x418   : > { %v2059_v36 = vmul.f32 %v2052_v52, %v5579_v10  ;;  %v5584_v10 = vld [vmem:[#allocation26_spill] sm:$0xff] }
 0x419   : > { %v2067_v51 = vpop.permute.xlu1 %2066 }
 0x41a   : > { %v2071_v56 = vsel %vm859_vm0, %v2067_v51, %v2061_v57 }
 0x41b   : > { %v2111_v14 = vpop.permute.xlu0 %2110  ;;  %v2072_v37 = vmul.f32 %v2071_v56, %v5577_v54  ;;  %2015 = vrot.lane.b32.xlu1 %v4647_v42, %s5572_s13  ;;  %v5580_v56 = vld [vmem:[#allocation22_spill] sm:$0xff]  ;;  %s5241_s13 = scalar_lea.hbm %s5678_s26, %s3022_s28 }
 0x41d   : > { %v3121_v39 = vpack.c.bf16 %v2072_v37, %v2056_v0  ;;  %v2065_v13 = vpop.permute.xlu1 %2064  ;;  %v5582_v37 = vld [vmem:[#allocation23_spill] sm:$0xff] }
 0x41e   : > { %v2068_v57 = vsel %vm859_vm0, %v2065_v13, %v2067_v51  ;;  %v2069_v50 = vsel %vm859_vm0, %v2063_v46, %v2065_v13  ;;  %v5583_v13 = vld [vmem:[#allocation24_spill] sm:$0xff]  ;;  %vm5622_vm0 = vcmp.lt.s32.totalorder %v3852_v7, 64 }
 0x41f   : > { %v2109_v20 = vpop.permute.xlu0 %2108  ;;  %v2074_v54 = vmul.f32 %v2069_v50, %v5580_v56  ;;  %v2075_v62 = vmul.f32 %v2068_v57, %v5581_v44  ;;  %2029 = vrot.lane.b32.xlu1 %v4651_v26, %s5573_s12  ;;  %3122 = vmatpush1.bf16.msra.mxu0 %v3121_v39  ;;  %v2084_v56 = vsel %vm899_vm2, %v2081_v60, %v2083_v18 }
 0x421   : > { %v3137_v59 = vpack.c.bf16 %v2074_v54, %v2058_v23  ;;  %v2079_v5 = vpop.permute.xlu1 %2078  ;;  %v3135_v27 = vpack.c.bf16 %v2075_v62, %v2059_v36  ;;  %v2087_v62 = vsel %vm899_vm2, %v2083_v18, %v2077_v43  ;;  %v2118_v18 = vsel %vm979_vm4, %v2109_v20, %v2111_v14 }
 0x422   : > { %v2086_v46 = vsel %vm899_vm2, %v2077_v43, %v2079_v5  ;;  %v2088_v36 = vmul.f32 %v2087_v62, %v5584_v10  ;;  %v5586_v43 = vld [vmem:[#allocation30_spill] sm:$0xff] }
 0x423   : > { %v4811_v0 = vpop.permute.xlu0 %2126  ;;  %2031 = vrot.lane.b32.xlu1 %v4647_v42, %s5573_s12  ;;  %3136 = vmatprep.subr.bf16.mxu1 %v3135_v27  ;;  %v2089_v52 = vmul.f32 %v2086_v46, %v5582_v37  ;;  %v2085_v46 = vsel %vm899_vm2, %v2079_v5, %v2081_v60  ;;  %vm5626_vm2 = vmmov %vm5622_vm0  ;;  %s3409_s12 = scalar_lea.vmem %s5243_s17, 512 }
 0x424   : > { %3138 = vmatpush1.bf16.msra.mxu1 %v3137_v59  ;;  %v5585_v59 = vld [vmem:[#allocation25_spill] sm:$0xff]  ;;  %p3410_p4 = scmp.ne.s32.totalorder %s5243_s17, %s3409_s12  ;;  %p3417_p13 = scmp.lt.s32.totalorder %s3415_s11, %s3409_s12 }
 0x425   : > { %v2095_v51 = vpop.permute.xlu1 %2094 }
 0x426   : > { %v2102_v44 = vsel %vm939_vm3, %v2093_v4, %v2095_v51  ;;  %p3411_p6 = pnand %p3410_p4, %p3661_p12  ;;  %p3418_p3 = por %p3417_p13, %p3416_p10 }
 0x427   : > { %v2143_v39 = vpop.permute.xlu0 %2142  ;;  %v2105_v24 = vmul.f32 %v2102_v44, %v5583_v13  ;;  %v2091_v13 = vmul.f32 %v2084_v56, %v5586_v43 }
 0x428   : > { %p3412_p8 = pneg %p3411_p6 }
 0x429   : > { %v2099_v23 = vpop.permute.xlu1 %2098  ;;  %v3123_v57 = vpack.c.bf16 %v2105_v24, %v2089_v52  ;;  %v5587_v24 = vld [vmem:[#allocation29_spill] sm:$0xff] }
 0x42a   : > { %v2103_v50 = vsel %vm939_vm3, %v2099_v23, %v2093_v4  ;;  %v2090_v62 = vmul.f32 %v2085_v46, %v5587_v24  ;;  %p3419_p7 = pnand %p3418_p3, %p3412_p8 }
 0x42b   : > { %v2125_v54 = vpop.permute.xlu0 %2124  ;;  %v2104_v27 = vmul.f32 %v2103_v50, %v5585_v59  ;;  %3124 = vmatprep.subr.bf16.mxu0 %v3123_v57  ;;  %v5588_v57 = vld [vmem:[#allocation27_spill] sm:$0xff]  ;;  %v5589_v59 = vld [vmem:[#allocation28_spill] sm:$0xff] }
 0x42d   : > { %v3125_v44 = vpack.c.bf16 %v2104_v27, %v2088_v36  ;;  %v2097_v37 = vpop.permute.xlu1 %2096  ;;  %v5590_v27 = vld [vmem:[#allocation33_spill] sm:$0xff] }
 0x42e   : > { %v2100_v52 = vsel %vm939_vm3, %v2097_v37, %v2099_v23  ;;  %v2101_v4 = vsel %vm939_vm3, %v2095_v51, %v2097_v37  ;;  %v2120_v43 = vmul.f32 %v2118_v18, %v5590_v27  ;;  %v5591_v37 = vld [vmem:[#allocation31_spill] sm:$0xff]  ;;  %v5595_v27 = vld [vmem:[#allocation36_spill] sm:$0xff]  ;;  %vm5627_vm3 = vmmov %vm5623_vm1 }
 0x42f   : > { %v2131_v50 = vpop.permute.xlu0 %2130  ;;  %v2106_v10 = vmul.f32 %v2101_v4, %v5588_v57  ;;  %v2107_v60 = vmul.f32 %v2100_v52, %v5589_v59  ;;  %3126 = vmatpush1.bf16.msra.mxu0 %v3125_v44 }
 0x430   : > { %v3129_v52 = vpack.c.bf16 %v2120_v43, %v4645_v61 }
 0x431   : > { %v3141_v5 = vpack.c.bf16 %v2106_v10, %v2090_v62  ;;  %v2113_v36 = vpop.permute.xlu1 %2112  ;;  %v3139_v56 = vpack.c.bf16 %v2107_v60, %v2091_v13  ;;  %v5593_v62 = vld [vmem:[#allocation34_spill] sm:$0xff] }
 0x432   : > { %v2117_v23 = vsel %vm979_vm4, %v2111_v14, %v2113_v36  ;;  %v5592_v14 = vld [vmem:[#allocation32_spill] sm:$0xff] }
 0x433   : > { %v4844_v51 = vpop.permute.xlu0 %1899  ;;  %v2121_v48 = vmul.f32 %v2117_v23, %v5591_v37  ;;  %3140 = vmatprep.subr.bf16.mxu1 %v3139_v56 }
 0x434   : > { %3142 = vmatpush1.bf16.msra.mxu1 %v3141_v5  ;;  %v5594_v5 = vld [vmem:[#allocation35_spill] sm:$0xff] }
 0x435   : > { %v2115_v46 = vpop.permute.xlu1 %2114  ;;  %v3127_v4 = vpack.c.bf16 %v2121_v48, %v4651_v26 }
 0x436   : > { %v2116_v44 = vsel %vm979_vm4, %v2113_v36, %v2115_v46  ;;  %v2119_v13 = vsel %vm979_vm4, %v2115_v46, %v2109_v20  ;;  %v5596_v46 = vld [vmem:[#allocation38_spill] sm:$0xff]  ;;  %vm5630_vm4 = vmmov %vm5622_vm0 }
 0x437   : > { %v4853_v18 = vpop.permute.xlu0 %1915  ;;  %v2122_v24 = vmul.f32 %v2116_v44, %v5592_v14  ;;  %v2123_v57 = vmul.f32 %v2119_v13, %v5593_v62  ;;  %3128 = vmatprep.subr.bf16.mxu0 %v3127_v4  ;;  %v5597_v44 = vld [vmem:[#allocation37_spill] sm:$0xff]  ;;  %v2135_v14 = vsel %vm1019_vm5, %v2131_v50, %v2125_v54 }
 0x438   : > { %3130 = vmatpush1.bf16.msra.mxu0 %v3129_v52 }
 0x439   : > { %v3145_v10 = vpack.c.bf16 %v2122_v24, %v4647_v42  ;;  %v2129_v59 = vpop.permute.xlu1 %2128  ;;  %v3143_v48 = vpack.c.bf16 %v2123_v57, %v4663_v19  ;;  %v2134_v42 = vsel %vm1019_vm5, %v2125_v54, %v4811_v0 }
 0x43a   : > { %v2133_v26 = vsel %vm1019_vm5, %v4811_v0, %v2129_v59  ;;  %v2136_v4 = vmul.f32 %v2134_v42, %v5596_v46  ;;  %v2132_v24 = vsel %vm1019_vm5, %v2129_v59, %v2131_v50  ;;  %vm5631_vm5 = vmmov %vm5622_vm0 }
 0x43b   : > { %v2159_v61 = vpop.permute.xlu0 %2158  ;;  %3144 = vmatprep.subr.bf16.mxu1 %v3143_v48  ;;  %v2137_v36 = vmul.f32 %v2133_v26, %v5594_v5  ;;  %v5599_v26 = vld [vmem:[#allocation41_spill] sm:$0xff] }
 0x43c   : > { %3146 = vmatpush1.bf16.msra.mxu1 %v3145_v10  ;;  %v5598_v10 = vld [vmem:[#allocation42_spill] sm:$0xff] }
 0x43d   : > { %v2145_v20 = vpop.permute.xlu1 %2144  ;;  %v2139_v48 = vmul.f32 %v2135_v14, %v5598_v10  ;;  %v5602_v14 = vld [vmem:[#allocation44_spill] sm:$0xff] }
 0x43e   : > { %v2149_v60 = vsel %vm1059_vm6, %v2143_v39, %v2145_v20 }
 0x43f   : > { %v1906_v56 = vpop.permute.xlu0 %1905  ;;  %v2153_v43 = vmul.f32 %v2149_v60, %v5595_v27  ;;  %v2138_v60 = vmul.f32 %v2132_v24, %v5599_v26 }
 0x441   : > { %v2141_v19 = vpop.permute.xlu1 %2140  ;;  %v3131_v23 = vpack.c.bf16 %v2153_v43, %v2137_v36  ;;  %v5600_v36 = vld [vmem:[#allocation39_spill] sm:$0xff]  ;;  %v5601_v43 = vld [vmem:[#allocation40_spill] sm:$0xff] }
 0x442   : > { %v2150_v37 = vsel %vm1059_vm6, %v2141_v19, %v2143_v39 }
 0x443   : > { %v4872_v52 = vpop.permute.xlu0 %2156  ;;  %v2152_v13 = vmul.f32 %v2150_v37, %v5597_v44  ;;  %3132 = vmatprep.subr.bf16.mxu0 %v3131_v23 }
 0x445   : > { %v3133_v62 = vpack.c.bf16 %v2152_v13, %v2136_v4  ;;  %v2147_v0 = vpop.permute.xlu1 %2146  ;;  %v2166_v13 = vsel %vm1099_vm7, %v4872_v52, %v2159_v61 }
 0x446   : > { %v2148_v57 = vsel %vm1059_vm6, %v2145_v20, %v2147_v0  ;;  %v2151_v39 = vsel %vm1059_vm6, %v2147_v0, %v2141_v19  ;;  %vm5633_vm6 = vmmov %vm5623_vm1 }
 0x447   : > { %v1920_v5 = vpop.permute.xlu0 %1919  ;;  %v2154_v27 = vmul.f32 %v2148_v57, %v5600_v36  ;;  %v2155_v54 = vmul.f32 %v2151_v39, %v5601_v43  ;;  %3134 = vmatpush1.bf16.msra.mxu0 %v3133_v62 }
 0x449   : > { %v3149_v42 = vpack.c.bf16 %v2154_v27, %v2138_v60  ;;  %v1902_v50 = vpop.permute.xlu1 %1901  ;;  %v3147_v59 = vpack.c.bf16 %v2155_v54, %v2139_v48  ;;  %v5604_v48 = vld [vmem:[#allocation43_spill] sm:$0xff]  ;;  %v5605_v60 = vld [vmem:[#allocation48_spill] sm:$0xff] }
 0x44a   : > { %v1909_v20 = vsel %vm459_vm9, %v4844_v51, %v1902_v50  ;;  %v2168_v36 = vmul.f32 %v2166_v13, %v5605_v60  ;;  %v3006_v54 = vld [vmem:[%s5291_s6 + $0x8] sm:$0xff] }
 0x44b   : > { %v4887_v23 = vpop.permute.xlu0 %1931  ;;  %3148 = vmatprep.subr.bf16.mxu1 %v3147_v59  ;;  %v4896_v46 = vmul.f32 %v1909_v20, %v4326_v6  ;;  %v5603_v6 = vld [vmem:[#allocation47_spill] sm:$0xff] }
 0x44c   : > { %3150 = vmatpush1.bf16.msra.mxu1 %v3149_v42  ;;  %v1912_v39 = vmul.f32 %v1909_v20, %v5603_v6  ;;  %v5606_v42 = vld [vmem:[#allocation46_spill] sm:$0xff] }
 0x44d   : > { %v1918_v19 = vpop.permute.xlu1 %1917 }
 0x44e   : > { %v1925_v37 = vsel %vm498_vm8, %v4853_v18, %v1918_v19  ;;  %v4951_v60 = vsel %vm498_vm8, %v1918_v19, %v1920_v5 }
 0x44f   : > { %v4898_v4 = vpop.permute.xlu0 %1947  ;;  %v4901_v44 = vmul.f32 %v1925_v37, %v4329_v53  ;;  %v1928_v24 = vmul.f32 %v1925_v37, %v5602_v14  ;;  %v1910_v53 = vsel %vm459_vm9, %v1906_v56, %v4844_v51  ;;  %v5607_v37 = vld [vmem:[#allocation45_spill] sm:$0xff] }
 0x450   : > { %v1911_v59 = vmul.f32 %v1910_v53, %v5606_v42  ;;  %v4925_v20 = vmul.f32 %v1910_v53, %v4340_v2 }
 0x451   : > { %v2161_v0 = vpop.permute.xlu1 %2160  ;;  %v3151_v43 = vpack.c.bf16 %v1928_v24, %v1912_v39 }
 0x452   : > { %v2165_v57 = vsel %vm1099_vm7, %v2159_v61, %v2161_v0 }
 0x453   : > { %v1938_v10 = vpop.permute.xlu0 %1937  ;;  %v2169_v26 = vmul.f32 %v2165_v57, %v5604_v48  ;;  %v5608_v48 = vld [vmem:[#allocation50_spill] sm:$0xff] }
 0x455   : > { %2193 = vmatprep.subr.mxu0 %v2169_v26  ;;  %v1922_v27 = vpop.permute.xlu1 %1921 }
 0x456   : > { %v1926_v61 = vsel %vm498_vm8, %v1922_v27, %v4853_v18  ;;  %2194 = vmatpush1.msra.mxu0 %v2168_v36 }
 0x457   : > { %v1936_v51 = vpop.permute.xlu0 %1935  ;;  %v1927_v13 = vmul.f32 %v1926_v61, %v5607_v37  ;;  %v4929_v14 = vmul.f32 %v1926_v61, %v4332_v16  ;;  %3152 = vmatprep.subr.bf16.mxu0 %v3151_v43  ;;  %3007 = vmatmul.mubr.msk.f32.vlgmr.msra.gmra.mrb[2].mxu0 %vm1133_vm10, %v3006_v54  ;;  %v4941_v16 = vsel %vm498_vm8, %v1920_v5, %v1922_v27  ;;  %v5609_v27 = vld [vmem:[#allocation52_spill] sm:$0xff]  ;;  %v5613_v5 = vld [vmem:[#allocation51_spill] sm:$0xff]  ;;  %vm2738_vm8 = vcmask 64512  }
 0x458   : > { %2386 = vmatprep.mubr.f32.mxu0 %v5545_v3  ;;  %v1930_v43 = vmul.f32 %v4941_v16, %v5609_v27  ;;  %v1929_v19 = vmul.f32 %v4951_v60, %v5613_v5 }
 0x459   : > { %v3153_v24 = vpack.c.bf16 %v1927_v13, %v1911_v59  ;;  %v1904_v57 = vpop.permute.xlu1 %1903  ;;  %v5611_v59 = vld [vmem:[#allocation54_spill] sm:$0xff]  ;;  %v5612_v13 = vld [vmem:[#allocation53_spill] sm:$0xff] }
 0x45a   : > { %v4937_v2 = vsel %vm459_vm9, %v1904_v57, %v1906_v56  ;;  %v4945_v39 = vsel %vm459_vm9, %v1902_v50, %v1904_v57  ;;  %v5610_v50 = vld [vmem:[#allocation49_spill] sm:$0xff] }
 0x45b   : > { %v1964_v6 = vpop.permute.xlu0 %1963  ;;  %3154 = vmatpush1.bf16.msra.mxu0 %v3153_v24  ;;  %v1914_v26 = vmul.f32 %v4937_v2, %v5608_v48  ;;  %v1913_v61 = vmul.f32 %v4945_v39, %v5610_v50 }
 0x45d   : > { %v2163_v53 = vpop.permute.xlu1 %2162  ;;  %v3167_v57 = vpack.c.bf16 %v1930_v43, %v1914_v26  ;;  %v3169_v48 = vpack.c.bf16 %v1929_v19, %v1913_v61  ;;  %v5614_v26 = vld [vmem:[#allocation55_spill] sm:$0xff]  ;;  %v5615_v43 = vld [vmem:[#allocation56_spill] sm:$0xff]  ;;  %v4985_v61 = vsel %vm538_vm11, %v1938_v10, %v4887_v23  ;;  %v5617_v19 = vld [vmem:[#allocation57_spill] sm:$0xff] }
 0x45e   : > { %v2164_v56 = vsel %vm1099_vm7, %v2161_v0, %v2163_v53  ;;  %v2167_v36 = vsel %vm1099_vm7, %v2163_v53, %v4872_v52  ;;  %vm5635_vm7 = vmmov %vm5623_vm1 }
 0x45f   : > { %v1980_v42 = vpop.permute.xlu0 %1979  ;;  %v2170_v37 = vmul.f32 %v2164_v56, %v5611_v59  ;;  %v2171_v24 = vmul.f32 %v2167_v36, %v5612_v13 }
 0x461   : > { %2264 = vmatprep.subr.mxu1 %v2171_v24  ;;  %v1934_v0 = vpop.permute.xlu1 %1933  ;;  %v5616_v24 = vld [vmem:[#allocation58_spill] sm:$0xff] }
 0x462   : > { %2265 = vmatpush1.msra.mxu1 %v2170_v37  ;;  %v4969_v53 = vsel %vm538_vm11, %v4887_v23, %v1934_v0  ;;  %v1943_v5 = vmul.f32 %v4985_v61, %v5616_v24  ;;  %v5002_v23 = vsel %vm538_vm11, %v1934_v0, %v1936_v51  ;;  %v5619_v24 = vld [vmem:[#allocation61_spill] sm:$0xff]  ;;  %v5621_v0 = vld [vmem:[#allocation60_spill] sm:$0xff] }
 0x463   : > { %3168 = vmatprep.subr.bf16.mxu1 %v3167_v57  ;;  %v1970_v52 = vpop.permute.xlu0 %1969  ;;  %3008 = vmatmul.mubr.msk.f32.vlgmr.msra.gmra.mrb[2].mxu1 %vm1133_vm10, %v3006_v54  ;;  %v1944_v27 = vmul.f32 %v4969_v53, %v5614_v26 }
 0x464   : > { %3170 = vmatpush1.bf16.msra.mxu1 %v3169_v48  ;;  %2457 = vmatprep.mubr.f32.mxu1 %v5545_v3  ;;  %v4998_v48 = vsel %vm538_vm11, %v1936_v51, %v1938_v10  ;;  %v1945_v10 = vmul.f32 %v5002_v23, %v5619_v24 }
 0x465   : > { %v1950_v56 = vpop.permute.xlu1 %1949 }
 0x466   : > { %v4976_v36 = vsel %vm578_vm12, %v4898_v4, %v1950_v56 }
 0x467   : > { %v1960_v50 = vmul.f32 %v4976_v36, %v5615_v43  ;;  %v1968_v37 = vpop.permute.xlu0 %1967 }
 0x469   : > { %v1954_v54 = vpop.permute.xlu1 %1953  ;;  %v3155_v59 = vpack.c.bf16 %v1960_v50, %v1944_v27  ;;  %v5618_v50 = vld [vmem:[#allocation62_spill] sm:$0xff] }
 0x46a   : > { %v4990_v13 = vsel %vm578_vm12, %v1954_v54, %v4898_v4 }
 0x46b   : > { %v1959_v57 = vmul.f32 %v4990_v13, %v5617_v19  ;;  %3156 = vmatprep.subr.bf16.mxu0 %v3155_v59  ;;  %v1946_v59 = vmul.f32 %v4998_v48, %v5618_v50  ;;  %v5620_v19 = vld [vmem:[#allocation59_spill] sm:$0xff] }
 0x46d   : > { %v3157_v26 = vpack.c.bf16 %v1959_v57, %v1943_v5  ;;  %v1952_v27 = vpop.permute.xlu1 %1951  ;;  %v1996_v57 = vpop.permute.xlu0 %1995 }
 0x46e   : > { %v5006_v4 = vsel %vm578_vm12, %v1952_v27, %v1954_v54  ;;  %v5010_v43 = vsel %vm578_vm12, %v1950_v56, %v1952_v27 }
 0x46f   : > { %v1961_v51 = vmul.f32 %v5010_v43, %v5620_v19  ;;  %v1962_v5 = vmul.f32 %v5006_v4, %v5621_v0  ;;  %3158 = vmatpush1.bf16.msra.mxu0 %v3157_v26  ;;  %v5624_v19 = vld [vmem:[#allocation63_spill] sm:$0xff]  ;;  %v5625_v26 = vld [vmem:[#allocation64_spill] sm:$0xff] }
 0x471   : > { %v3173_v54 = vpack.c.bf16 %v1961_v51, %v1945_v10  ;;  %v1966_v18 = vpop.permute.xlu1 %1965  ;;  %v3171_v62 = vpack.c.bf16 %v1962_v5, %v1946_v59  ;;  %v2012_v50 = vpop.permute.xlu0 %2011 }
 0x472   : > { %v5022_v56 = vsel %vm5622_vm0, %v1964_v6, %v1966_v18 }
 0x473   : > { %3172 = vmatprep.subr.bf16.mxu1 %v3171_v62  ;;  %v1976_v0 = vmul.f32 %v5022_v56, %v5624_v19  ;;  %v5034_v62 = vsel %vm5626_vm2, %v1970_v52, %v1964_v6  ;;  %v5050_v6 = vsel %vm5631_vm5, %v1968_v37, %v1970_v52 }
 0x474   : > { %3174 = vmatpush1.bf16.msra.mxu1 %v3173_v54  ;;  %v5628_v54 = vld [vmem:[#allocation68_spill] sm:$0xff]  ;;  %5632 = vst [vmem:[#allocation65_spill] sm:$0xff] %v5050_v6 }
 0x475   : > { %v1982_v27 = vpop.permute.xlu1 %1981  ;;  %v1975_v41 = vmul.f32 %v5034_v62, %v5628_v54  ;;  %v2002_v19 = vpop.permute.xlu0 %2001 }
 0x476   : > { %v5026_v24 = vsel %vm5623_vm1, %v1980_v42, %v1982_v27 }
 0x477   : > { %v1992_v10 = vmul.f32 %v5026_v24, %v5625_v26  ;;  %v5046_v26 = vsel %vm5630_vm4, %v1966_v18, %v1968_v37 }
 0x479   : > { %v1986_v59 = vpop.permute.xlu1 %1985  ;;  %v3159_v51 = vpack.c.bf16 %v1992_v10, %v1976_v0  ;;  %v2000_v49 = vpop.permute.xlu0 %1999 }
 0x47a   : > { %v5038_v5 = vsel %vm5627_vm3, %v1986_v59, %v1980_v42 }
 0x47b   : > { %v1991_v30 = vmul.f32 %v5038_v5, %v5629_v45  ;;  %3160 = vmatprep.subr.bf16.mxu0 %v3159_v51  ;;  %v5636_v45 = vld [vmem:[#allocation72_spill] sm:$0xff] }
 0x47c   : > { %v1977_v51 = vmul.f32 %v5046_v26, %v5636_v45  ;;  %v5643_v45 = vld [vmem:[#allocation77_spill] sm:$0xff] }
 0x47d   : > { %v3161_v0 = vpack.c.bf16 %v1991_v30, %v1975_v41  ;;  %v1984_v10 = vpop.permute.xlu1 %1983  ;;  %v5639_v41 = vld [vmem:[#allocation73_spill] sm:$0xff] }
 0x47e   : > { %v5054_v42 = vsel %vm5633_vm6, %v1984_v10, %v1986_v59  ;;  %v5058_v54 = vsel %vm5635_vm7, %v1982_v27, %v1984_v10  ;;  %v1978_v30 = vmul.f32 %v5050_v6, %v5639_v41 }
 0x47f   : > { %5634 = vst [vmem:[#allocation83_spill] sm:$0xff] %v5054_v42  ;;  %v1993_v18 = vmul.f32 %v5058_v54, %v5637_v15  ;;  %v1994_v52 = vmul.f32 %v5054_v42, %v5638_v55  ;;  %3162 = vmatpush1.bf16.msra.mxu0 %v3161_v0  ;;  %v5642_v55 = vld [vmem:[#allocation76_spill] sm:$0xff]  ;;  %v5647_v42 = vld [vmem:[#allocation81_spill] sm:$0xff]  ;;  %v2485_v7 = vmul.f32 %v5058_v54, %v4423_v34 }
 0x480   : > { %v2484_v34 = vmul.f32 %v5026_v24, %v5542_v35  ;;  %v2483_v35 = vmul.f32 %v5034_v62, %v5538_v40  ;;  %v5659_v24 = vld [vmem:[#allocation101_spill] sm:$0xff]  ;;  %v5662_v40 = vld [vmem:[#allocation99_spill] sm:$0xff] }
 0x481   : > { %v3177_v37 = vpack.c.bf16 %v1993_v18, %v1977_v51  ;;  %v1998_v59 = vpop.permute.xlu1 %1997  ;;  %v3175_v17 = vpack.c.bf16 %v1994_v52, %v1978_v30  ;;  %v5082_v18 = vsel %vm698_vm15, %v2002_v19, %v1996_v57  ;;  %v2028_v52 = vpop.permute.xlu0 %2027 }
 0x482   : > { %v5070_v27 = vsel %vm698_vm15, %v1996_v57, %v1998_v59  ;;  %5644 = vst [vmem:[#allocation80_spill] sm:$0xff] %v5082_v18  ;;  %v5098_v57 = vsel %vm698_vm15, %v1998_v59, %v2000_v49  ;;  %v2465_v59 = vmul.f32 %v4945_v39, %v4343_v21  ;;  %v2477_v21 = vmul.f32 %v5010_v43, %v4381_v25 }
 0x483   : > { %5640 = vst [vmem:[#allocation85_spill] sm:$0xff] %v5070_v27  ;;  %3176 = vmatprep.subr.bf16.mxu1 %v3175_v17  ;;  %v2008_v0 = vmul.f32 %v5070_v27, %v5642_v55  ;;  %v2476_v25 = vmul.f32 %v4976_v36, %v4358_v63  ;;  %v2472_v63 = vmul.f32 %v4969_v53, %v4355_v29 }
 0x484   : > { %3178 = vmatpush1.bf16.msra.mxu1 %v3177_v37  ;;  %v5646_v37 = vld [vmem:[#allocation82_spill] sm:$0xff]  ;;  %v2481_v29 = vmul.f32 %v5046_v26, %v4435_v11 }
 0x485   : > { %v2014_v10 = vpop.permute.xlu1 %2013  ;;  %v2007_v6 = vmul.f32 %v5082_v18, %v5646_v37  ;;  %v2034_v27 = vpop.permute.xlu0 %2033  ;;  %v5649_v18 = vld [vmem:[#allocation90_spill] sm:$0xff] }
 0x486   : > { %v5074_v15 = vsel %vm738_vm14, %v2012_v50, %v2014_v10  ;;  %v3191_v53 = vpack.c.bf16 %v2485_v7, %v2481_v29 }
 0x487   : > { %5641 = vst [vmem:[#allocation86_spill] sm:$0xff] %v5074_v15  ;;  %v2024_v51 = vmul.f32 %v5074_v15, %v5643_v45  ;;  %v5094_v45 = vsel %vm698_vm15, %v2000_v49, %v2002_v19  ;;  %v2009_v19 = vmul.f32 %v5098_v57, %v5649_v18  ;;  %v5651_v49 = vld [vmem:[#allocation88_spill] sm:$0xff]  ;;  %v2469_v18 = vmul.f32 %v4951_v60, %v4349_v12  ;;  %v2043_v12 = vld [vmem:[%s5291_s6] sm:$0xff] }
 0x488   : > { %v2473_v60 = vmul.f32 %v5002_v23, %v4387_v38 }
 0x489   : > { %v2018_v41 = vpop.permute.xlu1 %2017  ;;  %v3163_v30 = vpack.c.bf16 %v2024_v51, %v2008_v0 }
 0x48a   : > { %v5086_v17 = vsel %vm738_vm14, %v2018_v41, %v2012_v50  ;;  %v3187_v36 = vpack.c.bf16 %v2477_v21, %v2473_v60  ;;  %v5670_v21 = vld [vmem:[#allocation69_spill] sm:$0xff]  ;;  %v5672_v60 = vld [vmem:[#allocation66_spill] sm:$0xff] }
 0x48b   : > { %5645 = vst [vmem:[#allocation14_spill] sm:$0xff] %v5086_v17  ;;  %v2023_v55 = vmul.f32 %v5086_v17, %v5647_v42  ;;  %3164 = vmatprep.subr.bf16.mxu0 %v3163_v30  ;;  %v5648_v42 = vld [vmem:[#allocation91_spill] sm:$0xff] }
 0x48c   : > { %v2010_v30 = vmul.f32 %v5094_v45, %v5648_v42  ;;  %v5650_v17 = vld [vmem:[#allocation87_spill] sm:$0xff] }
 0x48d   : > { %v3165_v0 = vpack.c.bf16 %v2023_v55, %v2007_v6  ;;  %v2016_v51 = vpop.permute.xlu1 %2015 }
 0x48e   : > { %v5102_v50 = vsel %vm738_vm14, %v2016_v51, %v2018_v41  ;;  %v2020_v37 = vsel %vm738_vm14, %v2014_v10, %v2016_v51  ;;  %v5117_v41 = vsel %vm778_vm13, %v2034_v27, %v2028_v52 }
 0x48f   : > { %v2025_v15 = vmul.f32 %v2020_v37, %v5650_v17  ;;  %v2026_v6 = vmul.f32 %v5102_v50, %v5651_v49  ;;  %3166 = vmatpush1.bf16.msra.mxu0 %v3165_v0  ;;  %v5652_v17 = vld [vmem:[#allocation96_spill] sm:$0xff]  ;;  %v2039_v39 = vmul.f32 %v5117_v41, %v4509_v8  ;;  %v5654_v49 = vld [vmem:[#allocation102_spill] sm:$0xff]  ;;  %v2493_v11 = vmul.f32 %v2020_v37, %v4491_v28 }
 0x491   : > { %v3181_v10 = vpack.c.bf16 %v2025_v15, %v2009_v19  ;;  %v2030_v55 = vpop.permute.xlu1 %2029  ;;  %v3179_v51 = vpack.c.bf16 %v2026_v6, %v2010_v30  ;;  %v2466_v15 = vmul.f32 %v4937_v2, %v4346_v58  ;;  %v3183_v30 = vpack.c.bf16 %v2469_v18, %v2465_v59  ;;  %v5653_v2 = vld [vmem:[#allocation79_spill] sm:$0xff]  ;;  %v5669_v18 = vld [vmem:[#allocation85_spill] sm:$0xff] }
 0x492   : > { %v5121_v42 = vsel %vm778_vm13, %v2028_v52, %v2030_v55  ;;  %v2470_v43 = vmul.f32 %v4941_v16, %v5653_v2  ;;  %v2479_v19 = vmul.f32 %v4990_v13, %v4375_v31  ;;  %v2475_v16 = vmul.f32 %v4985_v61, %v4378_v32  ;;  %v5658_v61 = vld [vmem:[#allocation83_spill] sm:$0xff]  ;;  %v5663_v62 = vld [vmem:[#allocation14_spill] sm:$0xff] }
 0x493   : > { %v2040_v0 = vmul.f32 %v5121_v42, %v5652_v17  ;;  %3180 = vmatprep.subr.bf16.mxu1 %v3179_v51  ;;  %v5655_v31 = vpack.c.bf16 %v4901_v44, %v4896_v46  ;;  %v2478_v13 = vmul.f32 %v5006_v4, %v4384_v1  ;;  %v2487_v32 = vmul.f32 %v5038_v5, %v4399_v9  ;;  %v5661_v5 = vld [vmem:[#allocation86_spill] sm:$0xff] }
 0x494   : > { %3182 = vmatpush1.bf16.msra.mxu1 %v3181_v10  ;;  %v3201_v23 = vpack.c.bf16 %v2470_v43, %v2466_v15  ;;  %v5656_v46 = vpack.c.bf16 %v4929_v14, %v4925_v20  ;;  %v3203_v44 = vpack.c.bf16 %v2479_v19, %v2475_v16  ;;  %v2474_v1 = vmul.f32 %v4998_v48, %v4390_v22  ;;  %v5657_v14 = vld [vmem:[#allocation92_spill] sm:$0xff]  ;;  %v5660_v48 = vld [vmem:[#allocation98_spill] sm:$0xff] }
 0x495   : > { %2338 = vmatprep.subr.mxu0 %v2040_v0  ;;  %v2032_v52 = vpop.permute.xlu1 %2031  ;;  %v2480_v9 = vmul.f32 %v5022_v56, %v5549_v47  ;;  %v2486_v4 = vmul.f32 %v5658_v61, %v5657_v14  ;;  %v2489_v22 = vmul.f32 %v5098_v57, %v5659_v24  ;;  %v2492_v26 = vmul.f32 %v5661_v5, %v5660_v48  ;;  %v5664_v56 = vld [vmem:[#allocation93_spill] sm:$0xff]  ;;  %v5666_v10 = vld [vmem:[#allocation100_spill] sm:$0xff] }
 0x496   : > { %v5142_v8 = vsel %vm778_vm13, %v2032_v52, %v2034_v27  ;;  %v2036_v58 = vsel %vm778_vm13, %v2030_v55, %v2032_v52  ;;  %2339 = vmatpush1.msra.mxu0 %v2039_v39  ;;  %v3205_v20 = vpack.c.bf16 %v2478_v13, %v2474_v1  ;;  %v2495_v54 = vmul.f32 %v5663_v62, %v5662_v40  ;;  %v5665_v27 = vld [vmem:[#allocation65_spill] sm:$0xff]  ;;  %v5667_v55 = vld [vmem:[#allocation80_spill] sm:$0xff] }
 0x497   : > { %v2041_v6 = vmul.f32 %v2036_v58, %v5654_v49  ;;  %v2042_v38 = vmul.f32 %v5142_v8, %v4512_v33  ;;  %3184 = vmatprep.subr.bf16.mxu0 %v3183_v30  ;;  %3009 = vmatmul.mubr.msk.f32.vlgmr.msra.gmra.mrb[2].mxu0 %vm1133_vm10, %v2043_v12  ;;  %v3189_v33 = vpack.c.bf16 %v2476_v25, %v2472_v63  ;;  %v5668_v57 = vld [vmem:[#allocation97_spill] sm:$0xff]  ;;  %v5673_v43 = vld [vmem:[#allocation84_spill] sm:$0xff]  ;;  %v3348_v63 = vld [vmem:[%s3712_s14] sm:$0xff] }
 0x498   : > { %3186 = vmatpush1.bf16.msra.mxu0 %v5655_v31  ;;  %2569 = vmatprep.mubr.f32.mxu0 %v5545_v3  ;;  %v3193_v28 = vpack.c.bf16 %v2484_v34, %v2480_v9  ;;  %v3207_v47 = vpack.c.bf16 %v2487_v32, %v2483_v35  ;;  %v2482_v37 = vmul.f32 %v5665_v27, %v5664_v56  ;;  %v5671_v30 = vld [vmem:[#allocation89_spill] sm:$0xff] }
 0x499   : > { %2409 = vmatprep.subr.mxu1 %v2042_v38  ;;  %3188 = vmatprep.subr.bf16.mxu0 %v3187_v36  ;;  %v3195_v59 = vpack.c.bf16 %v2493_v11, %v2489_v22  ;;  %v2491_v51 = vmul.f32 %v5667_v55, %v5666_v10  ;;  %v2488_v17 = vmul.f32 %v5669_v18, %v5668_v57  ;;  %v3347_v38 = vld [vmem:[%s3712_s14 + $0x8] sm:$0xff]  ;;  %v2651_v11 = vld [vmem:[%s5292_s7] sm:$0xff] }
 0x49a   : > { %2410 = vmatpush1.msra.mxu1 %v2041_v6  ;;  %v3209_v0 = vpack.c.bf16 %v2486_v4, %v2482_v37  ;;  %v2494_v39 = vmul.f32 %v5102_v50, %v5670_v21  ;;  %v2497_v25 = vmul.f32 %v2036_v58, %v5672_v60  ;;  %v2499_v19 = vmul.f32 %v5117_v41, %v5673_v43  ;;  %v5674_v50 = vld [vmem:[#allocation74_spill] sm:$0xff]  ;;  %v5675_v58 = vld [vmem:[#allocation75_spill] sm:$0xff]  ;;  %v3349_v41 = vld [vmem:[%s3712_s14 + $0x18] sm:$0xff] }
 0x49b   : > { %3200 = vmatprep.subr.bf16.mxu1 %v5656_v46  ;;  %3010 = vmatmul.mubr.msk.f32.vlgmr.msra.gmra.mrb[2].mxu1 %vm1133_vm10, %v2043_v12  ;;  %v3197_v15 = vpack.c.bf16 %v2492_v26, %v2488_v17  ;;  %v3211_v52 = vpack.c.bf16 %v2495_v54, %v2491_v51  ;;  %v2490_v12 = vmul.f32 %v5094_v45, %v5671_v30  ;;  %v3011_v45 = vld [vmem:[%s5291_s6 + $0x10] sm:$0xff]  ;;  %v2670_v35 = vmul.f32 2.0, %v2651_v11  ;;  %v2732_v17 = vld [vmem:[%s5676_s29] sm:$0xff] }
 0x49c   : > { %3202 = vmatpush1.bf16.msra.mxu1 %v3201_v23  ;;  %3190 = vmatpush1.bf16.msra.mxu0 %v3189_v33  ;;  %v2496_v49 = vmul.f32 %v5121_v42, %v5674_v50  ;;  %v2498_v6 = vmul.f32 %v5142_v8, %v5675_v58  ;;  %v3350_v42 = vld [vmem:[%s3712_s14 + $0x10] sm:$0xff]  ;;  %v2731_v8 = vld [vmem:[%s5295_s10] sm:$0xff]  ;;  %v2673_v9 = vmul.f32 %v2651_v11, %v2651_v11 }
 0x49d   : > { %3204 = vmatprep.subr.bf16.mxu1 %v3203_v44  ;;  %3192 = vmatprep.subr.bf16.mxu0 %v3191_v53  ;;  %v3213_v2 = vpack.c.bf16 %v2494_v39, %v2490_v12  ;;  %v2668_v53 = vmul.f32 512.0, %v2651_v11 }
 0x49e   : > { %2640 = vmatprep.mubr.f32.mxu1 %v5545_v3  ;;  %v2674_v4 = vmul.f32 512.0, %v2673_v9 }
 0x4a0   : > { %3206 = vmatpush1.bf16.msra.mxu1 %v3205_v20  ;;  %3194 = vmatpush1.bf16.msra.mxu0 %v3193_v28 }
 0x4a1   : > { %3208 = vmatprep.subr.bf16.mxu1 %v3207_v47  ;;  %3196 = vmatprep.subr.bf16.mxu0 %v3195_v59  ;;  %v2652_v47 = vld [vmem:[%s5293_s8] sm:$0xff] }
 0x4a2   : > { %v2653_v59 = vld [vmem:[%s5294_s9] sm:$0xff] }
 0x4a4   : > { %3210 = vmatpush1.bf16.msra.mxu1 %v3209_v0  ;;  %3198 = vmatpush1.bf16.msra.mxu0 %v3197_v15 }
 0x4a5   : > { %3212 = vmatprep.subr.bf16.mxu1 %v3211_v52  ;;  %2521 = vmatprep.subr.mxu0 %v2497_v25 }
 0x4a8   : > { %3214 = vmatpush1.bf16.msra.mxu1 %v3213_v2  ;;  %2522 = vmatpush1.msra.mxu0 %v2496_v49 }
 0x4a9   : > { %2592 = vmatprep.subr.mxu1 %v2499_v19  ;;  %3012 = vmatmul.mubr.msk.f32.vlgmr.msra.gmra.mrb[2].mxu0 %vm1133_vm10, %v3011_v45 }
 0x4aa   : > { %2742 = vmatprep.subr.mxu0 %v3347_v38  ;;  %2806 = vmatprep.mubr.f32.mxu0 %v5545_v3 }
 0x4ab   : > { %2743 = vmatpush1.msra.mxu0 %v3348_v63 }
 0x4ac   : > { %2593 = vmatpush1.msra.mxu1 %v2498_v6 }
 0x4ad   : > { %3013 = vmatmul.mubr.msk.f32.vlgmr.msra.gmra.mrb[2].mxu1 %vm1133_vm10, %v3011_v45  ;;  %2813 = vmatprep.subr.mxu1 %v3349_v41 }
 0x4ae   : > { %2814 = vmatpush1.msra.mxu1 %v3350_v42  ;;  %2877 = vmatprep.mubr.f32.mxu1 %v5545_v3 }
 0x4af   : > { %3014 = vmatmul.mubr.msk.f32.vlgmr.msra.gmra.mrb[4].mxu0 %vm2738_vm8, %v2731_v8 }
 0x4b1   : > { %3015 = vmatmul.mubr.msk.f32.vlgmr.msra.gmra.mrb[4].mxu1 %vm2738_vm8, %v2731_v8 }
 0x57c   : > { %v2571_v7 = vpop.f32.mrb[2].mxu0 }
 0x57d   : > { %v2659_v36 = vmul.f32 %v2571_v7, %v2571_v7  ;;  %v2573_v16 = vpop.f32.mrb[3].mxu0 }
 0x57e   : > { %v2654_v23 = vadd.f32 %v2573_v16, %v2571_v7  ;;  %v2660_v31 = vmul.f32 %v2573_v16, %v2573_v16 }
 0x580   : > { %v2642_v33 = vpop.f32.mrb[2].mxu1  ;;  %v2663_v13 = vadd.f32 %v2660_v31, %v2659_v36 }
 0x581   : > { %v2655_v29 = vadd.f32 %v2654_v23, %v2642_v33  ;;  %v2661_v34 = vmul.f32 %v2642_v33, %v2642_v33  ;;  %v2644_v32 = vpop.f32.mrb[3].mxu1 }
 0x582   : > { %v2662_v46 = vmul.f32 %v2644_v32, %v2644_v32  ;;  %v2808_v10 = vpop.f32.mrb[4].mxu0 }
 0x583   : > { %v2664_v44 = vadd.f32 %v2663_v13, %v2661_v34  ;;  %v2656_v3 = vadd.f32 %v2655_v29, %v2644_v32  ;;  %v2810_v57 = vpop.f32.mrb[5].mxu0 }
 0x584   : > { %v2879_v55 = vpop.f32.mrb[4].mxu1 }
 0x585   : > { %2657 = vadd.xlane.f32.xlu0 %v2656_v3  ;;  %v2665_v1 = vadd.f32 %v2664_v44, %v2662_v46  ;;  %v2881_v18 = vpop.f32.mrb[5].mxu1 }
 0x587   : > { %2666 = vadd.xlane.f32.xlu1 %v2665_v1 }
 0x612   : > { %v2658_v20 = vpop.xlane.xlu0 %2657 }
 0x613   : > { %v2669_v14 = vadd.f32 %v2668_v53, %v2658_v20  ;;  %v2671_v61 = vmul.f32 %v2670_v35, %v2658_v20 }
 0x614   : > { %v2667_v24 = vpop.xlane.xlu1 %2666 }
 0x615   : > { %v2677_v22 = vmul.f32 0.001953125, %v2669_v14  ;;  %v2672_v28 = vadd.f32 %v2671_v61, %v2667_v24 }
 0x617   : > { %v2675_v48 = vadd.f32 %v2674_v4, %v2672_v28  ;;  %v2680_v5 = vmul.f32 %v2677_v22, %v2677_v22  ;;  %v2686_v27 = vsub.f32 %v2651_v11, %v2677_v22 }
 0x619   : > { %v2679_v26 = vmul.f32 0.001953125, %v2675_v48 }
 0x61b   : > { %v2681_v40 = vsub.f32 %v2679_v26, %v2680_v5 }
 0x61d   : > { %v2682_v62 = vmax.f32 %v2681_v40, 0.0 }
 0x61f   : > { %v2683_v54 = vadd.f32 1e-05, %v2682_v62 }
 0x621   : > { %3329 = vrsqrt.f32 %v2683_v54 }
 0x62b   : > { %v3330_v56 = vpop.eup %3329 }
 0x62c   : > { %v2685_v37 = vmul.f32 %v3330_v56, %v2652_v47 }
 0x62e   : > { %2691 = vperm.xlu0 %3309, %v2685_v37   ;;  %v2687_v51 = vmul.f32 %v2686_v27, %v2685_v37 }
 0x630   : > { %v2688_v0 = vadd.f32 %v2687_v51, %v2653_v59 }
 0x632   : > { %2735 = vperm.xlu0 %3309, %v2732_v17   ;;  %2700 = vperm.xlu1 %3310, %v2688_v0  }
 0x6ad   : > { %v2692_v21 = vpop.permute.xlu0 %2691 }
 0x6ae   : > { %v2694_v39 = vmul.f32 %v2692_v21, %v2571_v7  ;;  %v2695_v15 = vmul.f32 %v2692_v21, %v2573_v16  ;;  %v2696_v52 = vmul.f32 %v2692_v21, %v2642_v33  ;;  %v2697_v30 = vmul.f32 %v2692_v21, %v2644_v32 }
 0x6b1   : > { %v2701_v12 = vpop.permute.xlu1 %2700  ;;  %v2736_v33 = vpop.permute.xlu0 %2735 }
 0x6b2   : > { %v2703_v60 = vadd.f32 %v2701_v12, %v2694_v39  ;;  %v2704_v25 = vadd.f32 %v2701_v12, %v2695_v15  ;;  %v2705_v2 = vadd.f32 %v2701_v12, %v2696_v52  ;;  %v2706_v43 = vadd.f32 %v2701_v12, %v2697_v30 }
 0x6b3   : > { %v2809_v34 = vadd.f32 %v2808_v10, %v2736_v33  ;;  %v2811_v44 = vadd.f32 %v2810_v57, %v2736_v33  ;;  %v2880_v11 = vadd.f32 %v2879_v55, %v2736_v33  ;;  %v2882_v9 = vadd.f32 %v2881_v18, %v2736_v33 }
 0x6b4   : > { %v2707_v19 = vsub.f32 0.0, %v2703_v60  ;;  %v2708_v50 = vsub.f32 0.0, %v2704_v25  ;;  %v2709_v49 = vsub.f32 0.0, %v2705_v2  ;;  %v2710_v45 = vsub.f32 0.0, %v2706_v43 }
 0x6b6   : > { %v2711_v58 = vmul.f32 1.442695, %v2707_v19  ;;  %v2713_v6 = vmul.f32 1.442695, %v2708_v50  ;;  %v2715_v38 = vmul.f32 1.442695, %v2709_v49 }
 0x6b7   : > { %v2717_v63 = vmul.f32 1.442695, %v2710_v45 }
 0x6b8   : > { %3331 = vpow2.f32 %v2711_v58 }
 0x6b9   : > { %3333 = vpow2.f32 %v2713_v6 }
 0x6ba   : > { %3335 = vpow2.f32 %v2715_v38 }
 0x6bb   : > { %3337 = vpow2.f32 %v2717_v63 }
 0x6c2   : > { %v3332_v41 = vpop.eup %3331 }
 0x6c3   : > { %v3334_v42 = vpop.eup %3333  ;;  %v2719_v8 = vadd.f32 1.0, %v3332_v41 }
 0x6c4   : > { %v3336_v7 = vpop.eup %3335  ;;  %v2720_v36 = vadd.f32 1.0, %v3334_v42 }
 0x6c5   : > { %v3338_v16 = vpop.eup %3337  ;;  %v2721_v23 = vadd.f32 1.0, %v3336_v7  ;;  %3339 = vrcp.f32 %v2719_v8 }
 0x6c6   : > { %v2722_v31 = vadd.f32 1.0, %v3338_v16  ;;  %3341 = vrcp.f32 %v2720_v36 }
 0x6c7   : > { %3343 = vrcp.f32 %v2721_v23 }
 0x6c8   : > { %3345 = vrcp.f32 %v2722_v31 }
 0x6cf   : > { %v3340_v13 = vpop.eup %3339 }
 0x6d0   : > { %v3342_v29 = vpop.eup %3341  ;;  %v2727_v32 = vmul.f32 %v3340_v13, %v2703_v60 }
 0x6d1   : > { %v3344_v46 = vpop.eup %3343  ;;  %v2728_v3 = vmul.f32 %v3342_v29, %v2704_v25 }
 0x6d2   : > { %v3346_v1 = vpop.eup %3345  ;;  %v2729_v53 = vmul.f32 %v3344_v46, %v2705_v2  ;;  %v2884_v35 = vadd.f32 %v2809_v34, %v2727_v32 }
 0x6d3   : > { %v2730_v20 = vmul.f32 %v3346_v1, %v2706_v43  ;;  %v2885_v14 = vadd.f32 %v2811_v44, %v2728_v3 }
 0x6d4   : > { %v2886_v61 = vadd.f32 %v2880_v11, %v2729_v53  ;;  %2888 = vst [vmem:[%s444_s16] sm:$0xff] %v2884_v35 }
 0x6d5   : > { %v2887_v4 = vadd.f32 %v2882_v9, %v2730_v20  ;;  %2889 = vst [vmem:[%s444_s16 + $0x8] sm:$0xff] %v2885_v14 }
 0x6d6   : > { %2890 = vst [vmem:[%s444_s16 + $0x10] sm:$0xff] %v2886_v61 }
 0x6d7   : > { %2891 = vst [vmem:[%s444_s16 + $0x18] sm:$0xff] %v2887_v4 }
 0x6d8   : > { %3422 = shalt.err (!%p3419_p7)
}
 0x6d9   : > { %s3423_s21 = scalar_lea.hbm %s5241_s13, 512  ;;  %s3427_s27 = scalar_lea.hbm %s5678_s26, 1024 }
 0x6da   : > { %p3424_p9 = scmp.ne.s32.totalorder %s5241_s13, %s3423_s21  ;;  %p3428_p0 = scmp.lt.u32.totalorder %s5241_s13, %s5678_s26 }
 0x6db   : > { %p3429_p11 = scmp.lt.u32.totalorder %s3427_s27, %s3423_s21  ;;  %p3431_p4 = scmp.lt.u32.totalorder %s3423_s21, %s5241_s13 }
 0x6dc   : > { %p3425_p2 = pnand %p3424_p9, %p3661_p12 }
 0x6dd   : > { %p3430_p1 = por %p3429_p11, %p3428_p0 }
 0x6de   : > { %p3426_p5 = pneg %p3425_p2 }
 0x6df   : > { %p3432_p6 = por %p3431_p4, %p3430_p1 }
 0x6e1   : > { %p3433_p8 = pnand %p3432_p6, %p3426_p5 }
 0x6e3   : > { %3436 = shalt.err (!%p3433_p8)
}
 0x6e4   : > { %3237 = dma.vmem_to_hbm [thread:$0]  (%p3661_p12), %s5243_s17, 512, %s5241_s13, %s2893_s25  }
 0x6e5 PF: > { %s5679_s18 = sld [smem:[#allocation11_spill]]  ;;  %s5680_s12 = sld [smem:[#allocation12_spill]] }
 0x6e6   : > { %p5682_p13 = scmp.ge.s32.totalorder %s3479_s24, 2 }
 0x6eb   : > { %s2919_s30 = sand.u32 1, %s5679_s18   ;;  %p5681_p10 = scmp.ne.s32.totalorder %s5680_s12, 0 }
 0x6ec   : > { %s2920_s19 = scalar_lea.sflag [#allocation4], %s2919_s30 }
 0x6ed   : > { %p3248_p3 = pnand %p5682_p13, %p5681_p10 }
 0x6ef   : > { %3462 = dma.done.wait (!%p3248_p3), %s2920_s19, 512  }
 0x6f0   : > { %3464 = vsyncadd (!%p3248_p3), %s2920_s19, 4294966784  ;;  %s5683_s24 = sld [smem:[#allocation13_spill]]  ;;  %s5684_s21 = smov %s3471_s22 }
 0x6f1   : > { %s5685_s22 = smov %s3475_s23  ;;  %s5686_s23 = smov %s3657_s15 }
 0x6f6   : > { %p26_p7 = scmp.ge.s32.totalorder %s5683_s24, 4  }
 0x6f8   :  { %28 = sbr.rel (!%p26_p7) target bundleno = 9 (0x9), region = 146 }
 0x6ff   :  { %2925 = vsyncpa [#allocation3], 1 }
 0x700   :  { %2927 = vsyncpa [#allocation3 + $0x1], 1 }
 0x701   :  { %2928 = vsyncpa [#allocation6], 1 }
 0x702   :  { %2929 = vsyncpa [#allocation4], 1 }
 0x703   :  { %2931 = vsyncpa [#allocation4 + $0x1], 1 }

</bundles_post_ra>
